<compile_context>
chip_gen: v6e
topology: v6e:2x2x1
jax: 0.10.0
libtpu: 0.0.40
codegen_flags: <defaults>
</compile_context>

<pallas_src>
import functools

import jax
import jax.numpy as jnp
from jax.experimental import pallas as pl
from jax.experimental.pallas import tpu as pltpu

BN_EPS = 1e-5  # nn.BatchNorm1d default


def _encoder_kernel(x_ref, w_ref, g_ref, beta_ref, o_ref, *, eps, n_block):
    j = pl.program_id(0)
    col0 = pl.multiple_of(j * n_block, 128)  # lane-aligned slice into resident gamma/beta rows

    # x.float() is done in the wrapper; optionally down-cast to the streamed weight dtype.
    x = x_ref[...]
    if w_ref.dtype != jnp.float32:
        x = x.astype(w_ref.dtype)

    # ---- Linear (bias omitted: exactly cancelled by the BN mean subtraction below) ----
    z = jnp.dot(x, w_ref[...], preferred_element_type=jnp.float32)  # MXU, (B, n_block) f32

    # ---- BatchNorm1d (training-mode forward: biased per-feature batch statistics) ----
    mean = jnp.mean(z, axis=0, keepdims=True)                       # (1, n_block)
    var = jnp.mean(jnp.square(z - mean), axis=0, keepdims=True)
    inv = jax.lax.rsqrt(var + eps)                                  # single EUP rsqrt

    g = g_ref[:, pl.ds(col0, n_block)]                              # VMEM-resident rows
    b = beta_ref[:, pl.ds(col0, n_block)]
    y = (z - mean) * (inv * g) + b

    # ---- ReLU ----
    o_ref[...] = jnp.maximum(y, 0.0).astype(o_ref.dtype)


def prepare_encoder_params(weight, bias, gamma, beta, *, n_block=640,
                           weight_dtype=jnp.float32):
    """One-time (init-time) prep: transpose + pad W, pad gamma/beta rows.

    `bias` is accepted for nn.Linear API parity but is unused: training-mode BatchNorm
    subtracts the per-feature batch mean, which exactly cancels any per-feature constant.
    """
    del bias
    N, K = weight.shape
    n_tiles = pl.cdiv(N, n_block)
    N_pad = n_tiles * n_block

    wt = jnp.zeros((K, N_pad), weight_dtype).at[:, :N].set(weight.T.astype(weight_dtype))
    # Padded cols: w=0 -> z=0, var=0, gamma=1, beta=0 -> output 0 (no NaNs), sliced off later.
    g_row = jnp.ones((1, N_pad), jnp.float32).at[0, :N].set(gamma.astype(jnp.float32))
    b_row = jnp.zeros((1, N_pad), jnp.float32).at[0, :N].set(beta.astype(jnp.float32))

    return {"wt": wt, "gamma": g_row, "beta": b_row, "n_out": N, "n_block": n_block}


def encoder_forward(x, params, *, eps=BN_EPS):
    """x: (B, 1280) -> (B, 1200). `params` from prepare_encoder_params (hot path only)."""
    wt = params["wt"]
    g_row = params["gamma"]
    b_row = params["beta"]
    N = params["n_out"]
    n_block = params["n_block"]

    B, K = x.shape
    K_w, N_pad = wt.shape
    assert K == K_w, (K, K_w)
    n_tiles = N_pad // n_block

    x = x.astype(jnp.float32)  # mirrors x.float() in the PyTorch forward

    out = pl.pallas_call(
        functools.partial(_encoder_kernel, eps=eps, n_block=n_block),
        out_shape=jax.ShapeDtypeStruct((B, N_pad), jnp.float32),
        grid=(n_tiles,),
        in_specs=[
            pl.BlockSpec((B, K), lambda j: (0, 0)),         # activations (VMEM resident)
            pl.BlockSpec((K, n_block), lambda j: (0, j)),   # weight slab (double-buffered)
            pl.BlockSpec((1, N_pad), lambda j: (0, 0)),     # gamma (resident, whole row)
            pl.BlockSpec((1, N_pad), lambda j: (0, 0)),     # beta  (resident, whole row)
        ],
        out_specs=pl.BlockSpec((B, n_block), lambda j: (0, j)),
        compiler_params=pltpu.CompilerParams(
            dimension_semantics=("parallel",),  # tiles independent (BN stats are per-feature)
        ),
    )(x, wt, g_row, b_row)

    return out[:, :N]


def _reference(x, weight, bias, gamma, beta, eps=BN_EPS):
    z = jnp.dot(x.astype(jnp.float32), weight.T.astype(jnp.float32),
                precision=jax.lax.Precision.HIGHEST) + bias
    mean = jnp.mean(z, axis=0)
    var = jnp.mean(jnp.square(z - mean), axis=0)
    y = (z - mean) / jnp.sqrt(var + eps) * gamma + beta
    return jnp.maximum(y, 0.0)


if __name__ == "__main__":
    key = jax.random.PRNGKey(0)
    k1, k2, k3, k4, k5 = jax.random.split(key, 5)

    B, K, N = 8, 1280, 1200  # batch, in_features, out_features (from the module)

    x = jax.random.normal(k1, (B, K), dtype=jnp.float32)
    weight = jax.random.normal(k2, (N, K), dtype=jnp.float32) * (1.0 / jnp.sqrt(K))
    bias = jax.random.normal(k3, (N,), dtype=jnp.float32) * 0.1
    gamma = 1.0 + 0.1 * jax.random.normal(k4, (N,), dtype=jnp.float32)
    beta = 0.1 * jax.random.normal(k5, (N,), dtype=jnp.float32)

    # One-time prep (init-time): transpose/pad off the per-call hot path.
    params = prepare_encoder_params(weight, bias, gamma, beta, n_block=640)
    jax.block_until_ready((params["wt"], params["gamma"], params["beta"]))

    fwd = jax.jit(lambda xx: encoder_forward(xx, params))
    out = jax.block_until_ready(fwd(x))

    ref = _reference(x, weight, bias, gamma, beta)
    assert out.shape == (B, N), out.shape
    max_err = float(jnp.max(jnp.abs(out - ref)))
    assert jnp.allclose(out, ref, atol=1e-3, rtol=1e-3), (
        f"mismatch vs reference, max abs err = {max_err}"
    )

    print("KERNEL_OK")
</pallas_src>

<mosaic_0001>
module attributes {stable_mosaic.version = 11 : i64} {
  func.func @_encoder_kernel(%arg0: i32, %arg1: memref<8x1280xf32, #tpu.memory_space<vmem>>, %arg2: memref<1280x640xf32, #tpu.memory_space<vmem>>, %arg3: memref<1x1280xf32, #tpu.memory_space<vmem>>, %arg4: memref<1x1280xf32, #tpu.memory_space<vmem>>, %arg5: memref<8x640xf32, #tpu.memory_space<vmem>>) attributes {dimension_semantics = [#tpu.dimension_semantics<parallel>], iteration_bounds = array<i64: 2>, scalar_prefetch = 0 : i64, scratch_operands = 0 : i64, tpu.core_type = #tpu.core_type<tc>, window_params = [{pipeline_mode = #tpu.pipeline_mode<synchronous>, transform_indices = @transform_0, window_bounds = array<i64: 8, 1280>}, {transform_indices = @transform_1, window_bounds = array<i64: 1280, 640>}, {pipeline_mode = #tpu.pipeline_mode<synchronous>, transform_indices = @transform_2, window_bounds = array<i64: 1, 1280>}, {pipeline_mode = #tpu.pipeline_mode<synchronous>, transform_indices = @transform_3, window_bounds = array<i64: 1, 1280>}, {transform_indices = @transform_4, window_bounds = array<i64: 8, 640>}]} {
    %c640_i32 = arith.constant 640 : i32
    %0 = arith.muli %arg0, %c640_i32 : i32
    %1 = tpu.assume_multiple %0, 128 : i32
    %c0 = arith.constant 0 : index
    %c0_0 = arith.constant 0 : index
    %2 = vector.load %arg1[%c0, %c0_0] : memref<8x1280xf32, #tpu.memory_space<vmem>>, vector<8x1280xf32>
    %c0_1 = arith.constant 0 : index
    %c0_2 = arith.constant 0 : index
    %3 = vector.load %arg2[%c0_1, %c0_2] : memref<1280x640xf32, #tpu.memory_space<vmem>>, vector<1280x640xf32>
    %cst = arith.constant dense<0.000000e+00> : vector<8x640xf32>
    %4 = tpu.matmul %2, %3, %cst {dimension_numbers = #tpu.dot_dimension_numbers<[1], [0], [0], [1], [0, 0, 1, 1], [], []>} : vector<8x1280xf32>, vector<1280x640xf32>, vector<8x640xf32> -> vector<8x640xf32>
    %cst_3 = arith.constant dense<0.000000e+00> : vector<640xf32>
    %5 = vector.multi_reduction <add>, %4, %cst_3 [0] : vector<8x640xf32> to vector<640xf32>
    %6 = vector.shape_cast %5 : vector<640xf32> to vector<1x640xf32>
    %cst_4 = arith.constant 8.000000e+00 : f32
    %7 = vector.broadcast %cst_4 : f32 to vector<1x640xf32>
    %8 = arith.divf %6, %7 : vector<1x640xf32>
    %9 = vector.broadcast %8 : vector<1x640xf32> to vector<8x640xf32>
    %10 = arith.subf %4, %9 : vector<8x640xf32>
    %11 = arith.mulf %10, %10 : vector<8x640xf32>
    %cst_5 = arith.constant dense<0.000000e+00> : vector<640xf32>
    %12 = vector.multi_reduction <add>, %11, %cst_5 [0] : vector<8x640xf32> to vector<640xf32>
    %13 = vector.shape_cast %12 : vector<640xf32> to vector<1x640xf32>
    %cst_6 = arith.constant 8.000000e+00 : f32
    %14 = vector.broadcast %cst_6 : f32 to vector<1x640xf32>
    %15 = arith.divf %13, %14 : vector<1x640xf32>
    %cst_7 = arith.constant 9.99999974E-6 : f32
    %16 = vector.broadcast %cst_7 : f32 to vector<1x640xf32>
    %17 = arith.addf %15, %16 : vector<1x640xf32>
    %18 = math.rsqrt %17 : vector<1x640xf32>
    %c0_8 = arith.constant 0 : index
    %19 = arith.index_cast %1 : i32 to index
    %20 = vector.load %arg3[%c0_8, %19] : memref<1x1280xf32, #tpu.memory_space<vmem>>, vector<1x640xf32>
    %c0_9 = arith.constant 0 : index
    %21 = arith.index_cast %1 : i32 to index
    %22 = vector.load %arg4[%c0_9, %21] : memref<1x1280xf32, #tpu.memory_space<vmem>>, vector<1x640xf32>
    %23 = vector.broadcast %8 : vector<1x640xf32> to vector<8x640xf32>
    %24 = arith.subf %4, %23 : vector<8x640xf32>
    %25 = arith.mulf %18, %20 : vector<1x640xf32>
    %26 = vector.broadcast %25 : vector<1x640xf32> to vector<8x640xf32>
    %27 = arith.mulf %24, %26 : vector<8x640xf32>
    %28 = vector.broadcast %22 : vector<1x640xf32> to vector<8x640xf32>
    %29 = arith.addf %27, %28 : vector<8x640xf32>
    %cst_10 = arith.constant 0.000000e+00 : f32
    %30 = vector.broadcast %cst_10 : f32 to vector<8x640xf32>
    %31 = arith.maximumf %29, %30 : vector<8x640xf32>
    %c0_11 = arith.constant 0 : index
    %c0_12 = arith.constant 0 : index
    %32 = vector.load %arg5[%c0_11, %c0_12] : memref<8x640xf32, #tpu.memory_space<vmem>>, vector<8x640xf32>
    tpu.vector_store %arg5[%c0_11, %c0_12], %31 {strides = array<i32>} : memref<8x640xf32, #tpu.memory_space<vmem>>, vector<8x640xf32>,
    return
  }
  func.func @transform_0(%arg0: i32) -> (i32, i32) {
    %c0_i32 = arith.constant 0 : i32
    %c0_i32_0 = arith.constant 0 : i32
    %c0_i32_1 = arith.constant 0 : i32
    return %c0_i32, %c0_i32_0 : i32, i32
  }
  func.func @transform_1(%arg0: i32) -> (i32, i32) {
    %c0_i32 = arith.constant 0 : i32
    %c0_i32_0 = arith.constant 0 : i32
    return %c0_i32, %arg0 : i32, i32
  }
  func.func @transform_2(%arg0: i32) -> (i32, i32) {
    %c0_i32 = arith.constant 0 : i32
    %c0_i32_0 = arith.constant 0 : i32
    %c0_i32_1 = arith.constant 0 : i32
    return %c0_i32, %c0_i32_0 : i32, i32
  }
  func.func @transform_3(%arg0: i32) -> (i32, i32) {
    %c0_i32 = arith.constant 0 : i32
    %c0_i32_0 = arith.constant 0 : i32
    %c0_i32_1 = arith.constant 0 : i32
    return %c0_i32, %c0_i32_0 : i32, i32
  }
  func.func @transform_4(%arg0: i32) -> (i32, i32) {
    %c0_i32 = arith.constant 0 : i32
    %c0_i32_0 = arith.constant 0 : i32
    return %c0_i32, %arg0 : i32, i32
  }
}

</mosaic_0001>

<bundles_post_ra>
// kernel: _lambda_.1
= control target key start
LH: loop header
LB: loop body
LE: loop exit
PB: predicated region body
PF: predicated region fallthrough
CT: control target
= control target key end

     0   :  { %9 = vsyncpa [#allocation3], 0  ;;  %s4028_s0 = inlined_call_operand.hbm [shape: f32[8,1280], index: 0, kind: input, shape index: {}]   ;;  %s4029_s1 = inlined_call_operand.hbm [shape: f32[1280,1280], index: 1, kind: input, shape index: {}]   ;;  %s4030_s2 = inlined_call_operand.hbm [shape: f32[1,1280], index: 2, kind: input, shape index: {}]   ;;  %s4031_s3 = inlined_call_operand.hbm [shape: f32[1,1280], index: 3, kind: input, shape index: {}]   ;;  %s4032_s4 = inlined_call_operand.hbm [shape: f32[8,1280], index: 4, kind: output, shape index: {}]  }
   0x1   :  { %10 = vsyncpa [#allocation6], 0 }
   0x2   :  { %12 = vsyncpa [#allocation6 + $0x1], 0 }
   0x3   :  { %13 = vsyncpa [#allocation9], 0 }
   0x4   :  { %14 = vsyncpa [#allocation4], 0 }
   0x5   :  { %16 = vsyncpa [#allocation4 + $0x1], 0  ;;  %s2954_s15 = smov 0   ;;  %s2956_s16 = smov 0  }
   0x6   :  { %s2958_s17 = smov 0   ;;  %s2960_s18 = smov 0  }
   0x7 LB: > { %s2975_s19 = sadd.s32 4294967295, %s2919_s18   ;;  %s2439_s20 = sadd.s32 4294967294, %s2919_s18   ;;  %s2919_s18 = sphi %s2960_s18, %s4061_s18   ;;  %s2915_s17 = sphi %s2958_s17, %s4060_s17   ;;  %s2911_s16 = sphi %s2956_s16, %s4059_s16   ;;  %s2907_s15 = sphi %s2954_s15, %s4058_s15  }
   0x8   : > { %s2979_s21 = sadd.s32 1, %s2919_s18   ;;  %s50_s22 = sadd.s32 1, %s2915_s17 }
   0x9   : > { %s47_s23 = ssub.s32 %s2919_s18, %s2979_s21  ;;  %p57_p0 = scmp.ne.s32.totalorder %s2915_s17, %s2911_s16 }
   0xa   : > { %p48_p1 = scmp.eq.s32.totalorder %s47_s23, 0  ;;  %p58_p2 = scmp.eq.s32.totalorder %s2919_s18, 0 }
   0xb   : > { %p63_p3 = scmp.ne.s32.totalorder %s2911_s16, %s2907_s15  ;;  %p4033_p4 = scmp.eq.s32.totalorder %s2975_s19, 0 }
   0xc   : > { %s2991_s24 = scalar_select %p48_p1, %s2915_s17, %s50_s22  }
   0xd   : > { %p2993_p5 = por %p58_p2, %p57_p0  ;;  %p2999_p6 = por %p4033_p4, %p63_p3 }
   0xe   : > { %p129_p7 = scmp.eq.s32.totalorder %s2975_s19, 1  ;;  %p135_p8 = scmp.eq.s32.totalorder %s2439_s20, 1 }
   0xf   : > { %s4039_s26 = scalar_select %p2999_p6, 1, 0 }
  0x10   : > { %p2440_p9 = scmp.ge.s32.totalorder %s2919_s18, 1  ;;  %p142_p10 = scmp.lt.s32.totalorder %s2919_s18, 3 }
  0x11   : > { %p3006_p11 = por %p129_p7, %p57_p0  ;;  %p3010_p12 = por %p135_p8, %p63_p3 }
  0x12   : > { %p3014_p13 = pnand %p2440_p9, %p142_p10  ;;  %s2921_s30 = smov [#allocation7]  }
  0x13   : > { %s4040_s27 = scalar_select %p3006_p11, 1, 0 }
  0x14   : > { %s4041_s28 = scalar_select %p3010_p12, 1, 0 }
  0x15   : > { %s4042_s29 = scalar_select %p3014_p13, 1, 0 }
  0x16   : > { %p2649_p2 = pneg %p3014_p13  ;;  %s166_s5 = sshll.u32 %s2921_s30, 4  ;;  %s167_s5 = int_to_ptr.vmem [resolvable:$true] %s166_s5 }
  0x17   : > { %p2670_p4 = scmp.lt.s32.totalorder %s2919_s18, 2  ;;  %p4043_p0 = scmp.eq.s32.totalorder %s2975_s19, 0 }
  0x18   : > { %s2922_s8 = smov [#allocation2]   ;;  %s2748_s10 = scalar_lea.vmem %s167_s5, 160 }
  0x19   : > { %p3024_p7 = pnand %p2649_p2, %p4043_p0  ;;  %p3030_p3 = pnand %p2670_p4, %p2993_p5 }
  0x1a   : > { %s155_s9 = sshll.u32 %s2922_s8, 4  ;;  %p2749_p9 = scmp.ne.s32.totalorder %s167_s5, %s2748_s10  ;;  %s156_s9 = int_to_ptr.vmem [resolvable:$true] %s155_s9 }
  0x1b   : > { %s4045_s7 = scalar_select %p3030_p3, 1, 0 }
  0x1c   : > { %p2739_p8 = pneg %p3024_p7  ;;  %p2756_p0 = scmp.lt.s32.totalorder %s167_s5, %s167_s5 }
  0x1d   : > { %p2757_p1 = scmp.lt.s32.totalorder %s2748_s10, %s2748_s10 }
  0x1e   : > { %p2751_p10 = pnand %p2749_p9, %p2739_p8 }
  0x1f   : > { %p2758_p12 = por %p2757_p1, %p2756_p0 }
  0x20   : > { %p2752_p2 = pneg %p2751_p10 }
  0x22   : > { %p2759_p11 = pnand %p2758_p12, %p2752_p2 }
  0x24   : > { %2762 = shalt.err (!%p2759_p11)
}
  0x25   : > { %2655 = dma.hbm_to_vmem [thread:$0]  (!%p3024_p7), %s4030_s2, 160, %s167_s5, [#allocation6]  }
  0x26   : > { %s2774_s13 = scalar_lea.vmem %s156_s9, 1280  ;;  %p2782_p9 = scmp.lt.s32.totalorder %s156_s9, %s156_s9 }
  0x27   : > { %p2775_p4 = scmp.ne.s32.totalorder %s156_s9, %s2774_s13  ;;  %p2783_p10 = scmp.lt.s32.totalorder %s2774_s13, %s2774_s13 }
  0x29   : > { %p2777_p5 = pnand %p2775_p4, %p2739_p8  ;;  %p2784_p13 = por %p2783_p10, %p2782_p9 }
  0x2b   : > { %p2778_p6 = pneg %p2777_p5 }
  0x2d   : > { %p2785_p3 = pnand %p2784_p13, %p2778_p6 }
  0x2f   : > { %2788 = shalt.err (!%p2785_p3)
}
  0x30   : > { %2652 = dma.hbm_to_vmem [thread:$0]  (!%p3024_p7), %s4028_s0, 1280, %s156_s9, [#allocation3]  }
  0x31   : > { %s2923_s22 = smov [#allocation8]   ;;  %s188_s25 = sand.u32 1, %s2919_s18  }
  0x32   : > { %s177_s23 = sshll.u32 %s2923_s22, 4  ;;  %s178_s23 = int_to_ptr.vmem [resolvable:$true] %s177_s23 }
  0x33   : > { %s2800_s30 = scalar_lea.vmem %s178_s23, 160  ;;  %p2808_p6 = scmp.lt.s32.totalorder %s178_s23, %s178_s23 }
  0x34   : > { %p2801_p11 = scmp.ne.s32.totalorder %s178_s23, %s2800_s30  ;;  %p2809_p13 = scmp.lt.s32.totalorder %s2800_s30, %s2800_s30 }
  0x36   : > { %p2803_p12 = pnand %p2801_p11, %p2739_p8  ;;  %p2810_p3 = por %p2809_p13, %p2808_p6 }
  0x38   : > { %p2804_p1 = pneg %p2803_p12 }
  0x3a   : > { %p2811_p2 = pnand %p2810_p3, %p2804_p1 }
  0x3c   : > { %2814 = shalt.err (!%p2811_p2)
}
  0x3d   : > { %2658 = dma.hbm_to_vmem [thread:$0]  (!%p3024_p7), %s4031_s3, 160, %s178_s23, [#allocation9]  }
  0x3e   : > { %s190_s9 = sand.u32 1, %s2915_s17   ;;  %s2453_s10 = smul.u32 640, %s2919_s18 }
  0x3f   : > { %s2630_s11 = smul.u32 6400, %s190_s9  ;;  %s3070_s22 = scalar_lea.sflag [#allocation6], %s188_s25 }
  0x40   : > { %s3066_s14 = scalar_lea.hbm %s4029_s1, %s2453_s10  ;;  %p4046_p7 = scmp.ne.s32.totalorder %s4045_s7, 0 }
  0x41   : > { %s192_s20 = scalar_lea.vmem [#allocation5], %s2630_s11  ;;  %s2815_s30 = scalar_lea.hbm %s3066_s14, 102400 }
  0x42   : > { %s199_s6 = sshll.u32 %s192_s20, 4  ;;  %p2816_p8 = scmp.ne.s32.totalorder %s3066_s14, %s2815_s30  ;;  %s3068_s6 = int_to_ptr.vmem [resolvable:$true] %s199_s6 }
  0x43   : > { %p2817_p0 = pneg %p4046_p7  ;;  %s2820_s8 = scalar_lea.hbm %s4029_s1, 204800 }
  0x44   : > { %p2821_p9 = scmp.lt.s32.totalorder %s3066_s14, %s4029_s1  ;;  %p2822_p10 = scmp.lt.s32.totalorder %s2820_s8, %s2815_s30 }
  0x45   : > { %p2818_p4 = pnand %p2817_p0, %p2816_p8 }
  0x46   : > { %p2823_p11 = por %p2822_p10, %p2821_p9 }
  0x47   : > { %p2819_p5 = pneg %p2818_p4 }
  0x49   : > { %p2824_p12 = pnand %p2823_p11, %p2819_p5 }
  0x4b   : > { %2827 = shalt.err (!%p2824_p12)
}
  0x4c   : > { %s2828_s25 = scalar_lea.vmem %s3068_s6, 102400  ;;  %s2924_s11 = smov [#allocation5]  }
  0x4d   : > { %p2829_p1 = scmp.ne.s32.totalorder %s3068_s6, %s2828_s25  ;;  %s2833_s12 = sshll.u32 %s2924_s11, 4  ;;  %s2834_s12 = int_to_ptr.vmem [resolvable:$false] %s2833_s12 }
  0x4e   : > { %s2835_s13 = scalar_lea.vmem %s2834_s12, 204800  ;;  %p2836_p3 = scmp.lt.s32.totalorder %s3068_s6, %s2834_s12 }
  0x4f   : > { %p2831_p6 = pnand %p2829_p1, %p2817_p0  ;;  %p2837_p2 = scmp.lt.s32.totalorder %s2835_s13, %s2828_s25 }
  0x51   : > { %p2832_p13 = pneg %p2831_p6  ;;  %p2838_p8 = por %p2837_p2, %p2836_p3 }
  0x53   : > { %p2839_p4 = pnand %p2838_p8, %p2832_p13 }
  0x55   : > { %2842 = shalt.err (!%p2839_p4)
}
  0x56   : > { %s2925_s20 = smov 1280   ;;  %s2926_s30 = smov 640  }
  0x57   : > { %s2927_s23 = smov 40   ;;  %p4047_p0 = scmp.ne.s32.totalorder %s4042_s29, 0 }
  0x58   : > { %2662 = dma.hbm_to_vmem [thread:$0]  (!%p4046_p7), %s3066_s14, 102400, %s3068_s6, %s3070_s22, %s2925_s20, %s2926_s30, %s2927_s23  }
  0x59   : > { %211 = sbr.rel (%p4047_p0) target bundleno = 806 (0x326), region = 36  ;;  %p4048_p5 = scmp.eq.s32.totalorder (!%p4047_p0), %s2975_s19, 0 }
  0x5e   : > { %2886 = dma.done.wait (%p4048_p5), [#allocation3], 1280   ;;  %p4049_p9 = pmov %p4048_p5 }
  0x5f   : > { %s217_s5 = sand.u32 1, %s2975_s19   ;;  %s3099_s8 = sand.u32 1, %s2911_s16  }
  0x60   : > { %2888 = vsyncadd (%p4049_p9), [#allocation3], 4294966016  ;;  %s2631_s9 = smul.u32 6400, %s3099_s8  ;;  %s218_s10 = scalar_lea.sflag [#allocation6], %s217_s5 }
  0x61   : > { %p4050_p7 = scmp.ne.s32.totalorder %s4039_s26, 0 }
  0x62   : > { %s3102_s7 = scalar_lea.vmem [#allocation5], %s2631_s9 }
  0x63   : > { %2890 = dma.done.wait (%p4050_p7), %s218_s10, 102400  }
  0x64   : > { %2892 = vsyncadd (%p4050_p7), %s218_s10, 4294864896  ;;  %p4051_p10 = pmov %p4048_p5 }
  0x65   : > { %p4052_p11 = pmov %p4048_p5 }
  0x66   : > { %2894 = dma.done.wait (%p4051_p10), [#allocation6], 160  }
  0x67   : > { %2896 = vsyncadd (%p4052_p11), [#allocation6], 4294967136  ;;  %p4053_p12 = pmov %p4048_p5 }
  0x68   : > { %p4054_p1 = pmov %p4048_p5 }
  0x69   : > { %2898 = dma.done.wait (%p4053_p12), [#allocation9], 160  }
  0x6a   : > { %2900 = vsyncadd (%p4054_p1), [#allocation9], 4294967136  ;;  %v343_v0 = vld [vmem:[%s3102_s7 + $0x260] sm:$0xff]  ;;  %v342_v2 = vld [vmem:[%s3102_s7 + $0x258] sm:$0xff]  ;;  %s256_s26 = smul.u32 640, %s2975_s19  ;;  %s2322_s30 = scalar_lea.sflag [#allocation4], %s3099_s8 }
  0x6b   : > { %v503_v1 = vld [vmem:[%s3102_s7 + $0x760] sm:$0xff]  ;;  %1067 = vmatprep.subr.mxu0 %v343_v0  ;;  %v502_v3 = vld [vmem:[%s3102_s7 + $0x758] sm:$0xff]  ;;  %v337_v6 = vld [vmem:[%s3102_s7 + $0x230] sm:$0xff]  ;;  %s2632_s22 = smul.u32 40, %s3099_s8  ;;  %p4055_p13 = scmp.ne.s32.totalorder %s4040_s27, 0 }
  0x6c   : > { %1138 = vmatprep.subr.mxu1 %v503_v1  ;;  %v338_v4 = vld [vmem:[%s3102_s7 + $0x238] sm:$0xff]  ;;  %1068 = vmatpush1.msra.mxu0 %v342_v2  ;;  %v497_v7 = vld [vmem:[%s3102_s7 + $0x730] sm:$0xff]  ;;  %v332_v10 = vld [vmem:[%s3102_s7 + $0x208] sm:$0xff]  ;;  %s2218_s29 = sshra.s32 %s256_s26, 7  ;;  %s2334_s20 = scalar_lea.hbm %s4032_s4, %s256_s26 }
  0x6d   : > { %v498_v5 = vld [vmem:[%s3102_s7 + $0x738] sm:$0xff]  ;;  %1139 = vmatpush1.msra.mxu1 %v502_v3  ;;  %v333_v8 = vld [vmem:[%s3102_s7 + $0x210] sm:$0xff]  ;;  %1069 = vmatprep.subr.mxu0 %v338_v4  ;;  %v492_v11 = vld [vmem:[%s3102_s7 + $0x708] sm:$0xff]  ;;  %s2220_s14 = scalar_lea.vmem [#allocation7], %s2218_s29  ;;  %s2222_s6 = scalar_lea.vmem [#allocation8], %s2218_s29 }
  0x6e   : > { %1140 = vmatprep.subr.mxu1 %v498_v5  ;;  %v493_v9 = vld [vmem:[%s3102_s7 + $0x710] sm:$0xff]  ;;  %1070 = vmatpush1.msra.mxu0 %v337_v6  ;;  %v328_v12 = vld [vmem:[%s3102_s7 + $0x1e8] sm:$0xff]  ;;  %v327_v14 = vld [vmem:[%s3102_s7 + $0x1e0] sm:$0xff]  ;;  %s3972_s25 = scalar_lea.vmem [#allocation10], %s2632_s22  ;;  %s2928_s5 = smov [#allocation10]  }
  0x6f   : > { %1141 = vmatpush1.msra.mxu1 %v497_v7  ;;  %v488_v13 = vld [vmem:[%s3102_s7 + $0x6e8] sm:$0xff]  ;;  %1071 = vmatprep.subr.mxu0 %v333_v8  ;;  %v487_v15 = vld [vmem:[%s3102_s7 + $0x6e0] sm:$0xff]  ;;  %v322_v18 = vld [vmem:[%s3102_s7 + $0x1b8] sm:$0xff]  ;;  %s2336_s11 = sshll.u32 %s3972_s25, 4  ;;  %s2847_s9 = sshll.u32 %s2928_s5, 4  ;;  %s2337_s11 = int_to_ptr.vmem [resolvable:$true] %s2336_s11  ;;  %s2848_s9 = int_to_ptr.vmem [resolvable:$false] %s2847_s9 }
  0x70   : > { %1142 = vmatprep.subr.mxu1 %v493_v9  ;;  %1072 = vmatpush1.msra.mxu0 %v332_v10  ;;  %v323_v16 = vld [vmem:[%s3102_s7 + $0x1c0] sm:$0xff]  ;;  %v482_v19 = vld [vmem:[%s3102_s7 + $0x6b8] sm:$0xff]  ;;  %v317_v22 = vld [vmem:[%s3102_s7 + $0x190] sm:$0xff]  ;;  %s2843_s23 = scalar_lea.vmem %s2337_s11, 640  ;;  %s2849_s10 = scalar_lea.vmem %s2848_s9, 1280 }
  0x71   : > { %1143 = vmatpush1.msra.mxu1 %v492_v11  ;;  %v483_v17 = vld [vmem:[%s3102_s7 + $0x6c0] sm:$0xff]  ;;  %1073 = vmatprep.subr.mxu0 %v328_v12  ;;  %v318_v20 = vld [vmem:[%s3102_s7 + $0x198] sm:$0xff]  ;;  %v477_v23 = vld [vmem:[%s3102_s7 + $0x690] sm:$0xff]  ;;  %p2844_p6 = scmp.ne.s32.totalorder %s2337_s11, %s2843_s23  ;;  %p2850_p8 = scmp.lt.s32.totalorder %s2337_s11, %s2848_s9 }
  0x72   : > { %1144 = vmatprep.subr.mxu1 %v488_v13  ;;  %1074 = vmatpush1.msra.mxu0 %v327_v14  ;;  %v478_v21 = vld [vmem:[%s3102_s7 + $0x698] sm:$0xff]  ;;  %v313_v24 = vld [vmem:[%s3102_s7 + $0x170] sm:$0xff]  ;;  %v312_v26 = vld [vmem:[%s3102_s7 + $0x168] sm:$0xff]  ;;  %p2851_p4 = scmp.lt.s32.totalorder %s2849_s10, %s2843_s23 }
  0x73   : > { %1145 = vmatpush1.msra.mxu1 %v487_v15  ;;  %1075 = vmatprep.subr.mxu0 %v323_v16  ;;  %v473_v25 = vld [vmem:[%s3102_s7 + $0x670] sm:$0xff]  ;;  %v472_v27 = vld [vmem:[%s3102_s7 + $0x668] sm:$0xff]  ;;  %v307_v30 = vld [vmem:[%s3102_s7 + $0x140] sm:$0xff]  ;;  %p2845_p3 = pnand %p2844_p6, %p4055_p13 }
  0x74   : > { %1146 = vmatprep.subr.mxu1 %v483_v17  ;;  %1076 = vmatpush1.msra.mxu0 %v322_v18  ;;  %v308_v28 = vld [vmem:[%s3102_s7 + $0x148] sm:$0xff]  ;;  %v467_v31 = vld [vmem:[%s3102_s7 + $0x640] sm:$0xff]  ;;  %v302_v34 = vld [vmem:[%s3102_s7 + $0x118] sm:$0xff]  ;;  %p2852_p0 = por %p2851_p4, %p2850_p8 }
  0x75   : > { %1147 = vmatpush1.msra.mxu1 %v482_v19  ;;  %1077 = vmatprep.subr.mxu0 %v318_v20  ;;  %v468_v29 = vld [vmem:[%s3102_s7 + $0x648] sm:$0xff]  ;;  %v303_v32 = vld [vmem:[%s3102_s7 + $0x120] sm:$0xff]  ;;  %v462_v35 = vld [vmem:[%s3102_s7 + $0x618] sm:$0xff]  ;;  %p2846_p2 = pneg %p2845_p3 }
  0x76   : > { %1148 = vmatprep.subr.mxu1 %v478_v21  ;;  %1078 = vmatpush1.msra.mxu0 %v317_v22  ;;  %v463_v33 = vld [vmem:[%s3102_s7 + $0x620] sm:$0xff]  ;;  %v298_v36 = vld [vmem:[%s3102_s7 + $0xf8] sm:$0xff]  ;;  %v297_v38 = vld [vmem:[%s3102_s7 + $0xf0] sm:$0xff] }
  0x77   : > { %1149 = vmatpush1.msra.mxu1 %v477_v23  ;;  %1079 = vmatprep.subr.mxu0 %v313_v24  ;;  %v458_v37 = vld [vmem:[%s3102_s7 + $0x5f8] sm:$0xff]  ;;  %v457_v39 = vld [vmem:[%s3102_s7 + $0x5f0] sm:$0xff]  ;;  %v292_v42 = vld [vmem:[%s3102_s7 + $0xc8] sm:$0xff]  ;;  %p2853_p5 = pnand %p2852_p0, %p2846_p2 }
  0x78   : > { %1150 = vmatprep.subr.mxu1 %v473_v25  ;;  %1080 = vmatpush1.msra.mxu0 %v312_v26  ;;  %v293_v40 = vld [vmem:[%s3102_s7 + $0xd0] sm:$0xff]  ;;  %v452_v43 = vld [vmem:[%s3102_s7 + $0x5c8] sm:$0xff]  ;;  %v287_v46 = vld [vmem:[%s3102_s7 + $0xa0] sm:$0xff] }
  0x79   : > { %1151 = vmatpush1.msra.mxu1 %v472_v27  ;;  %1081 = vmatprep.subr.mxu0 %v308_v28  ;;  %v453_v41 = vld [vmem:[%s3102_s7 + $0x5d0] sm:$0xff]  ;;  %v288_v44 = vld [vmem:[%s3102_s7 + $0xa8] sm:$0xff]  ;;  %v447_v47 = vld [vmem:[%s3102_s7 + $0x5a0] sm:$0xff] }
  0x7a   : > { %1152 = vmatprep.subr.mxu1 %v468_v29  ;;  %1082 = vmatpush1.msra.mxu0 %v307_v30  ;;  %v448_v45 = vld [vmem:[%s3102_s7 + $0x5a8] sm:$0xff]  ;;  %v283_v48 = vld [vmem:[%s3102_s7 + $0x80] sm:$0xff]  ;;  %v282_v50 = vld [vmem:[%s3102_s7 + $0x78] sm:$0xff] }
  0x7b   : > { %1153 = vmatpush1.msra.mxu1 %v467_v31  ;;  %1083 = vmatprep.subr.mxu0 %v303_v32  ;;  %v443_v49 = vld [vmem:[%s3102_s7 + $0x580] sm:$0xff]  ;;  %v442_v51 = vld [vmem:[%s3102_s7 + $0x578] sm:$0xff]  ;;  %v277_v54 = vld [vmem:[%s3102_s7 + $0x50] sm:$0xff] }
  0x7c   : > { %1154 = vmatprep.subr.mxu1 %v463_v33  ;;  %1084 = vmatpush1.msra.mxu0 %v302_v34  ;;  %v278_v52 = vld [vmem:[%s3102_s7 + $0x58] sm:$0xff]  ;;  %v437_v55 = vld [vmem:[%s3102_s7 + $0x550] sm:$0xff]  ;;  %v272_v58 = vld [vmem:[%s3102_s7 + $0x28] sm:$0xff] }
  0x7d   : > { %1155 = vmatpush1.msra.mxu1 %v462_v35  ;;  %1085 = vmatprep.subr.mxu0 %v298_v36  ;;  %v438_v53 = vld [vmem:[%s3102_s7 + $0x558] sm:$0xff]  ;;  %v273_v56 = vld [vmem:[%s3102_s7 + $0x30] sm:$0xff]  ;;  %v432_v59 = vld [vmem:[%s3102_s7 + $0x528] sm:$0xff] }
  0x7e   : > { %1156 = vmatprep.subr.mxu1 %v458_v37  ;;  %1086 = vmatpush1.msra.mxu0 %v297_v38  ;;  %v433_v57 = vld [vmem:[%s3102_s7 + $0x530] sm:$0xff]  ;;  %v268_v60 = vld [vmem:[%s3102_s7 + $0x8] sm:$0xff]  ;;  %v267_v62 = vld [vmem:[%s3102_s7] sm:$0xff] }
  0x7f   : > { %1157 = vmatpush1.msra.mxu1 %v457_v39  ;;  %1087 = vmatprep.subr.mxu0 %v293_v40  ;;  %v428_v61 = vld [vmem:[%s3102_s7 + $0x508] sm:$0xff]  ;;  %v427_v63 = vld [vmem:[%s3102_s7 + $0x500] sm:$0xff]  ;;  %v422_v2 = vld [vmem:[%s3102_s7 + $0x4d8] sm:$0xff] }
  0x80   : > { %1158 = vmatprep.subr.mxu1 %v453_v41  ;;  %1088 = vmatpush1.msra.mxu0 %v292_v42  ;;  %v423_v0 = vld [vmem:[%s3102_s7 + $0x4e0] sm:$0xff]  ;;  %v582_v3 = vld [vmem:[%s3102_s7 + $0x9d8] sm:$0xff]  ;;  %v417_v6 = vld [vmem:[%s3102_s7 + $0x4b0] sm:$0xff] }
  0x81   : > { %1159 = vmatpush1.msra.mxu1 %v452_v43  ;;  %1089 = vmatprep.subr.mxu0 %v288_v44  ;;  %v583_v1 = vld [vmem:[%s3102_s7 + $0x9e0] sm:$0xff]  ;;  %v418_v4 = vld [vmem:[%s3102_s7 + $0x4b8] sm:$0xff]  ;;  %v577_v7 = vld [vmem:[%s3102_s7 + $0x9b0] sm:$0xff] }
  0x82   : > { %1160 = vmatprep.subr.mxu1 %v448_v45  ;;  %1090 = vmatpush1.msra.mxu0 %v287_v46  ;;  %v578_v5 = vld [vmem:[%s3102_s7 + $0x9b8] sm:$0xff]  ;;  %v413_v8 = vld [vmem:[%s3102_s7 + $0x490] sm:$0xff]  ;;  %v412_v10 = vld [vmem:[%s3102_s7 + $0x488] sm:$0xff] }
  0x83   : > { %1161 = vmatpush1.msra.mxu1 %v447_v47  ;;  %1091 = vmatprep.subr.mxu0 %v283_v48  ;;  %v573_v9 = vld [vmem:[%s3102_s7 + $0x990] sm:$0xff]  ;;  %v572_v11 = vld [vmem:[%s3102_s7 + $0x988] sm:$0xff]  ;;  %v407_v14 = vld [vmem:[%s3102_s7 + $0x460] sm:$0xff] }
  0x84   : > { %1162 = vmatprep.subr.mxu1 %v443_v49  ;;  %1092 = vmatpush1.msra.mxu0 %v282_v50  ;;  %v408_v12 = vld [vmem:[%s3102_s7 + $0x468] sm:$0xff]  ;;  %v567_v15 = vld [vmem:[%s3102_s7 + $0x960] sm:$0xff]  ;;  %v402_v18 = vld [vmem:[%s3102_s7 + $0x438] sm:$0xff] }
  0x85   : > { %1163 = vmatpush1.msra.mxu1 %v442_v51  ;;  %1093 = vmatprep.subr.mxu0 %v278_v52  ;;  %v568_v13 = vld [vmem:[%s3102_s7 + $0x968] sm:$0xff]  ;;  %v403_v16 = vld [vmem:[%s3102_s7 + $0x440] sm:$0xff]  ;;  %v562_v19 = vld [vmem:[%s3102_s7 + $0x938] sm:$0xff] }
  0x86   : > { %1164 = vmatprep.subr.mxu1 %v438_v53  ;;  %1094 = vmatpush1.msra.mxu0 %v277_v54  ;;  %v563_v17 = vld [vmem:[%s3102_s7 + $0x940] sm:$0xff]  ;;  %v398_v20 = vld [vmem:[%s3102_s7 + $0x418] sm:$0xff]  ;;  %v397_v22 = vld [vmem:[%s3102_s7 + $0x410] sm:$0xff] }
  0x87   : > { %1165 = vmatpush1.msra.mxu1 %v437_v55  ;;  %1095 = vmatprep.subr.mxu0 %v273_v56  ;;  %v558_v21 = vld [vmem:[%s3102_s7 + $0x918] sm:$0xff]  ;;  %v557_v23 = vld [vmem:[%s3102_s7 + $0x910] sm:$0xff]  ;;  %v392_v26 = vld [vmem:[%s3102_s7 + $0x3e8] sm:$0xff] }
  0x88   : > { %1166 = vmatprep.subr.mxu1 %v433_v57  ;;  %1096 = vmatpush1.msra.mxu0 %v272_v58  ;;  %v393_v24 = vld [vmem:[%s3102_s7 + $0x3f0] sm:$0xff]  ;;  %v552_v27 = vld [vmem:[%s3102_s7 + $0x8e8] sm:$0xff]  ;;  %v387_v30 = vld [vmem:[%s3102_s7 + $0x3c0] sm:$0xff] }
  0x89   : > { %1167 = vmatpush1.msra.mxu1 %v432_v59  ;;  %1097 = vmatprep.subr.mxu0 %v268_v60  ;;  %v553_v25 = vld [vmem:[%s3102_s7 + $0x8f0] sm:$0xff]  ;;  %v388_v28 = vld [vmem:[%s3102_s7 + $0x3c8] sm:$0xff]  ;;  %v547_v31 = vld [vmem:[%s3102_s7 + $0x8c0] sm:$0xff] }
  0x8a   : > { %1168 = vmatprep.subr.mxu1 %v428_v61  ;;  %1098 = vmatpush1.msra.mxu0 %v267_v62  ;;  %v548_v29 = vld [vmem:[%s3102_s7 + $0x8c8] sm:$0xff]  ;;  %v383_v32 = vld [vmem:[%s3102_s7 + $0x3a0] sm:$0xff]  ;;  %v382_v34 = vld [vmem:[%s3102_s7 + $0x398] sm:$0xff] }
  0x8b   : > { %1169 = vmatpush1.msra.mxu1 %v427_v63  ;;  %1099 = vmatprep.subr.mxu0 %v423_v0  ;;  %v543_v33 = vld [vmem:[%s3102_s7 + $0x8a0] sm:$0xff]  ;;  %v542_v35 = vld [vmem:[%s3102_s7 + $0x898] sm:$0xff]  ;;  %v377_v38 = vld [vmem:[%s3102_s7 + $0x370] sm:$0xff] }
  0x8c   : > { %1170 = vmatprep.subr.mxu1 %v583_v1  ;;  %1100 = vmatpush2.msra.mxu0 %v422_v2  ;;  %v378_v36 = vld [vmem:[%s3102_s7 + $0x378] sm:$0xff]  ;;  %v537_v39 = vld [vmem:[%s3102_s7 + $0x870] sm:$0xff]  ;;  %v372_v42 = vld [vmem:[%s3102_s7 + $0x348] sm:$0xff] }
  0x8d   : > { %1171 = vmatpush2.msra.mxu1 %v582_v3  ;;  %1101 = vmatprep.subr.mxu0 %v418_v4  ;;  %v538_v37 = vld [vmem:[%s3102_s7 + $0x878] sm:$0xff]  ;;  %v373_v40 = vld [vmem:[%s3102_s7 + $0x350] sm:$0xff]  ;;  %v532_v43 = vld [vmem:[%s3102_s7 + $0x848] sm:$0xff] }
  0x8e   : > { %1172 = vmatprep.subr.mxu1 %v578_v5  ;;  %1102 = vmatpush2.msra.mxu0 %v417_v6  ;;  %v533_v41 = vld [vmem:[%s3102_s7 + $0x850] sm:$0xff]  ;;  %v368_v44 = vld [vmem:[%s3102_s7 + $0x328] sm:$0xff]  ;;  %v367_v46 = vld [vmem:[%s3102_s7 + $0x320] sm:$0xff] }
  0x8f   : > { %1173 = vmatpush2.msra.mxu1 %v577_v7  ;;  %1103 = vmatprep.subr.mxu0 %v413_v8  ;;  %v528_v45 = vld [vmem:[%s3102_s7 + $0x828] sm:$0xff]  ;;  %v527_v47 = vld [vmem:[%s3102_s7 + $0x820] sm:$0xff]  ;;  %v362_v50 = vld [vmem:[%s3102_s7 + $0x2f8] sm:$0xff] }
  0x90   : > { %1174 = vmatprep.subr.mxu1 %v573_v9  ;;  %1104 = vmatpush2.msra.mxu0 %v412_v10  ;;  %v363_v48 = vld [vmem:[%s3102_s7 + $0x300] sm:$0xff]  ;;  %v522_v51 = vld [vmem:[%s3102_s7 + $0x7f8] sm:$0xff]  ;;  %v357_v54 = vld [vmem:[%s3102_s7 + $0x2d0] sm:$0xff] }
  0x91   : > { %1175 = vmatpush2.msra.mxu1 %v572_v11  ;;  %1105 = vmatprep.subr.mxu0 %v408_v12  ;;  %v523_v49 = vld [vmem:[%s3102_s7 + $0x800] sm:$0xff]  ;;  %v358_v52 = vld [vmem:[%s3102_s7 + $0x2d8] sm:$0xff]  ;;  %v517_v55 = vld [vmem:[%s3102_s7 + $0x7d0] sm:$0xff] }
  0x92   : > { %1176 = vmatprep.subr.mxu1 %v568_v13  ;;  %1106 = vmatpush2.msra.mxu0 %v407_v14  ;;  %v518_v53 = vld [vmem:[%s3102_s7 + $0x7d8] sm:$0xff]  ;;  %v353_v56 = vld [vmem:[%s3102_s7 + $0x2b0] sm:$0xff]  ;;  %v352_v58 = vld [vmem:[%s3102_s7 + $0x2a8] sm:$0xff] }
  0x93   : > { %1177 = vmatpush2.msra.mxu1 %v567_v15  ;;  %1107 = vmatprep.subr.mxu0 %v403_v16  ;;  %v513_v57 = vld [vmem:[%s3102_s7 + $0x7b0] sm:$0xff]  ;;  %v512_v59 = vld [vmem:[%s3102_s7 + $0x7a8] sm:$0xff]  ;;  %v347_v62 = vld [vmem:[%s3102_s7 + $0x280] sm:$0xff] }
  0x94   : > { %1178 = vmatprep.subr.mxu1 %v563_v17  ;;  %1108 = vmatpush2.msra.mxu0 %v402_v18  ;;  %v348_v60 = vld [vmem:[%s3102_s7 + $0x288] sm:$0xff]  ;;  %v258_v63 = vld [vmem:[#allocation2 + $0x8] sm:$0xff]  ;;  %v507_v0 = vld [vmem:[%s3102_s7 + $0x780] sm:$0xff] }
  0x95   : > { %1179 = vmatpush2.msra.mxu1 %v562_v19  ;;  %1109 = vmatprep.subr.mxu0 %v398_v20  ;;  %v508_v61 = vld [vmem:[%s3102_s7 + $0x788] sm:$0xff]  ;;  %v257_v2 = vld [vmem:[#allocation2] sm:$0xff]  ;;  %v259_v3 = vld [vmem:[#allocation2 + $0x10] sm:$0xff] }
  0x96   : > { %1180 = vmatprep.subr.mxu1 %v558_v21  ;;  %1110 = vmatpush2.msra.mxu0 %v397_v22  ;;  %v260_v1 = vld [vmem:[#allocation2 + $0x18] sm:$0xff]  ;;  %v663_v4 = vld [vmem:[%s3102_s7 + $0xc60] sm:$0xff]  ;;  %v662_v6 = vld [vmem:[%s3102_s7 + $0xc58] sm:$0xff] }
  0x97   : > { %1181 = vmatpush2.msra.mxu1 %v557_v23  ;;  %1111 = vmatprep.subr.mxu0 %v393_v24  ;;  %v823_v5 = vld [vmem:[%s3102_s7 + $0x1160] sm:$0xff]  ;;  %v822_v7 = vld [vmem:[%s3102_s7 + $0x1158] sm:$0xff]  ;;  %v657_v10 = vld [vmem:[%s3102_s7 + $0xc30] sm:$0xff] }
  0x98   : > { %1182 = vmatprep.subr.mxu1 %v553_v25  ;;  %1112 = vmatpush2.msra.mxu0 %v392_v26  ;;  %v658_v8 = vld [vmem:[%s3102_s7 + $0xc38] sm:$0xff]  ;;  %v817_v11 = vld [vmem:[%s3102_s7 + $0x1130] sm:$0xff]  ;;  %v652_v14 = vld [vmem:[%s3102_s7 + $0xc08] sm:$0xff] }
  0x99   : > { %1183 = vmatpush2.msra.mxu1 %v552_v27  ;;  %1113 = vmatprep.subr.mxu0 %v388_v28  ;;  %v818_v9 = vld [vmem:[%s3102_s7 + $0x1138] sm:$0xff]  ;;  %v653_v12 = vld [vmem:[%s3102_s7 + $0xc10] sm:$0xff]  ;;  %v812_v15 = vld [vmem:[%s3102_s7 + $0x1108] sm:$0xff] }
  0x9a   : > { %1184 = vmatprep.subr.mxu1 %v548_v29  ;;  %1114 = vmatpush2.msra.mxu0 %v387_v30  ;;  %v813_v13 = vld [vmem:[%s3102_s7 + $0x1110] sm:$0xff]  ;;  %v648_v16 = vld [vmem:[%s3102_s7 + $0xbe8] sm:$0xff]  ;;  %v647_v18 = vld [vmem:[%s3102_s7 + $0xbe0] sm:$0xff] }
  0x9b   : > { %1185 = vmatpush2.msra.mxu1 %v547_v31  ;;  %1115 = vmatprep.subr.mxu0 %v383_v32  ;;  %v808_v17 = vld [vmem:[%s3102_s7 + $0x10e8] sm:$0xff]  ;;  %v807_v19 = vld [vmem:[%s3102_s7 + $0x10e0] sm:$0xff]  ;;  %v642_v22 = vld [vmem:[%s3102_s7 + $0xbb8] sm:$0xff] }
  0x9c   : > { %1186 = vmatprep.subr.mxu1 %v543_v33  ;;  %1116 = vmatpush2.msra.mxu0 %v382_v34  ;;  %v643_v20 = vld [vmem:[%s3102_s7 + $0xbc0] sm:$0xff]  ;;  %v802_v23 = vld [vmem:[%s3102_s7 + $0x10b8] sm:$0xff]  ;;  %v637_v26 = vld [vmem:[%s3102_s7 + $0xb90] sm:$0xff] }
  0x9d   : > { %1187 = vmatpush2.msra.mxu1 %v542_v35  ;;  %1117 = vmatprep.subr.mxu0 %v378_v36  ;;  %v803_v21 = vld [vmem:[%s3102_s7 + $0x10c0] sm:$0xff]  ;;  %v638_v24 = vld [vmem:[%s3102_s7 + $0xb98] sm:$0xff]  ;;  %v797_v27 = vld [vmem:[%s3102_s7 + $0x1090] sm:$0xff] }
  0x9e   : > { %1188 = vmatprep.subr.mxu1 %v538_v37  ;;  %1118 = vmatpush2.msra.mxu0 %v377_v38  ;;  %v798_v25 = vld [vmem:[%s3102_s7 + $0x1098] sm:$0xff]  ;;  %v633_v28 = vld [vmem:[%s3102_s7 + $0xb70] sm:$0xff]  ;;  %v632_v30 = vld [vmem:[%s3102_s7 + $0xb68] sm:$0xff] }
  0x9f   : > { %1189 = vmatpush2.msra.mxu1 %v537_v39  ;;  %1119 = vmatprep.subr.mxu0 %v373_v40  ;;  %v793_v29 = vld [vmem:[%s3102_s7 + $0x1070] sm:$0xff]  ;;  %v792_v31 = vld [vmem:[%s3102_s7 + $0x1068] sm:$0xff]  ;;  %v627_v34 = vld [vmem:[%s3102_s7 + $0xb40] sm:$0xff] }
  0xa0   : > { %1190 = vmatprep.subr.mxu1 %v533_v41  ;;  %1120 = vmatpush2.msra.mxu0 %v372_v42  ;;  %v628_v32 = vld [vmem:[%s3102_s7 + $0xb48] sm:$0xff]  ;;  %v787_v35 = vld [vmem:[%s3102_s7 + $0x1040] sm:$0xff]  ;;  %v622_v38 = vld [vmem:[%s3102_s7 + $0xb18] sm:$0xff] }
  0xa1   : > { %1191 = vmatpush2.msra.mxu1 %v532_v43  ;;  %1121 = vmatprep.subr.mxu0 %v368_v44  ;;  %v788_v33 = vld [vmem:[%s3102_s7 + $0x1048] sm:$0xff]  ;;  %v623_v36 = vld [vmem:[%s3102_s7 + $0xb20] sm:$0xff]  ;;  %v782_v39 = vld [vmem:[%s3102_s7 + $0x1018] sm:$0xff] }
  0xa2   : > { %1192 = vmatprep.subr.mxu1 %v528_v45  ;;  %1122 = vmatpush2.msra.mxu0 %v367_v46  ;;  %v783_v37 = vld [vmem:[%s3102_s7 + $0x1020] sm:$0xff]  ;;  %v618_v40 = vld [vmem:[%s3102_s7 + $0xaf8] sm:$0xff]  ;;  %v617_v42 = vld [vmem:[%s3102_s7 + $0xaf0] sm:$0xff] }
  0xa3   : > { %1193 = vmatpush2.msra.mxu1 %v527_v47  ;;  %1123 = vmatprep.subr.mxu0 %v363_v48  ;;  %v778_v41 = vld [vmem:[%s3102_s7 + $0xff8] sm:$0xff]  ;;  %v777_v43 = vld [vmem:[%s3102_s7 + $0xff0] sm:$0xff]  ;;  %v612_v46 = vld [vmem:[%s3102_s7 + $0xac8] sm:$0xff] }
  0xa4   : > { %1194 = vmatprep.subr.mxu1 %v523_v49  ;;  %1124 = vmatpush2.msra.mxu0 %v362_v50  ;;  %v613_v44 = vld [vmem:[%s3102_s7 + $0xad0] sm:$0xff]  ;;  %v772_v47 = vld [vmem:[%s3102_s7 + $0xfc8] sm:$0xff]  ;;  %v607_v50 = vld [vmem:[%s3102_s7 + $0xaa0] sm:$0xff] }
  0xa5   : > { %1195 = vmatpush2.msra.mxu1 %v522_v51  ;;  %1125 = vmatprep.subr.mxu0 %v358_v52  ;;  %v773_v45 = vld [vmem:[%s3102_s7 + $0xfd0] sm:$0xff]  ;;  %v608_v48 = vld [vmem:[%s3102_s7 + $0xaa8] sm:$0xff]  ;;  %v767_v51 = vld [vmem:[%s3102_s7 + $0xfa0] sm:$0xff] }
  0xa6   : > { %1196 = vmatprep.subr.mxu1 %v518_v53  ;;  %1126 = vmatpush2.msra.mxu0 %v357_v54  ;;  %v768_v49 = vld [vmem:[%s3102_s7 + $0xfa8] sm:$0xff]  ;;  %v603_v52 = vld [vmem:[%s3102_s7 + $0xa80] sm:$0xff]  ;;  %v602_v54 = vld [vmem:[%s3102_s7 + $0xa78] sm:$0xff] }
  0xa7   : > { %1197 = vmatpush2.msra.mxu1 %v517_v55  ;;  %1127 = vmatprep.subr.mxu0 %v353_v56  ;;  %v763_v53 = vld [vmem:[%s3102_s7 + $0xf80] sm:$0xff]  ;;  %v762_v55 = vld [vmem:[%s3102_s7 + $0xf78] sm:$0xff] }
  0xa8   : > { %1198 = vmatprep.subr.mxu1 %v513_v57  ;;  %1128 = vmatpush2.msra.mxu0 %v352_v58  ;;  %v598_v56 = vld [vmem:[%s3102_s7 + $0xa58] sm:$0xff]  ;;  %v597_v58 = vld [vmem:[%s3102_s7 + $0xa50] sm:$0xff] }
  0xa9   : > { %1199 = vmatpush2.msra.mxu1 %v512_v59  ;;  %1129 = vmatprep.subr.mxu0 %v348_v60  ;;  %v758_v57 = vld [vmem:[%s3102_s7 + $0xf58] sm:$0xff]  ;;  %v757_v59 = vld [vmem:[%s3102_s7 + $0xf50] sm:$0xff] }
  0xaa   : > { %1200 = vmatprep.subr.mxu1 %v508_v61  ;;  %1130 = vmatpush2.msra.mxu0 %v347_v62  ;;  %v593_v60 = vld [vmem:[%s3102_s7 + $0xa30] sm:$0xff]  ;;  %v592_v62 = vld [vmem:[%s3102_s7 + $0xa28] sm:$0xff] }
  0xab   : > { %1131 = vmatprep.mubr.f32.mxu0 %v258_v63  ;;  %1201 = vmatpush2.msra.mxu1 %v507_v0  ;;  %v753_v61 = vld [vmem:[%s3102_s7 + $0xf30] sm:$0xff]  ;;  %v752_v63 = vld [vmem:[%s3102_s7 + $0xf28] sm:$0xff] }
  0xac   : > { %1202 = vmatprep.mubr.f32.mxu1 %v260_v1  ;;  %1132 = vmatmul.mubr.f32.vlgmr.msra.gmra.mxu0 %v257_v2  ;;  %v588_v0 = vld [vmem:[%s3102_s7 + $0xa08] sm:$0xff]  ;;  %v587_v2 = vld [vmem:[%s3102_s7 + $0xa00] sm:$0xff] }
  0xad   : > { %1203 = vmatmul.mubr.f32.vlgmr.msra.gmra.mxu1 %v259_v3  ;;  %1209 = vmatprep.subr.mxu0 %v663_v4  ;;  %v748_v1 = vld [vmem:[%s3102_s7 + $0xf08] sm:$0xff]  ;;  %v747_v3 = vld [vmem:[%s3102_s7 + $0xf00] sm:$0xff] }
  0xae   : > { %1280 = vmatprep.subr.mxu1 %v823_v5  ;;  %1210 = vmatpush1.msra.mxu0 %v662_v6  ;;  %v743_v4 = vld [vmem:[%s3102_s7 + $0xee0] sm:$0xff]  ;;  %v742_v6 = vld [vmem:[%s3102_s7 + $0xed8] sm:$0xff] }
  0xaf   : > { %1281 = vmatpush1.msra.mxu1 %v822_v7  ;;  %1211 = vmatprep.subr.mxu0 %v658_v8  ;;  %v903_v5 = vld [vmem:[%s3102_s7 + $0x13e0] sm:$0xff]  ;;  %v902_v7 = vld [vmem:[%s3102_s7 + $0x13d8] sm:$0xff] }
  0xb0   : > { %1282 = vmatprep.subr.mxu1 %v818_v9  ;;  %1212 = vmatpush1.msra.mxu0 %v657_v10  ;;  %v738_v8 = vld [vmem:[%s3102_s7 + $0xeb8] sm:$0xff]  ;;  %v737_v10 = vld [vmem:[%s3102_s7 + $0xeb0] sm:$0xff] }
  0xb1   : > { %1283 = vmatpush1.msra.mxu1 %v817_v11  ;;  %1213 = vmatprep.subr.mxu0 %v653_v12  ;;  %v898_v9 = vld [vmem:[%s3102_s7 + $0x13b8] sm:$0xff]  ;;  %v897_v11 = vld [vmem:[%s3102_s7 + $0x13b0] sm:$0xff] }
  0xb2   : > { %1284 = vmatprep.subr.mxu1 %v813_v13  ;;  %1214 = vmatpush1.msra.mxu0 %v652_v14  ;;  %v733_v12 = vld [vmem:[%s3102_s7 + $0xe90] sm:$0xff]  ;;  %v732_v14 = vld [vmem:[%s3102_s7 + $0xe88] sm:$0xff] }
  0xb3   : > { %1285 = vmatpush1.msra.mxu1 %v812_v15  ;;  %1215 = vmatprep.subr.mxu0 %v648_v16  ;;  %v893_v13 = vld [vmem:[%s3102_s7 + $0x1390] sm:$0xff]  ;;  %v892_v15 = vld [vmem:[%s3102_s7 + $0x1388] sm:$0xff] }
  0xb4   : > { %1286 = vmatprep.subr.mxu1 %v808_v17  ;;  %1216 = vmatpush1.msra.mxu0 %v647_v18  ;;  %v728_v16 = vld [vmem:[%s3102_s7 + $0xe68] sm:$0xff]  ;;  %v727_v18 = vld [vmem:[%s3102_s7 + $0xe60] sm:$0xff] }
  0xb5   : > { %1287 = vmatpush1.msra.mxu1 %v807_v19  ;;  %1217 = vmatprep.subr.mxu0 %v643_v20  ;;  %v888_v17 = vld [vmem:[%s3102_s7 + $0x1368] sm:$0xff]  ;;  %v887_v19 = vld [vmem:[%s3102_s7 + $0x1360] sm:$0xff] }
  0xb6   : > { %1288 = vmatprep.subr.mxu1 %v803_v21  ;;  %1218 = vmatpush1.msra.mxu0 %v642_v22  ;;  %v723_v20 = vld [vmem:[%s3102_s7 + $0xe40] sm:$0xff]  ;;  %v722_v22 = vld [vmem:[%s3102_s7 + $0xe38] sm:$0xff] }
  0xb7   : > { %1289 = vmatpush1.msra.mxu1 %v802_v23  ;;  %1219 = vmatprep.subr.mxu0 %v638_v24  ;;  %v883_v21 = vld [vmem:[%s3102_s7 + $0x1340] sm:$0xff]  ;;  %v882_v23 = vld [vmem:[%s3102_s7 + $0x1338] sm:$0xff] }
  0xb8   : > { %1290 = vmatprep.subr.mxu1 %v798_v25  ;;  %1220 = vmatpush1.msra.mxu0 %v637_v26  ;;  %v718_v24 = vld [vmem:[%s3102_s7 + $0xe18] sm:$0xff]  ;;  %v717_v26 = vld [vmem:[%s3102_s7 + $0xe10] sm:$0xff] }
  0xb9   : > { %1291 = vmatpush1.msra.mxu1 %v797_v27  ;;  %1221 = vmatprep.subr.mxu0 %v633_v28  ;;  %v878_v25 = vld [vmem:[%s3102_s7 + $0x1318] sm:$0xff]  ;;  %v877_v27 = vld [vmem:[%s3102_s7 + $0x1310] sm:$0xff] }
  0xba   : > { %1292 = vmatprep.subr.mxu1 %v793_v29  ;;  %1222 = vmatpush1.msra.mxu0 %v632_v30  ;;  %v713_v28 = vld [vmem:[%s3102_s7 + $0xdf0] sm:$0xff]  ;;  %v712_v30 = vld [vmem:[%s3102_s7 + $0xde8] sm:$0xff] }
  0xbb   : > { %1293 = vmatpush1.msra.mxu1 %v792_v31  ;;  %1223 = vmatprep.subr.mxu0 %v628_v32  ;;  %v873_v29 = vld [vmem:[%s3102_s7 + $0x12f0] sm:$0xff]  ;;  %v872_v31 = vld [vmem:[%s3102_s7 + $0x12e8] sm:$0xff] }
  0xbc   : > { %1294 = vmatprep.subr.mxu1 %v788_v33  ;;  %1224 = vmatpush1.msra.mxu0 %v627_v34  ;;  %v708_v32 = vld [vmem:[%s3102_s7 + $0xdc8] sm:$0xff]  ;;  %v707_v34 = vld [vmem:[%s3102_s7 + $0xdc0] sm:$0xff] }
  0xbd   : > { %1295 = vmatpush1.msra.mxu1 %v787_v35  ;;  %1225 = vmatprep.subr.mxu0 %v623_v36  ;;  %v868_v33 = vld [vmem:[%s3102_s7 + $0x12c8] sm:$0xff]  ;;  %v867_v35 = vld [vmem:[%s3102_s7 + $0x12c0] sm:$0xff] }
  0xbe   : > { %1296 = vmatprep.subr.mxu1 %v783_v37  ;;  %1226 = vmatpush1.msra.mxu0 %v622_v38  ;;  %v703_v36 = vld [vmem:[%s3102_s7 + $0xda0] sm:$0xff]  ;;  %v702_v38 = vld [vmem:[%s3102_s7 + $0xd98] sm:$0xff] }
  0xbf   : > { %1297 = vmatpush1.msra.mxu1 %v782_v39  ;;  %1227 = vmatprep.subr.mxu0 %v618_v40  ;;  %v863_v37 = vld [vmem:[%s3102_s7 + $0x12a0] sm:$0xff]  ;;  %v862_v39 = vld [vmem:[%s3102_s7 + $0x1298] sm:$0xff] }
  0xc0   : > { %1298 = vmatprep.subr.mxu1 %v778_v41  ;;  %1228 = vmatpush1.msra.mxu0 %v617_v42  ;;  %v698_v40 = vld [vmem:[%s3102_s7 + $0xd78] sm:$0xff]  ;;  %v697_v42 = vld [vmem:[%s3102_s7 + $0xd70] sm:$0xff] }
  0xc1   : > { %1299 = vmatpush1.msra.mxu1 %v777_v43  ;;  %1229 = vmatprep.subr.mxu0 %v613_v44  ;;  %v858_v41 = vld [vmem:[%s3102_s7 + $0x1278] sm:$0xff]  ;;  %v857_v43 = vld [vmem:[%s3102_s7 + $0x1270] sm:$0xff] }
  0xc2   : > { %1300 = vmatprep.subr.mxu1 %v773_v45  ;;  %1230 = vmatpush1.msra.mxu0 %v612_v46  ;;  %v693_v44 = vld [vmem:[%s3102_s7 + $0xd50] sm:$0xff]  ;;  %v692_v46 = vld [vmem:[%s3102_s7 + $0xd48] sm:$0xff] }
  0xc3   : > { %1301 = vmatpush1.msra.mxu1 %v772_v47  ;;  %1231 = vmatprep.subr.mxu0 %v608_v48  ;;  %v853_v45 = vld [vmem:[%s3102_s7 + $0x1250] sm:$0xff]  ;;  %v852_v47 = vld [vmem:[%s3102_s7 + $0x1248] sm:$0xff] }
  0xc4   : > { %1302 = vmatprep.subr.mxu1 %v768_v49  ;;  %1232 = vmatpush1.msra.mxu0 %v607_v50  ;;  %v688_v48 = vld [vmem:[%s3102_s7 + $0xd28] sm:$0xff]  ;;  %v687_v50 = vld [vmem:[%s3102_s7 + $0xd20] sm:$0xff] }
  0xc5   : > { %1303 = vmatpush1.msra.mxu1 %v767_v51  ;;  %1233 = vmatprep.subr.mxu0 %v603_v52  ;;  %v848_v49 = vld [vmem:[%s3102_s7 + $0x1228] sm:$0xff]  ;;  %v847_v51 = vld [vmem:[%s3102_s7 + $0x1220] sm:$0xff] }
  0xc6   : > { %1304 = vmatprep.subr.mxu1 %v763_v53  ;;  %1234 = vmatpush1.msra.mxu0 %v602_v54  ;;  %v683_v52 = vld [vmem:[%s3102_s7 + $0xd00] sm:$0xff]  ;;  %v682_v54 = vld [vmem:[%s3102_s7 + $0xcf8] sm:$0xff] }
  0xc7   : > { %1305 = vmatpush1.msra.mxu1 %v762_v55  ;;  %1235 = vmatprep.subr.mxu0 %v598_v56  ;;  %v843_v53 = vld [vmem:[%s3102_s7 + $0x1200] sm:$0xff]  ;;  %v842_v55 = vld [vmem:[%s3102_s7 + $0x11f8] sm:$0xff] }
  0xc8   : > { %1306 = vmatprep.subr.mxu1 %v758_v57  ;;  %1236 = vmatpush1.msra.mxu0 %v597_v58  ;;  %v678_v56 = vld [vmem:[%s3102_s7 + $0xcd8] sm:$0xff]  ;;  %v677_v58 = vld [vmem:[%s3102_s7 + $0xcd0] sm:$0xff] }
  0xc9   : > { %1307 = vmatpush1.msra.mxu1 %v757_v59  ;;  %1237 = vmatprep.subr.mxu0 %v593_v60  ;;  %v838_v57 = vld [vmem:[%s3102_s7 + $0x11d8] sm:$0xff]  ;;  %v837_v59 = vld [vmem:[%s3102_s7 + $0x11d0] sm:$0xff] }
  0xca   : > { %1308 = vmatprep.subr.mxu1 %v753_v61  ;;  %1238 = vmatpush1.msra.mxu0 %v592_v62  ;;  %v673_v60 = vld [vmem:[%s3102_s7 + $0xcb0] sm:$0xff]  ;;  %v672_v62 = vld [vmem:[%s3102_s7 + $0xca8] sm:$0xff] }
  0xcb   : > { %1309 = vmatpush1.msra.mxu1 %v752_v63  ;;  %1239 = vmatprep.subr.mxu0 %v588_v0  ;;  %v833_v61 = vld [vmem:[%s3102_s7 + $0x11b0] sm:$0xff]  ;;  %v832_v63 = vld [vmem:[%s3102_s7 + $0x11a8] sm:$0xff] }
  0xcc   : > { %1310 = vmatprep.subr.mxu1 %v748_v1  ;;  %1240 = vmatpush1.msra.mxu0 %v587_v2  ;;  %v668_v0 = vld [vmem:[%s3102_s7 + $0xc88] sm:$0xff]  ;;  %v667_v2 = vld [vmem:[%s3102_s7 + $0xc80] sm:$0xff] }
  0xcd   : > { %1311 = vmatpush1.msra.mxu1 %v747_v3  ;;  %1241 = vmatprep.subr.mxu0 %v743_v4  ;;  %v828_v1 = vld [vmem:[%s3102_s7 + $0x1188] sm:$0xff]  ;;  %v262_v3 = vld [vmem:[#allocation2 + $0x28] sm:$0xff]  ;;  %v827_v4 = vld [vmem:[%s3102_s7 + $0x1180] sm:$0xff] }
  0xce   : > { %1312 = vmatprep.subr.mxu1 %v903_v5  ;;  %1242 = vmatpush2.msra.mxu0 %v742_v6  ;;  %v261_v5 = vld [vmem:[#allocation2 + $0x20] sm:$0xff]  ;;  %v264_v6 = vld [vmem:[#allocation2 + $0x38] sm:$0xff] }
  0xcf   : > { %1313 = vmatpush2.msra.mxu1 %v902_v7  ;;  %1243 = vmatprep.subr.mxu0 %v738_v8  ;;  %v983_v7 = vld [vmem:[%s3102_s7 + $0x1660] sm:$0xff]  ;;  %v345_v8 = vld [vmem:[%s3102_s7 + $0x270] sm:$0xff] }
  0xd0   : > { %1314 = vmatprep.subr.mxu1 %v898_v9  ;;  %1244 = vmatpush2.msra.mxu0 %v737_v10  ;;  %v263_v9 = vld [vmem:[#allocation2 + $0x30] sm:$0xff]  ;;  %v982_v10 = vld [vmem:[%s3102_s7 + $0x1658] sm:$0xff] }
  0xd1   : > { %1315 = vmatpush2.msra.mxu1 %v897_v11  ;;  %1245 = vmatprep.subr.mxu0 %v733_v12  ;;  %v344_v11 = vld [vmem:[%s3102_s7 + $0x268] sm:$0xff]  ;;  %v978_v12 = vld [vmem:[%s3102_s7 + $0x1638] sm:$0xff] }
  0xd2   : > { %1316 = vmatprep.subr.mxu1 %v893_v13  ;;  %1246 = vmatpush2.msra.mxu0 %v732_v14  ;;  %v340_v13 = vld [vmem:[%s3102_s7 + $0x248] sm:$0xff]  ;;  %v977_v14 = vld [vmem:[%s3102_s7 + $0x1630] sm:$0xff] }
  0xd3   : > { %1317 = vmatpush2.msra.mxu1 %v892_v15  ;;  %1247 = vmatprep.subr.mxu0 %v728_v16  ;;  %v339_v15 = vld [vmem:[%s3102_s7 + $0x240] sm:$0xff]  ;;  %v973_v16 = vld [vmem:[%s3102_s7 + $0x1610] sm:$0xff] }
  0xd4   : > { %1318 = vmatprep.subr.mxu1 %v888_v17  ;;  %1248 = vmatpush2.msra.mxu0 %v727_v18  ;;  %v335_v17 = vld [vmem:[%s3102_s7 + $0x220] sm:$0xff]  ;;  %v972_v18 = vld [vmem:[%s3102_s7 + $0x1608] sm:$0xff] }
  0xd5   : > { %1319 = vmatpush2.msra.mxu1 %v887_v19  ;;  %1249 = vmatprep.subr.mxu0 %v723_v20  ;;  %v334_v19 = vld [vmem:[%s3102_s7 + $0x218] sm:$0xff]  ;;  %v968_v20 = vld [vmem:[%s3102_s7 + $0x15e8] sm:$0xff] }
  0xd6   : > { %1320 = vmatprep.subr.mxu1 %v883_v21  ;;  %1250 = vmatpush2.msra.mxu0 %v722_v22  ;;  %v330_v21 = vld [vmem:[%s3102_s7 + $0x1f8] sm:$0xff]  ;;  %v967_v22 = vld [vmem:[%s3102_s7 + $0x15e0] sm:$0xff] }
  0xd7   : > { %1321 = vmatpush2.msra.mxu1 %v882_v23  ;;  %1251 = vmatprep.subr.mxu0 %v718_v24  ;;  %v329_v23 = vld [vmem:[%s3102_s7 + $0x1f0] sm:$0xff]  ;;  %v963_v24 = vld [vmem:[%s3102_s7 + $0x15c0] sm:$0xff] }
  0xd8   : > { %1322 = vmatprep.subr.mxu1 %v878_v25  ;;  %1252 = vmatpush2.msra.mxu0 %v717_v26  ;;  %v325_v25 = vld [vmem:[%s3102_s7 + $0x1d0] sm:$0xff]  ;;  %v962_v26 = vld [vmem:[%s3102_s7 + $0x15b8] sm:$0xff] }
  0xd9   : > { %1323 = vmatpush2.msra.mxu1 %v877_v27  ;;  %1253 = vmatprep.subr.mxu0 %v713_v28  ;;  %v324_v27 = vld [vmem:[%s3102_s7 + $0x1c8] sm:$0xff]  ;;  %v958_v28 = vld [vmem:[%s3102_s7 + $0x1598] sm:$0xff] }
  0xda   : > { %1324 = vmatprep.subr.mxu1 %v873_v29  ;;  %1254 = vmatpush2.msra.mxu0 %v712_v30  ;;  %v320_v29 = vld [vmem:[%s3102_s7 + $0x1a8] sm:$0xff]  ;;  %v957_v30 = vld [vmem:[%s3102_s7 + $0x1590] sm:$0xff] }
  0xdb   : > { %1325 = vmatpush2.msra.mxu1 %v872_v31  ;;  %1255 = vmatprep.subr.mxu0 %v708_v32  ;;  %v319_v31 = vld [vmem:[%s3102_s7 + $0x1a0] sm:$0xff]  ;;  %v953_v32 = vld [vmem:[%s3102_s7 + $0x1570] sm:$0xff] }
  0xdc   : > { %1326 = vmatprep.subr.mxu1 %v868_v33  ;;  %1256 = vmatpush2.msra.mxu0 %v707_v34  ;;  %v315_v33 = vld [vmem:[%s3102_s7 + $0x180] sm:$0xff]  ;;  %v952_v34 = vld [vmem:[%s3102_s7 + $0x1568] sm:$0xff] }
  0xdd   : > { %1327 = vmatpush2.msra.mxu1 %v867_v35  ;;  %1257 = vmatprep.subr.mxu0 %v703_v36  ;;  %v314_v35 = vld [vmem:[%s3102_s7 + $0x178] sm:$0xff]  ;;  %v948_v36 = vld [vmem:[%s3102_s7 + $0x1548] sm:$0xff] }
  0xde   : > { %1328 = vmatprep.subr.mxu1 %v863_v37  ;;  %1258 = vmatpush2.msra.mxu0 %v702_v38  ;;  %v310_v37 = vld [vmem:[%s3102_s7 + $0x158] sm:$0xff]  ;;  %v947_v38 = vld [vmem:[%s3102_s7 + $0x1540] sm:$0xff] }
  0xdf   : > { %1329 = vmatpush2.msra.mxu1 %v862_v39  ;;  %1259 = vmatprep.subr.mxu0 %v698_v40  ;;  %v309_v39 = vld [vmem:[%s3102_s7 + $0x150] sm:$0xff]  ;;  %v943_v40 = vld [vmem:[%s3102_s7 + $0x1520] sm:$0xff] }
  0xe0   : > { %1330 = vmatprep.subr.mxu1 %v858_v41  ;;  %1260 = vmatpush2.msra.mxu0 %v697_v42  ;;  %v305_v41 = vld [vmem:[%s3102_s7 + $0x130] sm:$0xff]  ;;  %v942_v42 = vld [vmem:[%s3102_s7 + $0x1518] sm:$0xff] }
  0xe1   : > { %1331 = vmatpush2.msra.mxu1 %v857_v43  ;;  %1261 = vmatprep.subr.mxu0 %v693_v44  ;;  %v304_v43 = vld [vmem:[%s3102_s7 + $0x128] sm:$0xff]  ;;  %v938_v44 = vld [vmem:[%s3102_s7 + $0x14f8] sm:$0xff] }
  0xe2   : > { %1332 = vmatprep.subr.mxu1 %v853_v45  ;;  %1262 = vmatpush2.msra.mxu0 %v692_v46  ;;  %v300_v45 = vld [vmem:[%s3102_s7 + $0x108] sm:$0xff]  ;;  %v937_v46 = vld [vmem:[%s3102_s7 + $0x14f0] sm:$0xff] }
  0xe3   : > { %1333 = vmatpush2.msra.mxu1 %v852_v47  ;;  %1263 = vmatprep.subr.mxu0 %v688_v48  ;;  %v299_v47 = vld [vmem:[%s3102_s7 + $0x100] sm:$0xff]  ;;  %v933_v48 = vld [vmem:[%s3102_s7 + $0x14d0] sm:$0xff] }
  0xe4   : > { %1334 = vmatprep.subr.mxu1 %v848_v49  ;;  %1264 = vmatpush2.msra.mxu0 %v687_v50  ;;  %v295_v49 = vld [vmem:[%s3102_s7 + $0xe0] sm:$0xff]  ;;  %v932_v50 = vld [vmem:[%s3102_s7 + $0x14c8] sm:$0xff] }
  0xe5   : > { %1335 = vmatpush2.msra.mxu1 %v847_v51  ;;  %1265 = vmatprep.subr.mxu0 %v683_v52  ;;  %v294_v51 = vld [vmem:[%s3102_s7 + $0xd8] sm:$0xff]  ;;  %v928_v52 = vld [vmem:[%s3102_s7 + $0x14a8] sm:$0xff] }
  0xe6   : > { %1336 = vmatprep.subr.mxu1 %v843_v53  ;;  %1266 = vmatpush2.msra.mxu0 %v682_v54  ;;  %v290_v53 = vld [vmem:[%s3102_s7 + $0xb8] sm:$0xff]  ;;  %v927_v54 = vld [vmem:[%s3102_s7 + $0x14a0] sm:$0xff] }
  0xe7   : > { %1337 = vmatpush2.msra.mxu1 %v842_v55  ;;  %1267 = vmatprep.subr.mxu0 %v678_v56  ;;  %v289_v55 = vld [vmem:[%s3102_s7 + $0xb0] sm:$0xff]  ;;  %v923_v56 = vld [vmem:[%s3102_s7 + $0x1480] sm:$0xff] }
  0xe8   : > { %1338 = vmatprep.subr.mxu1 %v838_v57  ;;  %1268 = vmatpush2.msra.mxu0 %v677_v58  ;;  %v285_v57 = vld [vmem:[%s3102_s7 + $0x90] sm:$0xff]  ;;  %v922_v58 = vld [vmem:[%s3102_s7 + $0x1478] sm:$0xff] }
  0xe9   : > { %1339 = vmatpush2.msra.mxu1 %v837_v59  ;;  %1269 = vmatprep.subr.mxu0 %v673_v60  ;;  %v284_v59 = vld [vmem:[%s3102_s7 + $0x88] sm:$0xff]  ;;  %v918_v60 = vld [vmem:[%s3102_s7 + $0x1458] sm:$0xff] }
  0xea   : > { %1340 = vmatprep.subr.mxu1 %v833_v61  ;;  %1270 = vmatpush2.msra.mxu0 %v672_v62  ;;  %v280_v61 = vld [vmem:[%s3102_s7 + $0x68] sm:$0xff]  ;;  %v917_v62 = vld [vmem:[%s3102_s7 + $0x1450] sm:$0xff] }
  0xeb   : > { %1341 = vmatpush2.msra.mxu1 %v832_v63  ;;  %1271 = vmatprep.subr.mxu0 %v668_v0  ;;  %v279_v63 = vld [vmem:[%s3102_s7 + $0x60] sm:$0xff]  ;;  %v913_v0 = vld [vmem:[%s3102_s7 + $0x1430] sm:$0xff] }
  0xec   : > { %1342 = vmatprep.subr.mxu1 %v828_v1  ;;  %1272 = vmatpush2.msra.mxu0 %v667_v2  ;;  %v275_v1 = vld [vmem:[%s3102_s7 + $0x40] sm:$0xff]  ;;  %v912_v2 = vld [vmem:[%s3102_s7 + $0x1428] sm:$0xff] }
  0xed   : > { %1273 = vmatprep.mubr.f32.mxu0 %v262_v3  ;;  %1343 = vmatpush2.msra.mxu1 %v827_v4  ;;  %v274_v3 = vld [vmem:[%s3102_s7 + $0x38] sm:$0xff]  ;;  %v908_v4 = vld [vmem:[%s3102_s7 + $0x1408] sm:$0xff] }
  0xee   : > { %1274 = vmatmul.mubr.f32.vlgmr.msra.gmra.mxu0 %v261_v5  ;;  %1344 = vmatprep.mubr.f32.mxu1 %v264_v6  ;;  %v270_v5 = vld [vmem:[%s3102_s7 + $0x18] sm:$0xff]  ;;  %v907_v6 = vld [vmem:[%s3102_s7 + $0x1400] sm:$0xff] }
  0xef   : > { %1351 = vmatprep.subr.mxu0 %v983_v7  ;;  %1422 = vmatprep.subr.mxu1 %v345_v8  ;;  %v269_v7 = vld [vmem:[%s3102_s7 + $0x10] sm:$0xff]  ;;  %v1063_v8 = vld [vmem:[%s3102_s7 + $0x18e0] sm:$0xff] }
  0xf0   : > { %1345 = vmatmul.mubr.f32.vlgmr.msra.gmra.mxu1 %v263_v9  ;;  %1352 = vmatpush1.msra.mxu0 %v982_v10  ;;  %v425_v9 = vld [vmem:[%s3102_s7 + $0x4f0] sm:$0xff]  ;;  %v1062_v10 = vld [vmem:[%s3102_s7 + $0x18d8] sm:$0xff] }
  0xf1   : > { %1423 = vmatpush1.msra.mxu1 %v344_v11  ;;  %1353 = vmatprep.subr.mxu0 %v978_v12  ;;  %v424_v11 = vld [vmem:[%s3102_s7 + $0x4e8] sm:$0xff]  ;;  %v1058_v12 = vld [vmem:[%s3102_s7 + $0x18b8] sm:$0xff] }
  0xf2   : > { %1424 = vmatprep.subr.mxu1 %v340_v13  ;;  %1354 = vmatpush1.msra.mxu0 %v977_v14  ;;  %v420_v13 = vld [vmem:[%s3102_s7 + $0x4c8] sm:$0xff]  ;;  %v1057_v14 = vld [vmem:[%s3102_s7 + $0x18b0] sm:$0xff] }
  0xf3   : > { %1425 = vmatpush1.msra.mxu1 %v339_v15  ;;  %1355 = vmatprep.subr.mxu0 %v973_v16  ;;  %v419_v15 = vld [vmem:[%s3102_s7 + $0x4c0] sm:$0xff]  ;;  %v1053_v16 = vld [vmem:[%s3102_s7 + $0x1890] sm:$0xff] }
  0xf4   : > { %1426 = vmatprep.subr.mxu1 %v335_v17  ;;  %1356 = vmatpush1.msra.mxu0 %v972_v18  ;;  %v415_v17 = vld [vmem:[%s3102_s7 + $0x4a0] sm:$0xff]  ;;  %v1052_v18 = vld [vmem:[%s3102_s7 + $0x1888] sm:$0xff] }
  0xf5   : > { %1427 = vmatpush1.msra.mxu1 %v334_v19  ;;  %1357 = vmatprep.subr.mxu0 %v968_v20  ;;  %v414_v19 = vld [vmem:[%s3102_s7 + $0x498] sm:$0xff]  ;;  %v1048_v20 = vld [vmem:[%s3102_s7 + $0x1868] sm:$0xff] }
  0xf6   : > { %1428 = vmatprep.subr.mxu1 %v330_v21  ;;  %1358 = vmatpush1.msra.mxu0 %v967_v22  ;;  %v410_v21 = vld [vmem:[%s3102_s7 + $0x478] sm:$0xff]  ;;  %v1047_v22 = vld [vmem:[%s3102_s7 + $0x1860] sm:$0xff] }
  0xf7   : > { %1429 = vmatpush1.msra.mxu1 %v329_v23  ;;  %1359 = vmatprep.subr.mxu0 %v963_v24  ;;  %v409_v23 = vld [vmem:[%s3102_s7 + $0x470] sm:$0xff]  ;;  %v1043_v24 = vld [vmem:[%s3102_s7 + $0x1840] sm:$0xff] }
  0xf8   : > { %1430 = vmatprep.subr.mxu1 %v325_v25  ;;  %1360 = vmatpush1.msra.mxu0 %v962_v26  ;;  %v405_v25 = vld [vmem:[%s3102_s7 + $0x450] sm:$0xff]  ;;  %v1042_v26 = vld [vmem:[%s3102_s7 + $0x1838] sm:$0xff] }
  0xf9   : > { %1431 = vmatpush1.msra.mxu1 %v324_v27  ;;  %1361 = vmatprep.subr.mxu0 %v958_v28  ;;  %v404_v27 = vld [vmem:[%s3102_s7 + $0x448] sm:$0xff]  ;;  %v1038_v28 = vld [vmem:[%s3102_s7 + $0x1818] sm:$0xff] }
  0xfa   : > { %1432 = vmatprep.subr.mxu1 %v320_v29  ;;  %1362 = vmatpush1.msra.mxu0 %v957_v30  ;;  %v400_v29 = vld [vmem:[%s3102_s7 + $0x428] sm:$0xff]  ;;  %v1037_v30 = vld [vmem:[%s3102_s7 + $0x1810] sm:$0xff] }
  0xfb   : > { %1433 = vmatpush1.msra.mxu1 %v319_v31  ;;  %1363 = vmatprep.subr.mxu0 %v953_v32  ;;  %v399_v31 = vld [vmem:[%s3102_s7 + $0x420] sm:$0xff]  ;;  %v1033_v32 = vld [vmem:[%s3102_s7 + $0x17f0] sm:$0xff] }
  0xfc   : > { %1434 = vmatprep.subr.mxu1 %v315_v33  ;;  %1364 = vmatpush1.msra.mxu0 %v952_v34  ;;  %v395_v33 = vld [vmem:[%s3102_s7 + $0x400] sm:$0xff]  ;;  %v1032_v34 = vld [vmem:[%s3102_s7 + $0x17e8] sm:$0xff] }
  0xfd   : > { %1435 = vmatpush1.msra.mxu1 %v314_v35  ;;  %1365 = vmatprep.subr.mxu0 %v948_v36  ;;  %v394_v35 = vld [vmem:[%s3102_s7 + $0x3f8] sm:$0xff]  ;;  %v1028_v36 = vld [vmem:[%s3102_s7 + $0x17c8] sm:$0xff] }
  0xfe   : > { %1436 = vmatprep.subr.mxu1 %v310_v37  ;;  %1366 = vmatpush1.msra.mxu0 %v947_v38  ;;  %v390_v37 = vld [vmem:[%s3102_s7 + $0x3d8] sm:$0xff]  ;;  %v1027_v38 = vld [vmem:[%s3102_s7 + $0x17c0] sm:$0xff] }
  0xff   : > { %1437 = vmatpush1.msra.mxu1 %v309_v39  ;;  %1367 = vmatprep.subr.mxu0 %v943_v40  ;;  %v389_v39 = vld [vmem:[%s3102_s7 + $0x3d0] sm:$0xff]  ;;  %v1023_v40 = vld [vmem:[%s3102_s7 + $0x17a0] sm:$0xff] }
 0x100   : > { %1438 = vmatprep.subr.mxu1 %v305_v41  ;;  %1368 = vmatpush1.msra.mxu0 %v942_v42  ;;  %v385_v41 = vld [vmem:[%s3102_s7 + $0x3b0] sm:$0xff]  ;;  %v1022_v42 = vld [vmem:[%s3102_s7 + $0x1798] sm:$0xff] }
 0x101   : > { %1439 = vmatpush1.msra.mxu1 %v304_v43  ;;  %1369 = vmatprep.subr.mxu0 %v938_v44  ;;  %v384_v43 = vld [vmem:[%s3102_s7 + $0x3a8] sm:$0xff]  ;;  %v1018_v44 = vld [vmem:[%s3102_s7 + $0x1778] sm:$0xff] }
 0x102   : > { %1440 = vmatprep.subr.mxu1 %v300_v45  ;;  %1370 = vmatpush1.msra.mxu0 %v937_v46  ;;  %v380_v45 = vld [vmem:[%s3102_s7 + $0x388] sm:$0xff]  ;;  %v1017_v46 = vld [vmem:[%s3102_s7 + $0x1770] sm:$0xff] }
 0x103   : > { %1441 = vmatpush1.msra.mxu1 %v299_v47  ;;  %1371 = vmatprep.subr.mxu0 %v933_v48  ;;  %v379_v47 = vld [vmem:[%s3102_s7 + $0x380] sm:$0xff]  ;;  %v1013_v48 = vld [vmem:[%s3102_s7 + $0x1750] sm:$0xff] }
 0x104   : > { %1442 = vmatprep.subr.mxu1 %v295_v49  ;;  %1372 = vmatpush1.msra.mxu0 %v932_v50  ;;  %v375_v49 = vld [vmem:[%s3102_s7 + $0x360] sm:$0xff]  ;;  %v1012_v50 = vld [vmem:[%s3102_s7 + $0x1748] sm:$0xff] }
 0x105   : > { %1443 = vmatpush1.msra.mxu1 %v294_v51  ;;  %1373 = vmatprep.subr.mxu0 %v928_v52  ;;  %v374_v51 = vld [vmem:[%s3102_s7 + $0x358] sm:$0xff]  ;;  %v1008_v52 = vld [vmem:[%s3102_s7 + $0x1728] sm:$0xff] }
 0x106   : > { %1444 = vmatprep.subr.mxu1 %v290_v53  ;;  %1374 = vmatpush1.msra.mxu0 %v927_v54  ;;  %v370_v53 = vld [vmem:[%s3102_s7 + $0x338] sm:$0xff]  ;;  %v1007_v54 = vld [vmem:[%s3102_s7 + $0x1720] sm:$0xff] }
 0x107   : > { %1445 = vmatpush1.msra.mxu1 %v289_v55  ;;  %1375 = vmatprep.subr.mxu0 %v923_v56  ;;  %v369_v55 = vld [vmem:[%s3102_s7 + $0x330] sm:$0xff]  ;;  %v1003_v56 = vld [vmem:[%s3102_s7 + $0x1700] sm:$0xff] }
 0x108   : > { %1446 = vmatprep.subr.mxu1 %v285_v57  ;;  %1376 = vmatpush1.msra.mxu0 %v922_v58  ;;  %v365_v57 = vld [vmem:[%s3102_s7 + $0x310] sm:$0xff]  ;;  %v1002_v58 = vld [vmem:[%s3102_s7 + $0x16f8] sm:$0xff] }
 0x109   : > { %1447 = vmatpush1.msra.mxu1 %v284_v59  ;;  %1377 = vmatprep.subr.mxu0 %v918_v60  ;;  %v364_v59 = vld [vmem:[%s3102_s7 + $0x308] sm:$0xff]  ;;  %v998_v60 = vld [vmem:[%s3102_s7 + $0x16d8] sm:$0xff] }
 0x10a   : > { %1448 = vmatprep.subr.mxu1 %v280_v61  ;;  %1378 = vmatpush1.msra.mxu0 %v917_v62  ;;  %v360_v61 = vld [vmem:[%s3102_s7 + $0x2e8] sm:$0xff]  ;;  %v997_v62 = vld [vmem:[%s3102_s7 + $0x16d0] sm:$0xff] }
 0x10b   : > { %1449 = vmatpush1.msra.mxu1 %v279_v63  ;;  %1379 = vmatprep.subr.mxu0 %v913_v0  ;;  %v359_v63 = vld [vmem:[%s3102_s7 + $0x2e0] sm:$0xff]  ;;  %v993_v0 = vld [vmem:[%s3102_s7 + $0x16b0] sm:$0xff] }
 0x10c   : > { %1450 = vmatprep.subr.mxu1 %v275_v1  ;;  %1380 = vmatpush1.msra.mxu0 %v912_v2  ;;  %v355_v1 = vld [vmem:[%s3102_s7 + $0x2c0] sm:$0xff]  ;;  %v992_v2 = vld [vmem:[%s3102_s7 + $0x16a8] sm:$0xff] }
 0x10d   : > { %1451 = vmatpush1.msra.mxu1 %v274_v3  ;;  %1381 = vmatprep.subr.mxu0 %v908_v4  ;;  %v354_v3 = vld [vmem:[%s3102_s7 + $0x2b8] sm:$0xff]  ;;  %v988_v4 = vld [vmem:[%s3102_s7 + $0x1688] sm:$0xff] }
 0x10e   : > { %1452 = vmatprep.subr.mxu1 %v270_v5  ;;  %1382 = vmatpush1.msra.mxu0 %v907_v6  ;;  %v350_v5 = vld [vmem:[%s3102_s7 + $0x298] sm:$0xff]  ;;  %v987_v6 = vld [vmem:[%s3102_s7 + $0x1680] sm:$0xff] }
 0x10f   : > { %1453 = vmatpush1.msra.mxu1 %v269_v7  ;;  %1383 = vmatprep.subr.mxu0 %v1063_v8  ;;  %v266_v7 = vld [vmem:[#allocation2 + $0x48] sm:$0xff]  ;;  %v349_v8 = vld [vmem:[%s3102_s7 + $0x290] sm:$0xff] }
 0x110   : > { %1454 = vmatprep.subr.mxu1 %v425_v9  ;;  %1384 = vmatpush2.msra.mxu0 %v1062_v10  ;;  %v265_v9 = vld [vmem:[#allocation2 + $0x40] sm:$0xff] }
 0x111   : > { %1455 = vmatpush2.msra.mxu1 %v424_v11  ;;  %1385 = vmatprep.subr.mxu0 %v1058_v12  ;;  %v505_v10 = vld [vmem:[%s3102_s7 + $0x770] sm:$0xff]  ;;  %v504_v12 = vld [vmem:[%s3102_s7 + $0x768] sm:$0xff] }
 0x112   : > { %1456 = vmatprep.subr.mxu1 %v420_v13  ;;  %1386 = vmatpush2.msra.mxu0 %v1057_v14  ;;  %v665_v11 = vld [vmem:[%s3102_s7 + $0xc70] sm:$0xff]  ;;  %v664_v13 = vld [vmem:[%s3102_s7 + $0xc68] sm:$0xff]  ;;  %v2723_v14 = vld [vmem:[#allocation2 + $0x8] sm:$0xff] }
 0x113   : > { %1457 = vmatpush2.msra.mxu1 %v419_v15  ;;  %1387 = vmatprep.subr.mxu0 %v1053_v16  ;;  %v500_v15 = vld [vmem:[%s3102_s7 + $0x748] sm:$0xff] }
 0x114   : > { %1458 = vmatprep.subr.mxu1 %v415_v17  ;;  %1388 = vmatpush2.msra.mxu0 %v1052_v18  ;;  %v660_v16 = vld [vmem:[%s3102_s7 + $0xc48] sm:$0xff]  ;;  %v2724_v17 = vld [vmem:[#allocation2] sm:$0xff]  ;;  %v499_v18 = vld [vmem:[%s3102_s7 + $0x740] sm:$0xff] }
 0x115   : > { %1459 = vmatpush2.msra.mxu1 %v414_v19  ;;  %1389 = vmatprep.subr.mxu0 %v1048_v20  ;;  %v659_v19 = vld [vmem:[%s3102_s7 + $0xc40] sm:$0xff] }
 0x116   : > { %1460 = vmatprep.subr.mxu1 %v410_v21  ;;  %1390 = vmatpush2.msra.mxu0 %v1047_v22  ;;  %v495_v20 = vld [vmem:[%s3102_s7 + $0x720] sm:$0xff]  ;;  %v494_v22 = vld [vmem:[%s3102_s7 + $0x718] sm:$0xff] }
 0x117   : > { %1461 = vmatpush2.msra.mxu1 %v409_v23  ;;  %1391 = vmatprep.subr.mxu0 %v1043_v24  ;;  %v655_v21 = vld [vmem:[%s3102_s7 + $0xc20] sm:$0xff]  ;;  %v654_v23 = vld [vmem:[%s3102_s7 + $0xc18] sm:$0xff] }
 0x118   : > { %1462 = vmatprep.subr.mxu1 %v405_v25  ;;  %1392 = vmatpush2.msra.mxu0 %v1042_v26  ;;  %v490_v24 = vld [vmem:[%s3102_s7 + $0x6f8] sm:$0xff]  ;;  %v489_v26 = vld [vmem:[%s3102_s7 + $0x6f0] sm:$0xff] }
 0x119   : > { %1463 = vmatpush2.msra.mxu1 %v404_v27  ;;  %1393 = vmatprep.subr.mxu0 %v1038_v28  ;;  %v650_v25 = vld [vmem:[%s3102_s7 + $0xbf8] sm:$0xff]  ;;  %v649_v27 = vld [vmem:[%s3102_s7 + $0xbf0] sm:$0xff] }
 0x11a   : > { %1464 = vmatprep.subr.mxu1 %v400_v29  ;;  %1394 = vmatpush2.msra.mxu0 %v1037_v30  ;;  %v485_v28 = vld [vmem:[%s3102_s7 + $0x6d0] sm:$0xff]  ;;  %v484_v30 = vld [vmem:[%s3102_s7 + $0x6c8] sm:$0xff] }
 0x11b   : > { %1465 = vmatpush2.msra.mxu1 %v399_v31  ;;  %1395 = vmatprep.subr.mxu0 %v1033_v32  ;;  %v645_v29 = vld [vmem:[%s3102_s7 + $0xbd0] sm:$0xff]  ;;  %v644_v31 = vld [vmem:[%s3102_s7 + $0xbc8] sm:$0xff] }
 0x11c   : > { %1466 = vmatprep.subr.mxu1 %v395_v33  ;;  %1396 = vmatpush2.msra.mxu0 %v1032_v34  ;;  %v480_v32 = vld [vmem:[%s3102_s7 + $0x6a8] sm:$0xff]  ;;  %v479_v34 = vld [vmem:[%s3102_s7 + $0x6a0] sm:$0xff] }
 0x11d   : > { %1467 = vmatpush2.msra.mxu1 %v394_v35  ;;  %1397 = vmatprep.subr.mxu0 %v1028_v36  ;;  %v640_v33 = vld [vmem:[%s3102_s7 + $0xba8] sm:$0xff]  ;;  %v639_v35 = vld [vmem:[%s3102_s7 + $0xba0] sm:$0xff] }
 0x11e   : > { %1468 = vmatprep.subr.mxu1 %v390_v37  ;;  %1398 = vmatpush2.msra.mxu0 %v1027_v38  ;;  %v475_v36 = vld [vmem:[%s3102_s7 + $0x680] sm:$0xff]  ;;  %v474_v38 = vld [vmem:[%s3102_s7 + $0x678] sm:$0xff] }
 0x11f   : > { %1469 = vmatpush2.msra.mxu1 %v389_v39  ;;  %1399 = vmatprep.subr.mxu0 %v1023_v40  ;;  %v635_v37 = vld [vmem:[%s3102_s7 + $0xb80] sm:$0xff]  ;;  %v634_v39 = vld [vmem:[%s3102_s7 + $0xb78] sm:$0xff] }
 0x120   : > { %1470 = vmatprep.subr.mxu1 %v385_v41  ;;  %1400 = vmatpush2.msra.mxu0 %v1022_v42  ;;  %v470_v40 = vld [vmem:[%s3102_s7 + $0x658] sm:$0xff]  ;;  %v469_v42 = vld [vmem:[%s3102_s7 + $0x650] sm:$0xff] }
 0x121   : > { %1471 = vmatpush2.msra.mxu1 %v384_v43  ;;  %1401 = vmatprep.subr.mxu0 %v1018_v44  ;;  %v630_v41 = vld [vmem:[%s3102_s7 + $0xb58] sm:$0xff]  ;;  %v629_v43 = vld [vmem:[%s3102_s7 + $0xb50] sm:$0xff] }
 0x122   : > { %1472 = vmatprep.subr.mxu1 %v380_v45  ;;  %1402 = vmatpush2.msra.mxu0 %v1017_v46  ;;  %v465_v44 = vld [vmem:[%s3102_s7 + $0x630] sm:$0xff]  ;;  %v464_v46 = vld [vmem:[%s3102_s7 + $0x628] sm:$0xff] }
 0x123   : > { %1473 = vmatpush2.msra.mxu1 %v379_v47  ;;  %1403 = vmatprep.subr.mxu0 %v1013_v48  ;;  %v625_v45 = vld [vmem:[%s3102_s7 + $0xb30] sm:$0xff]  ;;  %v624_v47 = vld [vmem:[%s3102_s7 + $0xb28] sm:$0xff] }
 0x124   : > { %1474 = vmatprep.subr.mxu1 %v375_v49  ;;  %1404 = vmatpush2.msra.mxu0 %v1012_v50  ;;  %v460_v48 = vld [vmem:[%s3102_s7 + $0x608] sm:$0xff]  ;;  %v459_v50 = vld [vmem:[%s3102_s7 + $0x600] sm:$0xff] }
 0x125   : > { %1475 = vmatpush2.msra.mxu1 %v374_v51  ;;  %1405 = vmatprep.subr.mxu0 %v1008_v52  ;;  %v620_v49 = vld [vmem:[%s3102_s7 + $0xb08] sm:$0xff]  ;;  %v619_v51 = vld [vmem:[%s3102_s7 + $0xb00] sm:$0xff] }
 0x126   : > { %1476 = vmatprep.subr.mxu1 %v370_v53  ;;  %1406 = vmatpush2.msra.mxu0 %v1007_v54  ;;  %v455_v52 = vld [vmem:[%s3102_s7 + $0x5e0] sm:$0xff]  ;;  %v454_v54 = vld [vmem:[%s3102_s7 + $0x5d8] sm:$0xff] }
 0x127   : > { %1477 = vmatpush2.msra.mxu1 %v369_v55  ;;  %1407 = vmatprep.subr.mxu0 %v1003_v56  ;;  %v615_v53 = vld [vmem:[%s3102_s7 + $0xae0] sm:$0xff]  ;;  %v614_v55 = vld [vmem:[%s3102_s7 + $0xad8] sm:$0xff] }
 0x128   : > { %1478 = vmatprep.subr.mxu1 %v365_v57  ;;  %1408 = vmatpush2.msra.mxu0 %v1002_v58  ;;  %v450_v56 = vld [vmem:[%s3102_s7 + $0x5b8] sm:$0xff]  ;;  %v449_v58 = vld [vmem:[%s3102_s7 + $0x5b0] sm:$0xff] }
 0x129   : > { %1479 = vmatpush2.msra.mxu1 %v364_v59  ;;  %1409 = vmatprep.subr.mxu0 %v998_v60  ;;  %v610_v57 = vld [vmem:[%s3102_s7 + $0xab8] sm:$0xff]  ;;  %v609_v59 = vld [vmem:[%s3102_s7 + $0xab0] sm:$0xff] }
 0x12a   : > { %1480 = vmatprep.subr.mxu1 %v360_v61  ;;  %1410 = vmatpush2.msra.mxu0 %v997_v62  ;;  %v445_v60 = vld [vmem:[%s3102_s7 + $0x590] sm:$0xff]  ;;  %v444_v62 = vld [vmem:[%s3102_s7 + $0x588] sm:$0xff] }
 0x12b   : > { %1481 = vmatpush2.msra.mxu1 %v359_v63  ;;  %1411 = vmatprep.subr.mxu0 %v993_v0  ;;  %v605_v61 = vld [vmem:[%s3102_s7 + $0xa90] sm:$0xff]  ;;  %v604_v63 = vld [vmem:[%s3102_s7 + $0xa88] sm:$0xff] }
 0x12c   : > { %1482 = vmatprep.subr.mxu1 %v355_v1  ;;  %1412 = vmatpush2.msra.mxu0 %v992_v2  ;;  %v440_v0 = vld [vmem:[%s3102_s7 + $0x568] sm:$0xff]  ;;  %v439_v2 = vld [vmem:[%s3102_s7 + $0x560] sm:$0xff] }
 0x12d   : > { %1483 = vmatpush2.msra.mxu1 %v354_v3  ;;  %1413 = vmatprep.subr.mxu0 %v988_v4  ;;  %v600_v1 = vld [vmem:[%s3102_s7 + $0xa68] sm:$0xff]  ;;  %v599_v3 = vld [vmem:[%s3102_s7 + $0xa60] sm:$0xff] }
 0x12e   : > { %1484 = vmatprep.subr.mxu1 %v350_v5  ;;  %1414 = vmatpush2.msra.mxu0 %v987_v6  ;;  %v435_v4 = vld [vmem:[%s3102_s7 + $0x540] sm:$0xff]  ;;  %v434_v6 = vld [vmem:[%s3102_s7 + $0x538] sm:$0xff] }
 0x12f   : > { %1415 = vmatprep.mubr.f32.mxu0 %v266_v7  ;;  %1485 = vmatpush2.msra.mxu1 %v349_v8  ;;  %v595_v5 = vld [vmem:[%s3102_s7 + $0xa40] sm:$0xff]  ;;  %v594_v7 = vld [vmem:[%s3102_s7 + $0xa38] sm:$0xff] }
 0x130   : > { %1416 = vmatmul.mubr.f32.vlgmr.msra.gmra.mxu0 %v265_v9  ;;  %1486 = vmatprep.mubr.f32.mxu1 %v2723_v14  ;;  %v430_v8 = vld [vmem:[%s3102_s7 + $0x518] sm:$0xff]  ;;  %v584_v14 = vld [vmem:[%s3102_s7 + $0x9e8] sm:$0xff] }
 0x131   : > { %1493 = vmatprep.subr.mxu0 %v505_v10  ;;  %1564 = vmatprep.subr.mxu1 %v665_v11  ;;  %v590_v9 = vld [vmem:[%s3102_s7 + $0xa18] sm:$0xff]  ;;  %v429_v10 = vld [vmem:[%s3102_s7 + $0x510] sm:$0xff] }
 0x132   : > { %1487 = vmatmul.mubr.f32.vlgmr.msra.gmra.mxu1 %v2724_v17  ;;  %1494 = vmatpush1.msra.mxu0 %v504_v12  ;;  %v589_v11 = vld [vmem:[%s3102_s7 + $0xa10] sm:$0xff]  ;;  %v740_v17 = vld [vmem:[%s3102_s7 + $0xec8] sm:$0xff] }
 0x133   : > { %1565 = vmatpush1.msra.mxu1 %v664_v13  ;;  %1495 = vmatprep.subr.mxu0 %v500_v15  ;;  %v585_v12 = vld [vmem:[%s3102_s7 + $0x9f0] sm:$0xff]  ;;  %v744_v15 = vld [vmem:[%s3102_s7 + $0xee8] sm:$0xff] }
 0x134   : > { %1566 = vmatprep.subr.mxu1 %v660_v16  ;;  %1496 = vmatpush1.msra.mxu0 %v499_v18  ;;  %v745_v13 = vld [vmem:[%s3102_s7 + $0xef0] sm:$0xff]  ;;  %v580_v16 = vld [vmem:[%s3102_s7 + $0x9c8] sm:$0xff]  ;;  %v579_v18 = vld [vmem:[%s3102_s7 + $0x9c0] sm:$0xff] }
 0x135   : > { %1567 = vmatpush1.msra.mxu1 %v659_v19  ;;  %1497 = vmatprep.subr.mxu0 %v495_v20  ;;  %v739_v19 = vld [vmem:[%s3102_s7 + $0xec0] sm:$0xff] }
 0x136   : > { %1568 = vmatprep.subr.mxu1 %v655_v21  ;;  %1498 = vmatpush1.msra.mxu0 %v494_v22  ;;  %v575_v20 = vld [vmem:[%s3102_s7 + $0x9a0] sm:$0xff]  ;;  %v574_v22 = vld [vmem:[%s3102_s7 + $0x998] sm:$0xff] }
 0x137   : > { %1569 = vmatpush1.msra.mxu1 %v654_v23  ;;  %1499 = vmatprep.subr.mxu0 %v490_v24  ;;  %v735_v21 = vld [vmem:[%s3102_s7 + $0xea0] sm:$0xff]  ;;  %v734_v23 = vld [vmem:[%s3102_s7 + $0xe98] sm:$0xff] }
 0x138   : > { %1570 = vmatprep.subr.mxu1 %v650_v25  ;;  %1500 = vmatpush1.msra.mxu0 %v489_v26  ;;  %v570_v24 = vld [vmem:[%s3102_s7 + $0x978] sm:$0xff]  ;;  %v569_v26 = vld [vmem:[%s3102_s7 + $0x970] sm:$0xff] }
 0x139   : > { %1571 = vmatpush1.msra.mxu1 %v649_v27  ;;  %1501 = vmatprep.subr.mxu0 %v485_v28  ;;  %v730_v25 = vld [vmem:[%s3102_s7 + $0xe78] sm:$0xff]  ;;  %v729_v27 = vld [vmem:[%s3102_s7 + $0xe70] sm:$0xff] }
 0x13a   : > { %1572 = vmatprep.subr.mxu1 %v645_v29  ;;  %1502 = vmatpush1.msra.mxu0 %v484_v30  ;;  %v565_v28 = vld [vmem:[%s3102_s7 + $0x950] sm:$0xff]  ;;  %v564_v30 = vld [vmem:[%s3102_s7 + $0x948] sm:$0xff] }
 0x13b   : > { %1573 = vmatpush1.msra.mxu1 %v644_v31  ;;  %1503 = vmatprep.subr.mxu0 %v480_v32  ;;  %v725_v29 = vld [vmem:[%s3102_s7 + $0xe50] sm:$0xff]  ;;  %v724_v31 = vld [vmem:[%s3102_s7 + $0xe48] sm:$0xff] }
 0x13c   : > { %1574 = vmatprep.subr.mxu1 %v640_v33  ;;  %1504 = vmatpush1.msra.mxu0 %v479_v34  ;;  %v560_v32 = vld [vmem:[%s3102_s7 + $0x928] sm:$0xff]  ;;  %v559_v34 = vld [vmem:[%s3102_s7 + $0x920] sm:$0xff] }
 0x13d   : > { %1575 = vmatpush1.msra.mxu1 %v639_v35  ;;  %1505 = vmatprep.subr.mxu0 %v475_v36  ;;  %v720_v33 = vld [vmem:[%s3102_s7 + $0xe28] sm:$0xff]  ;;  %v719_v35 = vld [vmem:[%s3102_s7 + $0xe20] sm:$0xff] }
 0x13e   : > { %1576 = vmatprep.subr.mxu1 %v635_v37  ;;  %1506 = vmatpush1.msra.mxu0 %v474_v38  ;;  %v555_v36 = vld [vmem:[%s3102_s7 + $0x900] sm:$0xff]  ;;  %v554_v38 = vld [vmem:[%s3102_s7 + $0x8f8] sm:$0xff] }
 0x13f   : > { %1577 = vmatpush1.msra.mxu1 %v634_v39  ;;  %1507 = vmatprep.subr.mxu0 %v470_v40  ;;  %v715_v37 = vld [vmem:[%s3102_s7 + $0xe00] sm:$0xff]  ;;  %v714_v39 = vld [vmem:[%s3102_s7 + $0xdf8] sm:$0xff] }
 0x140   : > { %1578 = vmatprep.subr.mxu1 %v630_v41  ;;  %1508 = vmatpush1.msra.mxu0 %v469_v42  ;;  %v550_v40 = vld [vmem:[%s3102_s7 + $0x8d8] sm:$0xff]  ;;  %v549_v42 = vld [vmem:[%s3102_s7 + $0x8d0] sm:$0xff] }
 0x141   : > { %1579 = vmatpush1.msra.mxu1 %v629_v43  ;;  %1509 = vmatprep.subr.mxu0 %v465_v44  ;;  %v710_v41 = vld [vmem:[%s3102_s7 + $0xdd8] sm:$0xff]  ;;  %v709_v43 = vld [vmem:[%s3102_s7 + $0xdd0] sm:$0xff] }
 0x142   : > { %1580 = vmatprep.subr.mxu1 %v625_v45  ;;  %1510 = vmatpush1.msra.mxu0 %v464_v46  ;;  %v545_v44 = vld [vmem:[%s3102_s7 + $0x8b0] sm:$0xff]  ;;  %v544_v46 = vld [vmem:[%s3102_s7 + $0x8a8] sm:$0xff] }
 0x143   : > { %1581 = vmatpush1.msra.mxu1 %v624_v47  ;;  %1511 = vmatprep.subr.mxu0 %v460_v48  ;;  %v705_v45 = vld [vmem:[%s3102_s7 + $0xdb0] sm:$0xff]  ;;  %v704_v47 = vld [vmem:[%s3102_s7 + $0xda8] sm:$0xff] }
 0x144   : > { %1582 = vmatprep.subr.mxu1 %v620_v49  ;;  %1512 = vmatpush1.msra.mxu0 %v459_v50  ;;  %v540_v48 = vld [vmem:[%s3102_s7 + $0x888] sm:$0xff]  ;;  %v539_v50 = vld [vmem:[%s3102_s7 + $0x880] sm:$0xff] }
 0x145   : > { %1583 = vmatpush1.msra.mxu1 %v619_v51  ;;  %1513 = vmatprep.subr.mxu0 %v455_v52  ;;  %v700_v49 = vld [vmem:[%s3102_s7 + $0xd88] sm:$0xff]  ;;  %v699_v51 = vld [vmem:[%s3102_s7 + $0xd80] sm:$0xff] }
 0x146   : > { %1584 = vmatprep.subr.mxu1 %v615_v53  ;;  %1514 = vmatpush1.msra.mxu0 %v454_v54  ;;  %v535_v52 = vld [vmem:[%s3102_s7 + $0x860] sm:$0xff]  ;;  %v534_v54 = vld [vmem:[%s3102_s7 + $0x858] sm:$0xff] }
 0x147   : > { %1585 = vmatpush1.msra.mxu1 %v614_v55  ;;  %1515 = vmatprep.subr.mxu0 %v450_v56  ;;  %v695_v53 = vld [vmem:[%s3102_s7 + $0xd60] sm:$0xff]  ;;  %v694_v55 = vld [vmem:[%s3102_s7 + $0xd58] sm:$0xff] }
 0x148   : > { %1586 = vmatprep.subr.mxu1 %v610_v57  ;;  %1516 = vmatpush1.msra.mxu0 %v449_v58  ;;  %v530_v56 = vld [vmem:[%s3102_s7 + $0x838] sm:$0xff]  ;;  %v529_v58 = vld [vmem:[%s3102_s7 + $0x830] sm:$0xff] }
 0x149   : > { %1587 = vmatpush1.msra.mxu1 %v609_v59  ;;  %1517 = vmatprep.subr.mxu0 %v445_v60  ;;  %v690_v57 = vld [vmem:[%s3102_s7 + $0xd38] sm:$0xff]  ;;  %v689_v59 = vld [vmem:[%s3102_s7 + $0xd30] sm:$0xff] }
 0x14a   : > { %1588 = vmatprep.subr.mxu1 %v605_v61  ;;  %1518 = vmatpush1.msra.mxu0 %v444_v62  ;;  %v525_v60 = vld [vmem:[%s3102_s7 + $0x810] sm:$0xff]  ;;  %v524_v62 = vld [vmem:[%s3102_s7 + $0x808] sm:$0xff] }
 0x14b   : > { %1589 = vmatpush1.msra.mxu1 %v604_v63  ;;  %1519 = vmatprep.subr.mxu0 %v440_v0  ;;  %v685_v61 = vld [vmem:[%s3102_s7 + $0xd10] sm:$0xff]  ;;  %v684_v63 = vld [vmem:[%s3102_s7 + $0xd08] sm:$0xff] }
 0x14c   : > { %1590 = vmatprep.subr.mxu1 %v600_v1  ;;  %1520 = vmatpush1.msra.mxu0 %v439_v2  ;;  %v520_v0 = vld [vmem:[%s3102_s7 + $0x7e8] sm:$0xff]  ;;  %v519_v2 = vld [vmem:[%s3102_s7 + $0x7e0] sm:$0xff] }
 0x14d   : > { %1591 = vmatpush1.msra.mxu1 %v599_v3  ;;  %1521 = vmatprep.subr.mxu0 %v435_v4  ;;  %v680_v1 = vld [vmem:[%s3102_s7 + $0xce8] sm:$0xff]  ;;  %v679_v3 = vld [vmem:[%s3102_s7 + $0xce0] sm:$0xff] }
 0x14e   : > { %1592 = vmatprep.subr.mxu1 %v595_v5  ;;  %1522 = vmatpush1.msra.mxu0 %v434_v6  ;;  %v515_v4 = vld [vmem:[%s3102_s7 + $0x7c0] sm:$0xff]  ;;  %v514_v6 = vld [vmem:[%s3102_s7 + $0x7b8] sm:$0xff] }
 0x14f   : > { %1593 = vmatpush1.msra.mxu1 %v594_v7  ;;  %1523 = vmatprep.subr.mxu0 %v430_v8  ;;  %v675_v5 = vld [vmem:[%s3102_s7 + $0xcc0] sm:$0xff]  ;;  %v674_v7 = vld [vmem:[%s3102_s7 + $0xcb8] sm:$0xff] }
 0x150   : > { %1594 = vmatprep.subr.mxu1 %v590_v9  ;;  %1524 = vmatpush1.msra.mxu0 %v429_v10  ;;  %v510_v8 = vld [vmem:[%s3102_s7 + $0x798] sm:$0xff]  ;;  %v509_v10 = vld [vmem:[%s3102_s7 + $0x790] sm:$0xff] }
 0x151   : > { %1595 = vmatpush1.msra.mxu1 %v589_v11  ;;  %1525 = vmatprep.subr.mxu0 %v585_v12  ;;  %v670_v9 = vld [vmem:[%s3102_s7 + $0xc98] sm:$0xff]  ;;  %v669_v11 = vld [vmem:[%s3102_s7 + $0xc90] sm:$0xff] }
 0x152   : > { %1596 = vmatprep.subr.mxu1 %v745_v13  ;;  %1526 = vmatpush2.msra.mxu0 %v584_v14  ;;  %v825_v12 = vld [vmem:[%s3102_s7 + $0x1170] sm:$0xff]  ;;  %v3629_v13 = vld [vmem:[#allocation2 + $0x18] sm:$0xff] }
 0x153   : > { %1597 = vmatpush2.msra.mxu1 %v744_v15  ;;  %1527 = vmatprep.subr.mxu0 %v580_v16  ;;  %v985_v14 = vld [vmem:[%s3102_s7 + $0x1670] sm:$0xff]  ;;  %v3633_v15 = vld [vmem:[#allocation2 + $0x10] sm:$0xff]  ;;  %v824_v16 = vld [vmem:[%s3102_s7 + $0x1168] sm:$0xff] }
 0x154   : > { %1598 = vmatprep.subr.mxu1 %v740_v17  ;;  %1528 = vmatpush2.msra.mxu0 %v579_v18  ;;  %v984_v17 = vld [vmem:[%s3102_s7 + $0x1668] sm:$0xff]  ;;  %v2727_v18 = vld [vmem:[#allocation2 + $0x28] sm:$0xff] }
 0x155   : > { %1599 = vmatpush2.msra.mxu1 %v739_v19  ;;  %1529 = vmatprep.subr.mxu0 %v575_v20  ;;  %v820_v19 = vld [vmem:[%s3102_s7 + $0x1148] sm:$0xff] }
 0x156   : > { %1600 = vmatprep.subr.mxu1 %v735_v21  ;;  %1530 = vmatpush2.msra.mxu0 %v574_v22  ;;  %v980_v20 = vld [vmem:[%s3102_s7 + $0x1648] sm:$0xff]  ;;  %v2728_v21 = vld [vmem:[#allocation2 + $0x20] sm:$0xff]  ;;  %v819_v22 = vld [vmem:[%s3102_s7 + $0x1140] sm:$0xff] }
 0x157   : > { %1601 = vmatpush2.msra.mxu1 %v734_v23  ;;  %1531 = vmatprep.subr.mxu0 %v570_v24  ;;  %v979_v23 = vld [vmem:[%s3102_s7 + $0x1640] sm:$0xff] }
 0x158   : > { %1602 = vmatprep.subr.mxu1 %v730_v25  ;;  %1532 = vmatpush2.msra.mxu0 %v569_v26  ;;  %v815_v24 = vld [vmem:[%s3102_s7 + $0x1120] sm:$0xff]  ;;  %v814_v26 = vld [vmem:[%s3102_s7 + $0x1118] sm:$0xff] }
 0x159   : > { %1603 = vmatpush2.msra.mxu1 %v729_v27  ;;  %1533 = vmatprep.subr.mxu0 %v565_v28  ;;  %v975_v25 = vld [vmem:[%s3102_s7 + $0x1620] sm:$0xff]  ;;  %v974_v27 = vld [vmem:[%s3102_s7 + $0x1618] sm:$0xff] }
 0x15a   : > { %1604 = vmatprep.subr.mxu1 %v725_v29  ;;  %1534 = vmatpush2.msra.mxu0 %v564_v30  ;;  %v810_v28 = vld [vmem:[%s3102_s7 + $0x10f8] sm:$0xff]  ;;  %v809_v30 = vld [vmem:[%s3102_s7 + $0x10f0] sm:$0xff] }
 0x15b   : > { %1605 = vmatpush2.msra.mxu1 %v724_v31  ;;  %1535 = vmatprep.subr.mxu0 %v560_v32  ;;  %v970_v29 = vld [vmem:[%s3102_s7 + $0x15f8] sm:$0xff]  ;;  %v969_v31 = vld [vmem:[%s3102_s7 + $0x15f0] sm:$0xff] }
 0x15c   : > { %1606 = vmatprep.subr.mxu1 %v720_v33  ;;  %1536 = vmatpush2.msra.mxu0 %v559_v34  ;;  %v805_v32 = vld [vmem:[%s3102_s7 + $0x10d0] sm:$0xff]  ;;  %v804_v34 = vld [vmem:[%s3102_s7 + $0x10c8] sm:$0xff] }
 0x15d   : > { %1607 = vmatpush2.msra.mxu1 %v719_v35  ;;  %1537 = vmatprep.subr.mxu0 %v555_v36  ;;  %v965_v33 = vld [vmem:[%s3102_s7 + $0x15d0] sm:$0xff]  ;;  %v964_v35 = vld [vmem:[%s3102_s7 + $0x15c8] sm:$0xff] }
 0x15e   : > { %1608 = vmatprep.subr.mxu1 %v715_v37  ;;  %1538 = vmatpush2.msra.mxu0 %v554_v38  ;;  %v800_v36 = vld [vmem:[%s3102_s7 + $0x10a8] sm:$0xff]  ;;  %v799_v38 = vld [vmem:[%s3102_s7 + $0x10a0] sm:$0xff] }
 0x15f   : > { %1609 = vmatpush2.msra.mxu1 %v714_v39  ;;  %1539 = vmatprep.subr.mxu0 %v550_v40  ;;  %v960_v37 = vld [vmem:[%s3102_s7 + $0x15a8] sm:$0xff]  ;;  %v959_v39 = vld [vmem:[%s3102_s7 + $0x15a0] sm:$0xff] }
 0x160   : > { %1610 = vmatprep.subr.mxu1 %v710_v41  ;;  %1540 = vmatpush2.msra.mxu0 %v549_v42  ;;  %v795_v40 = vld [vmem:[%s3102_s7 + $0x1080] sm:$0xff]  ;;  %v794_v42 = vld [vmem:[%s3102_s7 + $0x1078] sm:$0xff] }
 0x161   : > { %1611 = vmatpush2.msra.mxu1 %v709_v43  ;;  %1541 = vmatprep.subr.mxu0 %v545_v44  ;;  %v955_v41 = vld [vmem:[%s3102_s7 + $0x1580] sm:$0xff]  ;;  %v954_v43 = vld [vmem:[%s3102_s7 + $0x1578] sm:$0xff] }
 0x162   : > { %1612 = vmatprep.subr.mxu1 %v705_v45  ;;  %1542 = vmatpush2.msra.mxu0 %v544_v46  ;;  %v790_v44 = vld [vmem:[%s3102_s7 + $0x1058] sm:$0xff]  ;;  %v789_v46 = vld [vmem:[%s3102_s7 + $0x1050] sm:$0xff] }
 0x163   : > { %1613 = vmatpush2.msra.mxu1 %v704_v47  ;;  %1543 = vmatprep.subr.mxu0 %v540_v48  ;;  %v950_v45 = vld [vmem:[%s3102_s7 + $0x1558] sm:$0xff]  ;;  %v949_v47 = vld [vmem:[%s3102_s7 + $0x1550] sm:$0xff] }
 0x164   : > { %1614 = vmatprep.subr.mxu1 %v700_v49  ;;  %1544 = vmatpush2.msra.mxu0 %v539_v50  ;;  %v785_v48 = vld [vmem:[%s3102_s7 + $0x1030] sm:$0xff]  ;;  %v784_v50 = vld [vmem:[%s3102_s7 + $0x1028] sm:$0xff] }
 0x165   : > { %1615 = vmatpush2.msra.mxu1 %v699_v51  ;;  %1545 = vmatprep.subr.mxu0 %v535_v52  ;;  %v945_v49 = vld [vmem:[%s3102_s7 + $0x1530] sm:$0xff]  ;;  %v944_v51 = vld [vmem:[%s3102_s7 + $0x1528] sm:$0xff] }
 0x166   : > { %1616 = vmatprep.subr.mxu1 %v695_v53  ;;  %1546 = vmatpush2.msra.mxu0 %v534_v54  ;;  %v780_v52 = vld [vmem:[%s3102_s7 + $0x1008] sm:$0xff]  ;;  %v779_v54 = vld [vmem:[%s3102_s7 + $0x1000] sm:$0xff] }
 0x167   : > { %1617 = vmatpush2.msra.mxu1 %v694_v55  ;;  %1547 = vmatprep.subr.mxu0 %v530_v56  ;;  %v940_v53 = vld [vmem:[%s3102_s7 + $0x1508] sm:$0xff]  ;;  %v939_v55 = vld [vmem:[%s3102_s7 + $0x1500] sm:$0xff] }
 0x168   : > { %1618 = vmatprep.subr.mxu1 %v690_v57  ;;  %1548 = vmatpush2.msra.mxu0 %v529_v58  ;;  %v775_v56 = vld [vmem:[%s3102_s7 + $0xfe0] sm:$0xff]  ;;  %v774_v58 = vld [vmem:[%s3102_s7 + $0xfd8] sm:$0xff] }
 0x169   : > { %1619 = vmatpush2.msra.mxu1 %v689_v59  ;;  %1549 = vmatprep.subr.mxu0 %v525_v60  ;;  %v935_v57 = vld [vmem:[%s3102_s7 + $0x14e0] sm:$0xff]  ;;  %v934_v59 = vld [vmem:[%s3102_s7 + $0x14d8] sm:$0xff] }
 0x16a   : > { %1620 = vmatprep.subr.mxu1 %v685_v61  ;;  %1550 = vmatpush2.msra.mxu0 %v524_v62  ;;  %v770_v60 = vld [vmem:[%s3102_s7 + $0xfb8] sm:$0xff]  ;;  %v769_v62 = vld [vmem:[%s3102_s7 + $0xfb0] sm:$0xff] }
 0x16b   : > { %1621 = vmatpush2.msra.mxu1 %v684_v63  ;;  %1551 = vmatprep.subr.mxu0 %v520_v0  ;;  %v930_v61 = vld [vmem:[%s3102_s7 + $0x14b8] sm:$0xff]  ;;  %v929_v63 = vld [vmem:[%s3102_s7 + $0x14b0] sm:$0xff] }
 0x16c   : > { %1622 = vmatprep.subr.mxu1 %v680_v1  ;;  %1552 = vmatpush2.msra.mxu0 %v519_v2  ;;  %v765_v0 = vld [vmem:[%s3102_s7 + $0xf90] sm:$0xff]  ;;  %v764_v2 = vld [vmem:[%s3102_s7 + $0xf88] sm:$0xff] }
 0x16d   : > { %1623 = vmatpush2.msra.mxu1 %v679_v3  ;;  %1553 = vmatprep.subr.mxu0 %v515_v4  ;;  %v925_v1 = vld [vmem:[%s3102_s7 + $0x1490] sm:$0xff]  ;;  %v924_v3 = vld [vmem:[%s3102_s7 + $0x1488] sm:$0xff] }
 0x16e   : > { %1624 = vmatprep.subr.mxu1 %v675_v5  ;;  %1554 = vmatpush2.msra.mxu0 %v514_v6  ;;  %v760_v4 = vld [vmem:[%s3102_s7 + $0xf68] sm:$0xff]  ;;  %v759_v6 = vld [vmem:[%s3102_s7 + $0xf60] sm:$0xff] }
 0x16f   : > { %1625 = vmatpush2.msra.mxu1 %v674_v7  ;;  %1555 = vmatprep.subr.mxu0 %v510_v8  ;;  %v920_v5 = vld [vmem:[%s3102_s7 + $0x1468] sm:$0xff]  ;;  %v919_v7 = vld [vmem:[%s3102_s7 + $0x1460] sm:$0xff] }
 0x170   : > { %1626 = vmatprep.subr.mxu1 %v670_v9  ;;  %1556 = vmatpush2.msra.mxu0 %v509_v10  ;;  %v755_v8 = vld [vmem:[%s3102_s7 + $0xf40] sm:$0xff]  ;;  %v754_v10 = vld [vmem:[%s3102_s7 + $0xf38] sm:$0xff] }
 0x171   : > { %1557 = vmatprep.mubr.f32.mxu0 %v3629_v13  ;;  %1627 = vmatpush2.msra.mxu1 %v669_v11  ;;  %v915_v9 = vld [vmem:[%s3102_s7 + $0x1440] sm:$0xff]  ;;  %v914_v11 = vld [vmem:[%s3102_s7 + $0x1438] sm:$0xff] }
 0x172   : > { %1558 = vmatmul.mubr.f32.vlgmr.msra.gmra.mxu0 %v3633_v15  ;;  %1628 = vmatprep.mubr.f32.mxu1 %v2727_v18  ;;  %v905_v18 = vld [vmem:[%s3102_s7 + $0x13f0] sm:$0xff] }
 0x173   : > { %1635 = vmatprep.subr.mxu0 %v825_v12  ;;  %1706 = vmatprep.subr.mxu1 %v985_v14  ;;  %v750_v12 = vld [vmem:[%s3102_s7 + $0xf18] sm:$0xff] }
 0x174   : > { %1629 = vmatmul.mubr.f32.vlgmr.msra.gmra.mxu1 %v2728_v21  ;;  %1636 = vmatpush1.msra.mxu0 %v824_v16  ;;  %v910_v14 = vld [vmem:[%s3102_s7 + $0x1418] sm:$0xff]  ;;  %v749_v16 = vld [vmem:[%s3102_s7 + $0xf10] sm:$0xff]  ;;  %v1064_v21 = vld [vmem:[%s3102_s7 + $0x18e8] sm:$0xff] }
 0x175   : > { %1707 = vmatpush1.msra.mxu1 %v984_v17  ;;  %1637 = vmatprep.subr.mxu0 %v820_v19  ;;  %v909_v17 = vld [vmem:[%s3102_s7 + $0x1410] sm:$0xff] }
 0x176   : > { %1708 = vmatprep.subr.mxu1 %v980_v20  ;;  %1638 = vmatpush1.msra.mxu0 %v819_v22  ;;  %v1065_v19 = vld [vmem:[%s3102_s7 + $0x18f0] sm:$0xff]  ;;  %v904_v20 = vld [vmem:[%s3102_s7 + $0x13e8] sm:$0xff] }
 0x177   : > { %1709 = vmatpush1.msra.mxu1 %v979_v23  ;;  %1639 = vmatprep.subr.mxu0 %v815_v24  ;;  %v900_v22 = vld [vmem:[%s3102_s7 + $0x13c8] sm:$0xff]  ;;  %v899_v24 = vld [vmem:[%s3102_s7 + $0x13c0] sm:$0xff] }
 0x178   : > { %1710 = vmatprep.subr.mxu1 %v975_v25  ;;  %1640 = vmatpush1.msra.mxu0 %v814_v26  ;;  %v1060_v23 = vld [vmem:[%s3102_s7 + $0x18c8] sm:$0xff]  ;;  %v1059_v25 = vld [vmem:[%s3102_s7 + $0x18c0] sm:$0xff] }
 0x179   : > { %1711 = vmatpush1.msra.mxu1 %v974_v27  ;;  %1641 = vmatprep.subr.mxu0 %v810_v28  ;;  %v895_v26 = vld [vmem:[%s3102_s7 + $0x13a0] sm:$0xff]  ;;  %v894_v28 = vld [vmem:[%s3102_s7 + $0x1398] sm:$0xff] }
 0x17a   : > { %1712 = vmatprep.subr.mxu1 %v970_v29  ;;  %1642 = vmatpush1.msra.mxu0 %v809_v30  ;;  %v1055_v27 = vld [vmem:[%s3102_s7 + $0x18a0] sm:$0xff]  ;;  %v1054_v29 = vld [vmem:[%s3102_s7 + $0x1898] sm:$0xff] }
 0x17b   : > { %1713 = vmatpush1.msra.mxu1 %v969_v31  ;;  %1643 = vmatprep.subr.mxu0 %v805_v32  ;;  %v890_v30 = vld [vmem:[%s3102_s7 + $0x1378] sm:$0xff]  ;;  %v889_v32 = vld [vmem:[%s3102_s7 + $0x1370] sm:$0xff] }
 0x17c   : > { %1714 = vmatprep.subr.mxu1 %v965_v33  ;;  %1644 = vmatpush1.msra.mxu0 %v804_v34  ;;  %v1050_v31 = vld [vmem:[%s3102_s7 + $0x1878] sm:$0xff]  ;;  %v1049_v33 = vld [vmem:[%s3102_s7 + $0x1870] sm:$0xff] }
 0x17d   : > { %1715 = vmatpush1.msra.mxu1 %v964_v35  ;;  %1645 = vmatprep.subr.mxu0 %v800_v36  ;;  %v885_v34 = vld [vmem:[%s3102_s7 + $0x1350] sm:$0xff]  ;;  %v884_v36 = vld [vmem:[%s3102_s7 + $0x1348] sm:$0xff] }
 0x17e   : > { %1716 = vmatprep.subr.mxu1 %v960_v37  ;;  %1646 = vmatpush1.msra.mxu0 %v799_v38  ;;  %v1045_v35 = vld [vmem:[%s3102_s7 + $0x1850] sm:$0xff]  ;;  %v1044_v37 = vld [vmem:[%s3102_s7 + $0x1848] sm:$0xff] }
 0x17f   : > { %1717 = vmatpush1.msra.mxu1 %v959_v39  ;;  %1647 = vmatprep.subr.mxu0 %v795_v40  ;;  %v880_v38 = vld [vmem:[%s3102_s7 + $0x1328] sm:$0xff]  ;;  %v879_v40 = vld [vmem:[%s3102_s7 + $0x1320] sm:$0xff] }
 0x180   : > { %1718 = vmatprep.subr.mxu1 %v955_v41  ;;  %1648 = vmatpush1.msra.mxu0 %v794_v42  ;;  %v1040_v39 = vld [vmem:[%s3102_s7 + $0x1828] sm:$0xff]  ;;  %v1039_v41 = vld [vmem:[%s3102_s7 + $0x1820] sm:$0xff] }
 0x181   : > { %1719 = vmatpush1.msra.mxu1 %v954_v43  ;;  %1649 = vmatprep.subr.mxu0 %v790_v44  ;;  %v875_v42 = vld [vmem:[%s3102_s7 + $0x1300] sm:$0xff]  ;;  %v874_v44 = vld [vmem:[%s3102_s7 + $0x12f8] sm:$0xff] }
 0x182   : > { %1720 = vmatprep.subr.mxu1 %v950_v45  ;;  %1650 = vmatpush1.msra.mxu0 %v789_v46  ;;  %v1035_v43 = vld [vmem:[%s3102_s7 + $0x1800] sm:$0xff]  ;;  %v1034_v45 = vld [vmem:[%s3102_s7 + $0x17f8] sm:$0xff] }
 0x183   : > { %1721 = vmatpush1.msra.mxu1 %v949_v47  ;;  %1651 = vmatprep.subr.mxu0 %v785_v48  ;;  %v870_v46 = vld [vmem:[%s3102_s7 + $0x12d8] sm:$0xff]  ;;  %v869_v48 = vld [vmem:[%s3102_s7 + $0x12d0] sm:$0xff] }
 0x184   : > { %1722 = vmatprep.subr.mxu1 %v945_v49  ;;  %1652 = vmatpush1.msra.mxu0 %v784_v50  ;;  %v1030_v47 = vld [vmem:[%s3102_s7 + $0x17d8] sm:$0xff]  ;;  %v1029_v49 = vld [vmem:[%s3102_s7 + $0x17d0] sm:$0xff] }
 0x185   : > { %1723 = vmatpush1.msra.mxu1 %v944_v51  ;;  %1653 = vmatprep.subr.mxu0 %v780_v52  ;;  %v865_v50 = vld [vmem:[%s3102_s7 + $0x12b0] sm:$0xff]  ;;  %v864_v52 = vld [vmem:[%s3102_s7 + $0x12a8] sm:$0xff] }
 0x186   : > { %1724 = vmatprep.subr.mxu1 %v940_v53  ;;  %1654 = vmatpush1.msra.mxu0 %v779_v54  ;;  %v1025_v51 = vld [vmem:[%s3102_s7 + $0x17b0] sm:$0xff]  ;;  %v1024_v53 = vld [vmem:[%s3102_s7 + $0x17a8] sm:$0xff] }
 0x187   : > { %1725 = vmatpush1.msra.mxu1 %v939_v55  ;;  %1655 = vmatprep.subr.mxu0 %v775_v56  ;;  %v860_v54 = vld [vmem:[%s3102_s7 + $0x1288] sm:$0xff]  ;;  %v859_v56 = vld [vmem:[%s3102_s7 + $0x1280] sm:$0xff] }
 0x188   : > { %1726 = vmatprep.subr.mxu1 %v935_v57  ;;  %1656 = vmatpush1.msra.mxu0 %v774_v58  ;;  %v1020_v55 = vld [vmem:[%s3102_s7 + $0x1788] sm:$0xff]  ;;  %v1019_v57 = vld [vmem:[%s3102_s7 + $0x1780] sm:$0xff] }
 0x189   : > { %1727 = vmatpush1.msra.mxu1 %v934_v59  ;;  %1657 = vmatprep.subr.mxu0 %v770_v60  ;;  %v855_v58 = vld [vmem:[%s3102_s7 + $0x1260] sm:$0xff]  ;;  %v854_v60 = vld [vmem:[%s3102_s7 + $0x1258] sm:$0xff] }
 0x18a   : > { %1728 = vmatprep.subr.mxu1 %v930_v61  ;;  %1658 = vmatpush1.msra.mxu0 %v769_v62  ;;  %v1015_v59 = vld [vmem:[%s3102_s7 + $0x1760] sm:$0xff]  ;;  %v1014_v61 = vld [vmem:[%s3102_s7 + $0x1758] sm:$0xff] }
 0x18b   : > { %1729 = vmatpush1.msra.mxu1 %v929_v63  ;;  %1659 = vmatprep.subr.mxu0 %v765_v0  ;;  %v850_v62 = vld [vmem:[%s3102_s7 + $0x1238] sm:$0xff]  ;;  %v849_v0 = vld [vmem:[%s3102_s7 + $0x1230] sm:$0xff] }
 0x18c   : > { %1730 = vmatprep.subr.mxu1 %v925_v1  ;;  %1660 = vmatpush1.msra.mxu0 %v764_v2  ;;  %v1010_v63 = vld [vmem:[%s3102_s7 + $0x1738] sm:$0xff]  ;;  %v1009_v1 = vld [vmem:[%s3102_s7 + $0x1730] sm:$0xff] }
 0x18d   : > { %1731 = vmatpush1.msra.mxu1 %v924_v3  ;;  %1661 = vmatprep.subr.mxu0 %v760_v4  ;;  %v845_v2 = vld [vmem:[%s3102_s7 + $0x1210] sm:$0xff]  ;;  %v844_v4 = vld [vmem:[%s3102_s7 + $0x1208] sm:$0xff] }
 0x18e   : > { %1732 = vmatprep.subr.mxu1 %v920_v5  ;;  %1662 = vmatpush1.msra.mxu0 %v759_v6  ;;  %v1005_v3 = vld [vmem:[%s3102_s7 + $0x1710] sm:$0xff]  ;;  %v1004_v5 = vld [vmem:[%s3102_s7 + $0x1708] sm:$0xff] }
 0x18f   : > { %1733 = vmatpush1.msra.mxu1 %v919_v7  ;;  %1663 = vmatprep.subr.mxu0 %v755_v8  ;;  %v840_v6 = vld [vmem:[%s3102_s7 + $0x11e8] sm:$0xff]  ;;  %v839_v8 = vld [vmem:[%s3102_s7 + $0x11e0] sm:$0xff] }
 0x190   : > { %1734 = vmatprep.subr.mxu1 %v915_v9  ;;  %1664 = vmatpush1.msra.mxu0 %v754_v10  ;;  %v1000_v7 = vld [vmem:[%s3102_s7 + $0x16e8] sm:$0xff]  ;;  %v999_v9 = vld [vmem:[%s3102_s7 + $0x16e0] sm:$0xff] }
 0x191   : > { %1735 = vmatpush1.msra.mxu1 %v914_v11  ;;  %1665 = vmatprep.subr.mxu0 %v750_v12  ;;  %v835_v10 = vld [vmem:[%s3102_s7 + $0x11c0] sm:$0xff]  ;;  %v834_v12 = vld [vmem:[%s3102_s7 + $0x11b8] sm:$0xff] }
 0x192   : > { %1736 = vmatprep.subr.mxu1 %v910_v14  ;;  %1666 = vmatpush1.msra.mxu0 %v749_v16  ;;  %v995_v11 = vld [vmem:[%s3102_s7 + $0x16c0] sm:$0xff]  ;;  %v994_v14 = vld [vmem:[%s3102_s7 + $0x16b8] sm:$0xff] }
 0x193   : > { %1737 = vmatpush1.msra.mxu1 %v909_v17  ;;  %1667 = vmatprep.subr.mxu0 %v905_v18  ;;  %v830_v16 = vld [vmem:[%s3102_s7 + $0x1198] sm:$0xff]  ;;  %v829_v18 = vld [vmem:[%s3102_s7 + $0x1190] sm:$0xff] }
 0x194   : > { %1738 = vmatprep.subr.mxu1 %v1065_v19  ;;  %1668 = vmatpush2.msra.mxu0 %v904_v20  ;;  %v990_v17 = vld [vmem:[%s3102_s7 + $0x1698] sm:$0xff]  ;;  %v989_v19 = vld [vmem:[%s3102_s7 + $0x1690] sm:$0xff] }
 0x195   : > { %1739 = vmatpush2.msra.mxu1 %v1064_v21  ;;  %1669 = vmatprep.subr.mxu0 %v900_v22  ;;  %v426_v20 = vld [vmem:[%s3102_s7 + $0x4f8] sm:$0xff]  ;;  %v3763_v21 = vld [vmem:[#allocation2 + $0x38] sm:$0xff] }
 0x196   : > { %1740 = vmatprep.subr.mxu1 %v1060_v23  ;;  %1670 = vmatpush2.msra.mxu0 %v899_v24  ;;  %v586_v22 = vld [vmem:[%s3102_s7 + $0x9f8] sm:$0xff]  ;;  %v3767_v23 = vld [vmem:[#allocation2 + $0x30] sm:$0xff] }
 0x197   : > { %1741 = vmatpush2.msra.mxu1 %v1059_v25  ;;  %1671 = vmatprep.subr.mxu0 %v895_v26  ;;  %v346_v24 = vld [vmem:[%s3102_s7 + $0x278] sm:$0xff] }
 0x198   : > { %1742 = vmatprep.subr.mxu1 %v1055_v27  ;;  %1672 = vmatpush2.msra.mxu0 %v894_v28  ;;  %v506_v25 = vld [vmem:[%s3102_s7 + $0x778] sm:$0xff]  ;;  %v421_v27 = vld [vmem:[%s3102_s7 + $0x4d0] sm:$0xff] }
 0x199   : > { %1743 = vmatpush2.msra.mxu1 %v1054_v29  ;;  %1673 = vmatprep.subr.mxu0 %v890_v30  ;;  %v3772_v26 = vld [vmem:[#allocation2 + $0x48] sm:$0xff]  ;;  %v581_v28 = vld [vmem:[%s3102_s7 + $0x9d0] sm:$0xff] }
 0x19a   : > { %1744 = vmatprep.subr.mxu1 %v1050_v31  ;;  %1674 = vmatpush2.msra.mxu0 %v889_v32  ;;  %v3777_v29 = vld [vmem:[#allocation2 + $0x40] sm:$0xff]  ;;  %v416_v32 = vld [vmem:[%s3102_s7 + $0x4a8] sm:$0xff] }
 0x19b   : > { %1745 = vmatpush2.msra.mxu1 %v1049_v33  ;;  %1675 = vmatprep.subr.mxu0 %v885_v34  ;;  %v341_v30 = vld [vmem:[%s3102_s7 + $0x250] sm:$0xff]  ;;  %v576_v33 = vld [vmem:[%s3102_s7 + $0x9a8] sm:$0xff] }
 0x19c   : > { %1746 = vmatprep.subr.mxu1 %v1045_v35  ;;  %1676 = vmatpush2.msra.mxu0 %v884_v36  ;;  %v501_v31 = vld [vmem:[%s3102_s7 + $0x750] sm:$0xff]  ;;  %v336_v34 = vld [vmem:[%s3102_s7 + $0x228] sm:$0xff]  ;;  %v411_v36 = vld [vmem:[%s3102_s7 + $0x480] sm:$0xff] }
 0x19d   : > { %1747 = vmatpush2.msra.mxu1 %v1044_v37  ;;  %1677 = vmatprep.subr.mxu0 %v880_v38  ;;  %v496_v35 = vld [vmem:[%s3102_s7 + $0x728] sm:$0xff]  ;;  %v571_v37 = vld [vmem:[%s3102_s7 + $0x980] sm:$0xff] }
 0x19e   : > { %1748 = vmatprep.subr.mxu1 %v1040_v39  ;;  %1678 = vmatpush2.msra.mxu0 %v879_v40  ;;  %v331_v38 = vld [vmem:[%s3102_s7 + $0x200] sm:$0xff]  ;;  %v406_v40 = vld [vmem:[%s3102_s7 + $0x458] sm:$0xff] }
 0x19f   : > { %1749 = vmatpush2.msra.mxu1 %v1039_v41  ;;  %1679 = vmatprep.subr.mxu0 %v875_v42  ;;  %v491_v39 = vld [vmem:[%s3102_s7 + $0x700] sm:$0xff]  ;;  %v566_v41 = vld [vmem:[%s3102_s7 + $0x958] sm:$0xff] }
 0x1a0   : > { %1750 = vmatprep.subr.mxu1 %v1035_v43  ;;  %1680 = vmatpush2.msra.mxu0 %v874_v44  ;;  %v326_v42 = vld [vmem:[%s3102_s7 + $0x1d8] sm:$0xff]  ;;  %v401_v44 = vld [vmem:[%s3102_s7 + $0x430] sm:$0xff] }
 0x1a1   : > { %1751 = vmatpush2.msra.mxu1 %v1034_v45  ;;  %1681 = vmatprep.subr.mxu0 %v870_v46  ;;  %v486_v43 = vld [vmem:[%s3102_s7 + $0x6d8] sm:$0xff]  ;;  %v561_v45 = vld [vmem:[%s3102_s7 + $0x930] sm:$0xff] }
 0x1a2   : > { %1752 = vmatprep.subr.mxu1 %v1030_v47  ;;  %1682 = vmatpush2.msra.mxu0 %v869_v48  ;;  %v321_v46 = vld [vmem:[%s3102_s7 + $0x1b0] sm:$0xff]  ;;  %v396_v48 = vld [vmem:[%s3102_s7 + $0x408] sm:$0xff] }
 0x1a3   : > { %1753 = vmatpush2.msra.mxu1 %v1029_v49  ;;  %1683 = vmatprep.subr.mxu0 %v865_v50  ;;  %v481_v47 = vld [vmem:[%s3102_s7 + $0x6b0] sm:$0xff]  ;;  %v556_v49 = vld [vmem:[%s3102_s7 + $0x908] sm:$0xff] }
 0x1a4   : > { %1754 = vmatprep.subr.mxu1 %v1025_v51  ;;  %1684 = vmatpush2.msra.mxu0 %v864_v52  ;;  %v316_v50 = vld [vmem:[%s3102_s7 + $0x188] sm:$0xff]  ;;  %v391_v52 = vld [vmem:[%s3102_s7 + $0x3e0] sm:$0xff] }
 0x1a5   : > { %1755 = vmatpush2.msra.mxu1 %v1024_v53  ;;  %1685 = vmatprep.subr.mxu0 %v860_v54  ;;  %v476_v51 = vld [vmem:[%s3102_s7 + $0x688] sm:$0xff]  ;;  %v551_v53 = vld [vmem:[%s3102_s7 + $0x8e0] sm:$0xff] }
 0x1a6   : > { %1756 = vmatprep.subr.mxu1 %v1020_v55  ;;  %1686 = vmatpush2.msra.mxu0 %v859_v56  ;;  %v311_v54 = vld [vmem:[%s3102_s7 + $0x160] sm:$0xff]  ;;  %v386_v56 = vld [vmem:[%s3102_s7 + $0x3b8] sm:$0xff] }
 0x1a7   : > { %1757 = vmatpush2.msra.mxu1 %v1019_v57  ;;  %1687 = vmatprep.subr.mxu0 %v855_v58  ;;  %v471_v55 = vld [vmem:[%s3102_s7 + $0x660] sm:$0xff]  ;;  %v546_v57 = vld [vmem:[%s3102_s7 + $0x8b8] sm:$0xff] }
 0x1a8   : > { %1758 = vmatprep.subr.mxu1 %v1015_v59  ;;  %1688 = vmatpush2.msra.mxu0 %v854_v60  ;;  %v306_v58 = vld [vmem:[%s3102_s7 + $0x138] sm:$0xff]  ;;  %v381_v60 = vld [vmem:[%s3102_s7 + $0x390] sm:$0xff] }
 0x1a9   : > { %1759 = vmatpush2.msra.mxu1 %v1014_v61  ;;  %1689 = vmatprep.subr.mxu0 %v850_v62  ;;  %v466_v59 = vld [vmem:[%s3102_s7 + $0x638] sm:$0xff]  ;;  %v541_v61 = vld [vmem:[%s3102_s7 + $0x890] sm:$0xff] }
 0x1aa   : > { %1760 = vmatprep.subr.mxu1 %v1010_v63  ;;  %1690 = vmatpush2.msra.mxu0 %v849_v0  ;;  %v301_v62 = vld [vmem:[%s3102_s7 + $0x110] sm:$0xff]  ;;  %v376_v0 = vld [vmem:[%s3102_s7 + $0x368] sm:$0xff] }
 0x1ab   : > { %1761 = vmatpush2.msra.mxu1 %v1009_v1  ;;  %1691 = vmatprep.subr.mxu0 %v845_v2  ;;  %v461_v63 = vld [vmem:[%s3102_s7 + $0x610] sm:$0xff]  ;;  %v536_v1 = vld [vmem:[%s3102_s7 + $0x868] sm:$0xff] }
 0x1ac   : > { %1762 = vmatprep.subr.mxu1 %v1005_v3  ;;  %1692 = vmatpush2.msra.mxu0 %v844_v4  ;;  %v296_v2 = vld [vmem:[%s3102_s7 + $0xe8] sm:$0xff]  ;;  %v371_v4 = vld [vmem:[%s3102_s7 + $0x340] sm:$0xff] }
 0x1ad   : > { %1763 = vmatpush2.msra.mxu1 %v1004_v5  ;;  %1693 = vmatprep.subr.mxu0 %v840_v6  ;;  %v456_v3 = vld [vmem:[%s3102_s7 + $0x5e8] sm:$0xff]  ;;  %v531_v5 = vld [vmem:[%s3102_s7 + $0x840] sm:$0xff] }
 0x1ae   : > { %1764 = vmatprep.subr.mxu1 %v1000_v7  ;;  %1694 = vmatpush2.msra.mxu0 %v839_v8  ;;  %v291_v6 = vld [vmem:[%s3102_s7 + $0xc0] sm:$0xff]  ;;  %v366_v8 = vld [vmem:[%s3102_s7 + $0x318] sm:$0xff] }
 0x1af   : > { %1765 = vmatpush2.msra.mxu1 %v999_v9  ;;  %1695 = vmatprep.subr.mxu0 %v835_v10  ;;  %v451_v7 = vld [vmem:[%s3102_s7 + $0x5c0] sm:$0xff]  ;;  %v526_v9 = vld [vmem:[%s3102_s7 + $0x818] sm:$0xff] }
 0x1b0   : > { %1766 = vmatprep.subr.mxu1 %v995_v11  ;;  %1696 = vmatpush2.msra.mxu0 %v834_v12  ;;  %v286_v10 = vld [vmem:[%s3102_s7 + $0x98] sm:$0xff]  ;;  %v361_v12 = vld [vmem:[%s3102_s7 + $0x2f0] sm:$0xff] }
 0x1b1   : > { %1767 = vmatpush2.msra.mxu1 %v994_v14  ;;  %1697 = vmatprep.subr.mxu0 %v830_v16  ;;  %v446_v11 = vld [vmem:[%s3102_s7 + $0x598] sm:$0xff]  ;;  %v521_v14 = vld [vmem:[%s3102_s7 + $0x7f0] sm:$0xff] }
 0x1b2   : > { %1768 = vmatprep.subr.mxu1 %v990_v17  ;;  %1698 = vmatpush2.msra.mxu0 %v829_v18  ;;  %v281_v16 = vld [vmem:[%s3102_s7 + $0x70] sm:$0xff]  ;;  %v356_v18 = vld [vmem:[%s3102_s7 + $0x2c8] sm:$0xff] }
 0x1b3   : > { %1699 = vmatprep.mubr.f32.mxu0 %v3763_v21  ;;  %1769 = vmatpush2.msra.mxu1 %v989_v19  ;;  %v441_v17 = vld [vmem:[%s3102_s7 + $0x570] sm:$0xff]  ;;  %v516_v19 = vld [vmem:[%s3102_s7 + $0x7c8] sm:$0xff] }
 0x1b4   : > { %1700 = vmatmul.mubr.f32.vlgmr.msra.gmra.mxu0 %v3767_v23  ;;  %1770 = vmatprep.mubr.f32.mxu1 %v3772_v26 }
 0x1b5   : > { %2455 = vmatprep.subr.mxu0 %v426_v20  ;;  %2490 = vmatprep.subr.mxu1 %v586_v22  ;;  %v276_v20 = vld [vmem:[%s3102_s7 + $0x48] sm:$0xff] }
 0x1b6   : > { %1771 = vmatmul.mubr.f32.vlgmr.msra.gmra.mxu1 %v3777_v29  ;;  %2456 = vmatpush3.msra.mxu0 %v346_v24  ;;  %v436_v22 = vld [vmem:[%s3102_s7 + $0x548] sm:$0xff]  ;;  %v351_v24 = vld [vmem:[%s3102_s7 + $0x2a0] sm:$0xff] }
 0x1b7   : > { %2491 = vmatpush3.msra.mxu1 %v506_v25  ;;  %2457 = vmatprep.subr.mxu0 %v421_v27  ;;  %v511_v25 = vld [vmem:[%s3102_s7 + $0x7a0] sm:$0xff] }
 0x1b8   : > { %2492 = vmatprep.subr.mxu1 %v581_v28  ;;  %2458 = vmatpush3.msra.mxu0 %v341_v30  ;;  %v271_v27 = vld [vmem:[%s3102_s7 + $0x20] sm:$0xff]  ;;  %v2733_v30 = vld [vmem:[#allocation2 + $0x8] sm:$0xff] }
 0x1b9   : > { %2493 = vmatpush3.msra.mxu1 %v501_v31  ;;  %2459 = vmatprep.subr.mxu0 %v416_v32  ;;  %v431_v28 = vld [vmem:[%s3102_s7 + $0x520] sm:$0xff]  ;;  %v746_v31 = vld [vmem:[%s3102_s7 + $0xef8] sm:$0xff] }
 0x1ba   : > { %2494 = vmatprep.subr.mxu1 %v576_v33  ;;  %2460 = vmatpush3.msra.mxu0 %v336_v34  ;;  %v906_v32 = vld [vmem:[%s3102_s7 + $0x13f8] sm:$0xff] }
 0x1bb   : > { %2495 = vmatpush3.msra.mxu1 %v496_v35  ;;  %2461 = vmatprep.subr.mxu0 %v411_v36  ;;  %v666_v33 = vld [vmem:[%s3102_s7 + $0xc78] sm:$0xff]  ;;  %v2734_v35 = vld [vmem:[#allocation2] sm:$0xff] }
 0x1bc   : > { %2496 = vmatprep.subr.mxu1 %v571_v37  ;;  %2462 = vmatpush3.msra.mxu0 %v331_v38  ;;  %v826_v34 = vld [vmem:[%s3102_s7 + $0x1178] sm:$0xff]  ;;  %v741_v36 = vld [vmem:[%s3102_s7 + $0xed0] sm:$0xff] }
 0x1bd   : > { %2497 = vmatpush3.msra.mxu1 %v491_v39  ;;  %2463 = vmatprep.subr.mxu0 %v406_v40  ;;  %v901_v37 = vld [vmem:[%s3102_s7 + $0x13d0] sm:$0xff]  ;;  %v896_v40 = vld [vmem:[%s3102_s7 + $0x13a8] sm:$0xff] }
 0x1be   : > { %2498 = vmatprep.subr.mxu1 %v566_v41  ;;  %2464 = vmatpush3.msra.mxu0 %v326_v42  ;;  %v661_v38 = vld [vmem:[%s3102_s7 + $0xc50] sm:$0xff]  ;;  %v656_v41 = vld [vmem:[%s3102_s7 + $0xc28] sm:$0xff]  ;;  %v731_v42 = vld [vmem:[%s3102_s7 + $0xe80] sm:$0xff] }
 0x1bf   : > { %2499 = vmatpush3.msra.mxu1 %v486_v43  ;;  %2465 = vmatprep.subr.mxu0 %v401_v44  ;;  %v821_v39 = vld [vmem:[%s3102_s7 + $0x1150] sm:$0xff]  ;;  %v891_v43 = vld [vmem:[%s3102_s7 + $0x1380] sm:$0xff] }
 0x1c0   : > { %2500 = vmatprep.subr.mxu1 %v561_v45  ;;  %2466 = vmatpush3.msra.mxu0 %v321_v46  ;;  %v651_v44 = vld [vmem:[%s3102_s7 + $0xc00] sm:$0xff]  ;;  %v726_v46 = vld [vmem:[%s3102_s7 + $0xe58] sm:$0xff] }
 0x1c1   : > { %2501 = vmatpush3.msra.mxu1 %v481_v47  ;;  %2467 = vmatprep.subr.mxu0 %v396_v48  ;;  %v811_v45 = vld [vmem:[%s3102_s7 + $0x1100] sm:$0xff]  ;;  %v886_v47 = vld [vmem:[%s3102_s7 + $0x1358] sm:$0xff] }
 0x1c2   : > { %2502 = vmatprep.subr.mxu1 %v556_v49  ;;  %2468 = vmatpush3.msra.mxu0 %v316_v50  ;;  %v646_v48 = vld [vmem:[%s3102_s7 + $0xbd8] sm:$0xff]  ;;  %v721_v50 = vld [vmem:[%s3102_s7 + $0xe30] sm:$0xff] }
 0x1c3   : > { %2503 = vmatpush3.msra.mxu1 %v476_v51  ;;  %2469 = vmatprep.subr.mxu0 %v391_v52  ;;  %v806_v49 = vld [vmem:[%s3102_s7 + $0x10d8] sm:$0xff]  ;;  %v881_v51 = vld [vmem:[%s3102_s7 + $0x1330] sm:$0xff]  ;;  %v1133_v52 = vpop.f32.mrf.mxu0 }
 0x1c4   : > { %2504 = vmatprep.subr.mxu1 %v551_v53  ;;  %2470 = vmatpush3.msra.mxu0 %v311_v54  ;;  %v641_v53 = vld [vmem:[%s3102_s7 + $0xbb0] sm:$0xff] }
 0x1c5   : > { %2505 = vmatpush3.msra.mxu1 %v471_v55  ;;  %2471 = vmatprep.subr.mxu0 %v386_v56  ;;  %v801_v54 = vld [vmem:[%s3102_s7 + $0x10b0] sm:$0xff]  ;;  %v716_v55 = vld [vmem:[%s3102_s7 + $0xe08] sm:$0xff] }
 0x1c6   : > { %2506 = vmatprep.subr.mxu1 %v546_v57  ;;  %2472 = vmatpush3.msra.mxu0 %v306_v58  ;;  %v876_v56 = vld [vmem:[%s3102_s7 + $0x1308] sm:$0xff] }
 0x1c7   : > { %2507 = vmatpush3.msra.mxu1 %v466_v59  ;;  %2473 = vmatprep.subr.mxu0 %v381_v60  ;;  %v636_v57 = vld [vmem:[%s3102_s7 + $0xb88] sm:$0xff]  ;;  %v711_v59 = vld [vmem:[%s3102_s7 + $0xde0] sm:$0xff] }
 0x1c8   : > { %2508 = vmatprep.subr.mxu1 %v541_v61  ;;  %2474 = vmatpush3.msra.mxu0 %v301_v62  ;;  %v796_v58 = vld [vmem:[%s3102_s7 + $0x1088] sm:$0xff]  ;;  %v871_v60 = vld [vmem:[%s3102_s7 + $0x12e0] sm:$0xff]  ;;  %v1204_v61 = vpop.f32.mrf.mxu1  ;;  %v1135_v62 = vpop.f32.mrf.mxu0 }
 0x1c9   : > { %2509 = vmatpush3.msra.mxu1 %v461_v63  ;;  %2475 = vmatprep.subr.mxu0 %v376_v0  ;;  %v631_v63 = vld [vmem:[%s3102_s7 + $0xb60] sm:$0xff] }
 0x1ca   : > { %2510 = vmatprep.subr.mxu1 %v536_v1  ;;  %2476 = vmatpush3.msra.mxu0 %v296_v2  ;;  %v791_v0 = vld [vmem:[%s3102_s7 + $0x1060] sm:$0xff]  ;;  %v706_v1 = vld [vmem:[%s3102_s7 + $0xdb8] sm:$0xff] }
 0x1cb   : > { %2511 = vmatpush3.msra.mxu1 %v456_v3  ;;  %2477 = vmatprep.subr.mxu0 %v371_v4  ;;  %v866_v2 = vld [vmem:[%s3102_s7 + $0x12b8] sm:$0xff]  ;;  %v1275_v3 = vpop.f32.mrf.mxu0 }
 0x1cc   : > { %2512 = vmatprep.subr.mxu1 %v531_v5  ;;  %2478 = vmatpush3.msra.mxu0 %v291_v6  ;;  %v626_v4 = vld [vmem:[%s3102_s7 + $0xb38] sm:$0xff]  ;;  %v701_v6 = vld [vmem:[%s3102_s7 + $0xd90] sm:$0xff] }
 0x1cd   : > { %2513 = vmatpush3.msra.mxu1 %v451_v7  ;;  %2479 = vmatprep.subr.mxu0 %v366_v8  ;;  %v786_v5 = vld [vmem:[%s3102_s7 + $0x1038] sm:$0xff]  ;;  %v861_v7 = vld [vmem:[%s3102_s7 + $0x1290] sm:$0xff]  ;;  %v1206_v8 = vpop.f32.mrf.mxu1 }
 0x1ce   : > { %2514 = vmatprep.subr.mxu1 %v526_v9  ;;  %2480 = vmatpush3.msra.mxu0 %v286_v10  ;;  %v621_v9 = vld [vmem:[%s3102_s7 + $0xb10] sm:$0xff] }
 0x1cf   : > { %2515 = vmatpush3.msra.mxu1 %v446_v11  ;;  %2481 = vmatprep.subr.mxu0 %v361_v12  ;;  %v781_v10 = vld [vmem:[%s3102_s7 + $0x1010] sm:$0xff]  ;;  %v1205_v11 = vadd.f32 %v1204_v61, %v1133_v52  ;;  %v696_v12 = vld [vmem:[%s3102_s7 + $0xd68] sm:$0xff]  ;;  %v2735_v52 = vld [vmem:[#allocation2 + $0x28] sm:$0xff] }
 0x1d0   : > { %2516 = vmatprep.subr.mxu1 %v521_v14  ;;  %2482 = vmatpush3.msra.mxu0 %v281_v16  ;;  %v856_v14 = vld [vmem:[%s3102_s7 + $0x1268] sm:$0xff]  ;;  %v1277_v16 = vpop.f32.mrf.mxu0  ;;  %v1061_v61 = vld [vmem:[%s3102_s7 + $0x18d0] sm:$0xff] }
 0x1d1   : > { %2517 = vmatpush3.msra.mxu1 %v441_v17  ;;  %2483 = vmatprep.subr.mxu0 %v356_v18  ;;  %v1346_v17 = vpop.f32.mrf.mxu1  ;;  %v616_v18 = vld [vmem:[%s3102_s7 + $0xae8] sm:$0xff] }
 0x1d2   : > { %2518 = vmatprep.subr.mxu1 %v516_v19  ;;  %2484 = vmatpush3.msra.mxu0 %v276_v20  ;;  %v776_v19 = vld [vmem:[%s3102_s7 + $0xfe8] sm:$0xff]  ;;  %v1207_v20 = vadd.f32 %v1206_v8, %v1135_v62  ;;  %v1046_v8 = vld [vmem:[%s3102_s7 + $0x1858] sm:$0xff] }
 0x1d3   : > { %2519 = vmatpush3.msra.mxu1 %v436_v22  ;;  %2485 = vmatprep.subr.mxu0 %v351_v24  ;;  %v1276_v22 = vadd.f32 %v1275_v3, %v1205_v11  ;;  %v691_v24 = vld [vmem:[%s3102_s7 + $0xd40] sm:$0xff]  ;;  %v1041_v11 = vld [vmem:[%s3102_s7 + $0x1830] sm:$0xff] }
 0x1d4   : > { %2520 = vmatprep.subr.mxu1 %v511_v25  ;;  %2486 = vmatpush3.msra.mxu0 %v271_v27  ;;  %v851_v25 = vld [vmem:[%s3102_s7 + $0x1240] sm:$0xff] }
 0x1d5   : > { %1841 = vmatprep.mubr.f32.mxu0 %v2733_v30  ;;  %2521 = vmatpush3.msra.mxu1 %v431_v28  ;;  %v611_v27 = vld [vmem:[%s3102_s7 + $0xac0] sm:$0xff]  ;;  %v1278_v30 = vadd.f32 %v1277_v16, %v1207_v20  ;;  %v1036_v16 = vld [vmem:[%s3102_s7 + $0x1808] sm:$0xff] }
 0x1d6   : > { %1911 = vmatprep.mubr.f32.mxu1 %v3629_v13  ;;  %1842 = vmatmul.mubr.f32.vlgmr.msra.gmra.mxu0 %v2734_v35  ;;  %v736_v13 = vld [vmem:[%s3102_s7 + $0xea8] sm:$0xff]  ;;  %v771_v28 = vld [vmem:[%s3102_s7 + $0xfc0] sm:$0xff]  ;;  %v766_v35 = vld [vmem:[%s3102_s7 + $0xf98] sm:$0xff] }
 0x1d7   : > { %1912 = vmatmul.mubr.f32.vlgmr.msra.gmra.mxu1 %v3633_v15  ;;  %2525 = vmatprep.subr.mxu0 %v746_v31  ;;  %v816_v15 = vld [vmem:[%s3102_s7 + $0x1128] sm:$0xff]  ;;  %v686_v31 = vld [vmem:[%s3102_s7 + $0xd18] sm:$0xff]  ;;  %v1031_v20 = vld [vmem:[%s3102_s7 + $0x17e0] sm:$0xff] }
 0x1d8   : > { %2560 = vmatprep.subr.mxu1 %v906_v32  ;;  %2526 = vmatpush3.msra.mxu0 %v666_v33  ;;  %v846_v32 = vld [vmem:[%s3102_s7 + $0x1218] sm:$0xff]  ;;  %v1348_v33 = vpop.f32.mrf.mxu1 }
 0x1d9   : > { %2561 = vmatpush3.msra.mxu1 %v826_v34  ;;  %2527 = vmatprep.subr.mxu0 %v741_v36  ;;  %v606_v34 = vld [vmem:[%s3102_s7 + $0xa98] sm:$0xff]  ;;  %v1347_v36 = vadd.f32 %v1346_v17, %v1276_v22 }
 0x1da   : > { %2562 = vmatprep.subr.mxu1 %v901_v37  ;;  %2528 = vmatpush3.msra.mxu0 %v661_v38  ;;  %v681_v37 = vld [vmem:[%s3102_s7 + $0xcf0] sm:$0xff] }
 0x1db   : > { %2563 = vmatpush3.msra.mxu1 %v821_v39  ;;  %2529 = vmatprep.subr.mxu0 %v736_v13  ;;  %v841_v38 = vld [vmem:[%s3102_s7 + $0x11f0] sm:$0xff] }
 0x1dc   : > { %2564 = vmatprep.subr.mxu1 %v896_v40  ;;  %2530 = vmatpush3.msra.mxu0 %v656_v41  ;;  %v601_v39 = vld [vmem:[%s3102_s7 + $0xa70] sm:$0xff]  ;;  %v1349_v41 = vadd.f32 %v1348_v33, %v1278_v30 }
 0x1dd   : > { %2565 = vmatpush3.msra.mxu1 %v816_v15  ;;  %2531 = vmatprep.subr.mxu0 %v731_v42  ;;  %v761_v13 = vld [vmem:[%s3102_s7 + $0xf70] sm:$0xff]  ;;  %v676_v15 = vld [vmem:[%s3102_s7 + $0xcc8] sm:$0xff] }
 0x1de   : > { %2566 = vmatprep.subr.mxu1 %v891_v43  ;;  %2532 = vmatpush3.msra.mxu0 %v651_v44  ;;  %v836_v42 = vld [vmem:[%s3102_s7 + $0x11c8] sm:$0xff] }
 0x1df   : > { %2567 = vmatpush3.msra.mxu1 %v811_v45  ;;  %2533 = vmatprep.subr.mxu0 %v726_v46  ;;  %v596_v44 = vld [vmem:[%s3102_s7 + $0xa48] sm:$0xff]  ;;  %v671_v46 = vld [vmem:[%s3102_s7 + $0xca0] sm:$0xff] }
 0x1e0   : > { %2568 = vmatprep.subr.mxu1 %v886_v47  ;;  %2534 = vmatpush3.msra.mxu0 %v646_v48  ;;  %v756_v47 = vld [vmem:[%s3102_s7 + $0xf48] sm:$0xff] }
 0x1e1   : > { %2569 = vmatpush3.msra.mxu1 %v806_v49  ;;  %2535 = vmatprep.subr.mxu0 %v721_v50  ;;  %v591_v50 = vld [vmem:[%s3102_s7 + $0xa20] sm:$0xff] }
 0x1e2   : > { %2570 = vmatprep.subr.mxu1 %v881_v51  ;;  %2536 = vmatpush3.msra.mxu0 %v641_v53  ;;  %v831_v51 = vld [vmem:[%s3102_s7 + $0x11a0] sm:$0xff] }
 0x1e3   : > { %2571 = vmatpush3.msra.mxu1 %v801_v54  ;;  %2537 = vmatprep.subr.mxu0 %v716_v55  ;;  %v1066_v54 = vld [vmem:[%s3102_s7 + $0x18f8] sm:$0xff] }
 0x1e4   : > { %2572 = vmatprep.subr.mxu1 %v876_v56  ;;  %2538 = vmatpush3.msra.mxu0 %v636_v57  ;;  %v751_v56 = vld [vmem:[%s3102_s7 + $0xf20] sm:$0xff] }
 0x1e5   : > { %2573 = vmatpush3.msra.mxu1 %v796_v58  ;;  %2539 = vmatprep.subr.mxu0 %v711_v59  ;;  %v986_v58 = vld [vmem:[%s3102_s7 + $0x1678] sm:$0xff] }
 0x1e6   : > { %2574 = vmatprep.subr.mxu1 %v871_v60  ;;  %2540 = vmatpush3.msra.mxu0 %v631_v63  ;;  %v2736_v60 = vld [vmem:[#allocation2 + $0x20] sm:$0xff] }
 0x1e7   : > { %2575 = vmatpush3.msra.mxu1 %v791_v0  ;;  %2541 = vmatprep.subr.mxu0 %v706_v1  ;;  %v981_v0 = vld [vmem:[%s3102_s7 + $0x1650] sm:$0xff]  ;;  %v1056_v1 = vld [vmem:[%s3102_s7 + $0x18a8] sm:$0xff] }
 0x1e8   : > { %2576 = vmatprep.subr.mxu1 %v866_v2  ;;  %2542 = vmatpush3.msra.mxu0 %v626_v4  ;;  %v976_v4 = vld [vmem:[%s3102_s7 + $0x1628] sm:$0xff] }
 0x1e9   : > { %2577 = vmatpush3.msra.mxu1 %v786_v5  ;;  %2543 = vmatprep.subr.mxu0 %v701_v6  ;;  %v1051_v5 = vld [vmem:[%s3102_s7 + $0x1880] sm:$0xff] }
 0x1ea   : > { %2578 = vmatprep.subr.mxu1 %v861_v7  ;;  %2544 = vmatpush3.msra.mxu0 %v621_v9  ;;  %v971_v7 = vld [vmem:[%s3102_s7 + $0x1600] sm:$0xff] }
 0x1eb   : > { %2579 = vmatpush3.msra.mxu1 %v781_v10  ;;  %2545 = vmatprep.subr.mxu0 %v696_v12  ;;  %v966_v10 = vld [vmem:[%s3102_s7 + $0x15d8] sm:$0xff] }
 0x1ec   : > { %2580 = vmatprep.subr.mxu1 %v856_v14  ;;  %2546 = vmatpush3.msra.mxu0 %v616_v18  ;;  %v961_v14 = vld [vmem:[%s3102_s7 + $0x15b0] sm:$0xff] }
 0x1ed   : > { %2581 = vmatpush3.msra.mxu1 %v776_v19  ;;  %2547 = vmatprep.subr.mxu0 %v691_v24  ;;  %v956_v19 = vld [vmem:[%s3102_s7 + $0x1588] sm:$0xff] }
 0x1ee   : > { %2582 = vmatprep.subr.mxu1 %v851_v25  ;;  %2548 = vmatpush3.msra.mxu0 %v611_v27  ;;  %v951_v25 = vld [vmem:[%s3102_s7 + $0x1560] sm:$0xff]  ;;  %v1026_v27 = vld [vmem:[%s3102_s7 + $0x17b8] sm:$0xff] }
 0x1ef   : > { %2583 = vmatpush3.msra.mxu1 %v771_v28  ;;  %2549 = vmatprep.subr.mxu0 %v686_v31  ;;  %v946_v31 = vld [vmem:[%s3102_s7 + $0x1538] sm:$0xff] }
 0x1f0   : > { %2584 = vmatprep.subr.mxu1 %v846_v32  ;;  %v1417_v40 = vpop.f32.mrf.mxu0  ;;  %2550 = vmatpush3.msra.mxu0 %v606_v34  ;;  %v1021_v32 = vld [vmem:[%s3102_s7 + $0x1790] sm:$0xff] }
 0x1f1   : > { %2585 = vmatpush3.msra.mxu1 %v766_v35  ;;  %v1418_v43 = vadd.f32 %v1417_v40, %v1347_v36  ;;  %2551 = vmatprep.subr.mxu0 %v681_v37  ;;  %v941_v35 = vld [vmem:[%s3102_s7 + $0x1510] sm:$0xff]  ;;  %v1016_v36 = vld [vmem:[%s3102_s7 + $0x1768] sm:$0xff] }
 0x1f2   : > { %2586 = vmatprep.subr.mxu1 %v841_v38  ;;  %v1419_v45 = vpop.f32.mrf.mxu0  ;;  %2552 = vmatpush3.msra.mxu0 %v601_v39  ;;  %v936_v39 = vld [vmem:[%s3102_s7 + $0x14e8] sm:$0xff] }
 0x1f3   : > { %2587 = vmatpush3.msra.mxu1 %v761_v13  ;;  %v2127_v48 = vrot.slane %v1418_v43, 4  ;;  %v1420_v49 = vadd.f32 %v1419_v45, %v1349_v41  ;;  %2553 = vmatprep.subr.mxu0 %v676_v15  ;;  %v1011_v13 = vld [vmem:[%s3102_s7 + $0x1740] sm:$0xff]  ;;  %v926_v45 = vld [vmem:[%s3102_s7 + $0x1498] sm:$0xff] }
 0x1f4   : > { %2588 = vmatprep.subr.mxu1 %v836_v42  ;;  %2554 = vmatpush3.msra.mxu0 %v596_v44  ;;  %v931_v15 = vld [vmem:[%s3102_s7 + $0x14c0] sm:$0xff]  ;;  %v1006_v42 = vld [vmem:[%s3102_s7 + $0x1718] sm:$0xff] }
 0x1f5   : > { %1981 = vmatprep.mubr.f32.mxu0 %v2735_v52  ;;  %v2128_v53 = vadd.f32 %v2127_v48, %v1418_v43  ;;  %v2133_v55 = vrot.slane %v1420_v49, 4  ;;  %2555 = vmatprep.subr.mxu0 %v671_v46  ;;  %v1001_v46 = vld [vmem:[%s3102_s7 + $0x16f0] sm:$0xff]  ;;  %v2225_v52 = vlaneseq }
 0x1f6   : > { %2589 = vmatpush3.msra.mxu1 %v756_v47  ;;  %2556 = vmatpush3.msra.mxu0 %v591_v50  ;;  %v996_v50 = vld [vmem:[%s3102_s7 + $0x16c8] sm:$0xff] }
 0x1f7   : > { %v2129_v57 = vrot.slane %v2128_v53, 2  ;;  %2590 = vmatprep.subr.mxu1 %v831_v51  ;;  %v2134_v59 = vadd.f32 %v2133_v55, %v1420_v49  ;;  %1982 = vmatmul.mubr.f32.vlgmr.msra.gmra.mxu0 %v2736_v60  ;;  %v991_v55 = vld [vmem:[%s3102_s7 + $0x16a0] sm:$0xff]  ;;  %v3956_v60 = vld [vmem:[%s2220_s14] sm:$0x1f] }
 0x1f8   : > { %2595 = vmatprep.subr.mxu0 %v1066_v54  ;;  %2591 = vmatpush3.msra.mxu1 %v751_v56  ;;  %v916_v54 = vld [vmem:[%s3102_s7 + $0x1448] sm:$0xff] }
 0x1f9   : > { %v2130_v62 = vadd.f32 %v2129_v57, %v2128_v53  ;;  %2051 = vmatprep.mubr.f32.mxu1 %v3763_v21  ;;  %v2135_v63 = vrot.slane %v2134_v59, 2  ;;  %2596 = vmatpush3.msra.mxu0 %v986_v58  ;;  %v911_v57 = vld [vmem:[%s3102_s7 + $0x1420] sm:$0xff]  ;;  %v3950_v58 = vshrl.u32 %v2225_v52, 7 }
 0x1fa   : > { %2052 = vmatmul.mubr.f32.vlgmr.msra.gmra.mxu1 %v3767_v23  ;;  %2597 = vmatprep.subr.mxu0 %v1061_v61 }
 0x1fb   : > { %v2131_v2 = vrot.slane %v2130_v62, 1  ;;  %v2136_v3 = vadd.f32 %v2135_v63, %v2134_v59  ;;  %2121 = vmatprep.mubr.f32.mxu0 %v3772_v26  ;;  %2598 = vmatpush3.msra.mxu0 %v981_v0  ;;  %v3954_v59 = vsub.s32 0, %v3950_v58  ;;  %v2231_v61 = vsub.s32 1, %v3950_v58 }
 0x1fc   : > { %2599 = vmatprep.subr.mxu0 %v1056_v1  ;;  %v3962_v1 = vld [vmem:[%s2222_s6] sm:$0x1f] }
 0x1fd   : > { %v2132_v21 = vadd.f32 %v2131_v2, %v2130_v62  ;;  %v2137_v6 = vrot.slane %v2136_v3, 1  ;;  %2600 = vmatpush3.msra.mxu0 %v976_v4  ;;  %v2228_v62 = vrot.slane %v3956_v60, %v3954_v59  ;;  %v2232_v63 = vrot.slane %v3956_v60, %v2231_v61 }
 0x1fe   : > { %2601 = vmatprep.subr.mxu0 %v1051_v5  ;;  %v2284_v4 = vrot.slane %v3962_v1, %v3954_v59 }
 0x1ff   : > { %v2158_v23 = vmul.f32 0.125, %v2132_v21  ;;  %v2138_v9 = vadd.f32 %v2137_v6, %v2136_v3  ;;  %2602 = vmatpush3.msra.mxu0 %v971_v7  ;;  %v2288_v7 = vrot.slane %v3962_v1, %v2231_v61 }
 0x200   : > { %2603 = vmatprep.subr.mxu0 %v1046_v8 }
 0x201   : > { %v3918_v26 = vsub.f32 %v1418_v43, %v2158_v23  ;;  %v2159_v12 = vmul.f32 0.125, %v2138_v9  ;;  %2604 = vmatpush3.msra.mxu0 %v966_v10 }
 0x202   : > { %2605 = vmatprep.subr.mxu0 %v1041_v11 }
 0x203   : > { %v2168_v17 = vmul.f32 %v3918_v26, %v3918_v26  ;;  %v3924_v18 = vsub.f32 %v1420_v49, %v2159_v12  ;;  %2606 = vmatpush3.msra.mxu0 %v961_v14  ;;  %v921_v49 = vld [vmem:[%s3102_s7 + $0x1470] sm:$0xff]  ;;  %v1488_v12 = vpop.f32.mrf.mxu1 }
 0x204   : > { %2607 = vmatprep.subr.mxu0 %v1036_v16 }
 0x205   : > { %v2173_v22 = vrot.slane %v2168_v17, 4  ;;  %v2169_v24 = vmul.f32 %v3924_v18, %v3924_v18  ;;  %2608 = vmatpush3.msra.mxu0 %v956_v19  ;;  %v1490_v16 = vpop.f32.mrf.mxu1 }
 0x206   : > { %2609 = vmatprep.subr.mxu0 %v1031_v20 }
 0x207   : > { %v2174_v28 = vadd.f32 %v2173_v22, %v2168_v17  ;;  %v2179_v30 = vrot.slane %v2169_v24, 4  ;;  %2610 = vmatpush3.msra.mxu0 %v951_v25 }
 0x208   : > { %2611 = vmatprep.subr.mxu0 %v1026_v27 }
 0x209   : > { %v2175_v33 = vrot.slane %v2174_v28, 2  ;;  %v2180_v34 = vadd.f32 %v2179_v30, %v2169_v24  ;;  %2612 = vmatpush3.msra.mxu0 %v946_v31 }
 0x20a   : > { %2613 = vmatprep.subr.mxu0 %v1021_v32 }
 0x20b   : > { %v2176_v37 = vadd.f32 %v2175_v33, %v2174_v28  ;;  %v2181_v38 = vrot.slane %v2180_v34, 2  ;;  %2614 = vmatpush3.msra.mxu0 %v941_v35 }
 0x20c   : > { %2615 = vmatprep.subr.mxu0 %v1016_v36 }
 0x20d   : > { %v2177_v40 = vrot.slane %v2176_v37, 1  ;;  %v2182_v41 = vadd.f32 %v2181_v38, %v2180_v34  ;;  %2616 = vmatpush3.msra.mxu0 %v936_v39 }
 0x20e   : > { %2617 = vmatprep.subr.mxu0 %v1011_v13 }
 0x20f   : > { %v2178_v43 = vadd.f32 %v2177_v40, %v2176_v37  ;;  %v2183_v44 = vrot.slane %v2182_v41, 1  ;;  %2618 = vmatpush3.msra.mxu0 %v931_v15 }
 0x210   : > { %2619 = vmatprep.subr.mxu0 %v1006_v42 }
 0x211   : > { %v2203_v47 = vmul.f32 0.125, %v2178_v43  ;;  %v2184_v48 = vadd.f32 %v2183_v44, %v2182_v41  ;;  %2620 = vmatpush3.msra.mxu0 %v926_v45 }
 0x212   : > { %2621 = vmatprep.subr.mxu0 %v1001_v46 }
 0x213   : > { %v2208_v51 = vadd.f32 1e-05, %v2203_v47  ;;  %v2204_v53 = vmul.f32 0.125, %v2184_v48  ;;  %2622 = vmatpush3.msra.mxu0 %v921_v49 }
 0x214   : > { %2623 = vmatprep.subr.mxu0 %v996_v50 }
 0x215   : > { %2713 = vrsqrt.f32 %v2208_v51  ;;  %v2209_v56 = vadd.f32 1e-05, %v2204_v53  ;;  %2624 = vmatpush3.msra.mxu0 %v916_v54 }
 0x216   : > { %2625 = vmatprep.subr.mxu0 %v991_v55 }
 0x217   : > { %2715 = vrsqrt.f32 %v2209_v56  ;;  %2626 = vmatpush3.msra.mxu0 %v911_v57 }
 0x218   : > { %2122 = vmatmul.mubr.f32.vlgmr.msra.gmra.mxu0 %v3777_v29 }
 0x222   : > { %v2714_v0 = vpop.eup %2713 }
 0x223   : > { %v2250_v2 = vmul.f32 %v2714_v0, %v2228_v62 }
 0x224   : > { %v2716_v3 = vpop.eup %2715 }
 0x225   : > { %v2258_v29 = vrot.slane %v2250_v2, %v3954_v59  ;;  %v2251_v5 = vmul.f32 %v2716_v3, %v2232_v63 }
 0x227   : > { %v2275_v21 = vmul.f32 %v2258_v29, %v3918_v26  ;;  %v2262_v6 = vrot.slane %v2251_v5, %v3954_v59 }
 0x229   : > { %v2306_v8 = vadd.f32 %v2284_v4, %v2275_v21  ;;  %v2276_v23 = vmul.f32 %v2262_v6, %v3924_v18  ;;  %v2235_v21 = vsub.s32 2, %v3950_v58  ;;  %v2239_v6 = vsub.s32 3, %v3950_v58 }
 0x22b   : > { %v2311_v9 = vmax.f32 %v2306_v8, 0.0  ;;  %v2307_v10 = vadd.f32 %v2288_v7, %v2276_v23  ;;  %v2236_v7 = vrot.slane %v3956_v60, %v2235_v21  ;;  %v2240_v8 = vrot.slane %v3956_v60, %v2239_v6 }
 0x22d   : > { %2316 = vst [vmem:[%s3972_s25] sm:$0xff] %v2311_v9  ;;  %v2312_v11 = vmax.f32 %v2307_v10, 0.0 }
 0x22f   : > { %2317 = vst [vmem:[%s3972_s25 + $0x8] sm:$0xff] %v2312_v11 }
 0x232   : > { %v1559_v14 = vpop.f32.mrf.mxu0 }
 0x233   : > { %v1560_v19 = vadd.f32 %v1559_v14, %v1488_v12  ;;  %v2292_v12 = vrot.slane %v3962_v1, %v2235_v21 }
 0x234   : > { %v1561_v26 = vpop.f32.mrf.mxu0  ;;  %v1630_v17 = vpop.f32.mrf.mxu1 }
 0x235   : > { %v1562_v20 = vadd.f32 %v1561_v26, %v1490_v16  ;;  %v1631_v24 = vadd.f32 %v1630_v17, %v1560_v19  ;;  %v2296_v17 = vrot.slane %v3962_v1, %v2239_v6 }
 0x236   : > { %v1632_v22 = vpop.f32.mrf.mxu1 }
 0x237   : > { %v1633_v18 = vadd.f32 %v1632_v22, %v1562_v20 }
 0x274   : > { %v1701_v25 = vpop.f32.mrf.mxu0 }
 0x275   : > { %v1702_v27 = vadd.f32 %v1701_v25, %v1631_v24 }
 0x276   : > { %v1703_v28 = vpop.f32.mrf.mxu0  ;;  %v1772_v30 = vpop.f32.mrf.mxu1 }
 0x277   : > { %v1704_v31 = vadd.f32 %v1703_v28, %v1633_v18  ;;  %v1773_v32 = vadd.f32 %v1772_v30, %v1702_v27 }
 0x278   : > { %v1774_v33 = vpop.f32.mrf.mxu1 }
 0x279   : > { %v2139_v34 = vrot.slane %v1773_v32, 4  ;;  %v1775_v35 = vadd.f32 %v1774_v33, %v1704_v31 }
 0x27b   : > { %v2140_v36 = vadd.f32 %v2139_v34, %v1773_v32  ;;  %v2145_v37 = vrot.slane %v1775_v35, 4 }
 0x27d   : > { %v2141_v38 = vrot.slane %v2140_v36, 2  ;;  %v2146_v39 = vadd.f32 %v2145_v37, %v1775_v35 }
 0x27f   : > { %v2142_v13 = vadd.f32 %v2141_v38, %v2140_v36  ;;  %v2147_v40 = vrot.slane %v2146_v39, 2 }
 0x281   : > { %v2143_v41 = vrot.slane %v2142_v13, 1  ;;  %v2148_v15 = vadd.f32 %v2147_v40, %v2146_v39 }
 0x283   : > { %v2144_v42 = vadd.f32 %v2143_v41, %v2142_v13  ;;  %v2149_v43 = vrot.slane %v2148_v15, 1 }
 0x285   : > { %v2160_v44 = vmul.f32 0.125, %v2144_v42  ;;  %v2150_v45 = vadd.f32 %v2149_v43, %v2148_v15 }
 0x287   : > { %v2165_v46 = vsub.f32 %v1773_v32, %v2160_v44  ;;  %v2161_v47 = vmul.f32 0.125, %v2150_v45 }
 0x289   : > { %v2170_v48 = vmul.f32 %v2165_v46, %v2165_v46  ;;  %v2166_v49 = vsub.f32 %v1775_v35, %v2161_v47 }
 0x28b   : > { %v2185_v50 = vrot.slane %v2170_v48, 4  ;;  %v2171_v51 = vmul.f32 %v2166_v49, %v2166_v49 }
 0x28d   : > { %v2186_v52 = vadd.f32 %v2185_v50, %v2170_v48  ;;  %v2191_v53 = vrot.slane %v2171_v51, 4 }
 0x28f   : > { %v2187_v54 = vrot.slane %v2186_v52, 2  ;;  %v2192_v55 = vadd.f32 %v2191_v53, %v2171_v51 }
 0x291   : > { %v2188_v56 = vadd.f32 %v2187_v54, %v2186_v52  ;;  %v2193_v57 = vrot.slane %v2192_v55, 2 }
 0x293   : > { %v2189_v61 = vrot.slane %v2188_v56, 1  ;;  %v2194_v62 = vadd.f32 %v2193_v57, %v2192_v55 }
 0x295   : > { %v2190_v63 = vadd.f32 %v2189_v61, %v2188_v56  ;;  %v2195_v0 = vrot.slane %v2194_v62, 1 }
 0x296   : > { %v2487_v18 = vpop.f32.mrf.mxu0 }
 0x297   : > { %v2205_v2 = vmul.f32 0.125, %v2190_v63  ;;  %v2196_v3 = vadd.f32 %v2195_v0, %v2194_v62  ;;  %v2522_v27 = vpop.f32.mrf.mxu1  ;;  %v2243_v0 = vsub.s32 4, %v3950_v58 }
 0x298   : > { %v2488_v28 = vpop.f32.mrf.mxu0 }
 0x299   : > { %v2210_v29 = vadd.f32 1e-05, %v2205_v2  ;;  %v2206_v4 = vmul.f32 0.125, %v2196_v3  ;;  %v2523_v31 = vpop.f32.mrf.mxu1  ;;  %v2489_v34 = vadd.f32 %v2488_v28, %v2487_v18  ;;  %v2244_v2 = vrot.slane %v3956_v60, %v2243_v0 }
 0x29a   : > { %v2524_v35 = vadd.f32 %v2523_v31, %v2522_v27 }
 0x29b   : > { %2717 = vrsqrt.f32 %v2210_v29  ;;  %v2211_v5 = vadd.f32 1e-05, %v2206_v4 }
 0x29c   : > { %v1914_v38 = vadd.f32 %v2524_v35, %v2489_v34 }
 0x29d   : > { %2719 = vrsqrt.f32 %v2211_v5  ;;  %v2300_v5 = vrot.slane %v3962_v1, %v2243_v0 }
 0x2a8   : > { %v2718_v23 = vpop.eup %2717 }
 0x2a9   : > { %v2252_v9 = vmul.f32 %v2718_v23, %v2236_v7 }
 0x2aa   : > { %v2720_v10 = vpop.eup %2719 }
 0x2ab   : > { %v2266_v11 = vrot.slane %v2252_v9, %v3954_v59  ;;  %v2253_v14 = vmul.f32 %v2720_v10, %v2240_v8 }
 0x2ad   : > { %v2277_v16 = vmul.f32 %v2266_v11, %v2165_v46  ;;  %v2270_v26 = vrot.slane %v2253_v14, %v3954_v59 }
 0x2af   : > { %v2308_v19 = vadd.f32 %v2292_v12, %v2277_v16  ;;  %v2278_v20 = vmul.f32 %v2270_v26, %v2166_v49 }
 0x2b1   : > { %v2313_v22 = vmax.f32 %v2308_v19, 0.0  ;;  %v2309_v24 = vadd.f32 %v2296_v17, %v2278_v20 }
 0x2b3   : > { %2318 = vst [vmem:[%s3972_s25 + $0x10] sm:$0xff] %v2313_v22  ;;  %v2314_v25 = vmax.f32 %v2309_v24, 0.0 }
 0x2b5   : > { %2319 = vst [vmem:[%s3972_s25 + $0x18] sm:$0xff] %v2314_v25 }
 0x2b7   : > { %v2557_v30 = vpop.f32.mrf.mxu0 }
 0x2b9   : > { %v2558_v32 = vpop.f32.mrf.mxu0 }
 0x2ba   : > { %v2592_v33 = vpop.f32.mrf.mxu1  ;;  %v2559_v36 = vadd.f32 %v2558_v32, %v2557_v30 }
 0x2bc   : > { %v2593_v37 = vpop.f32.mrf.mxu1  ;;  %v1984_v39 = vadd.f32 %v2559_v36, %v1914_v38 }
 0x2bd   : > { %v2594_v13 = vadd.f32 %v2593_v37, %v2592_v33 }
 0x2bf   : > { %v2054_v15 = vadd.f32 %v2594_v13, %v1984_v39 }
 0x2d8   : > { %v2627_v40 = vpop.f32.mrf.mxu0 }
 0x2da   : > { %v2628_v41 = vpop.f32.mrf.mxu0 }
 0x2db   : > { %v2629_v42 = vadd.f32 %v2628_v41, %v2627_v40 }
 0x2dd   : > { %v2124_v43 = vadd.f32 %v2629_v42, %v2054_v15 }
 0x2df   : > { %v2151_v44 = vrot.slane %v2124_v43, 4 }
 0x2e1   : > { %v2152_v45 = vadd.f32 %v2151_v44, %v2124_v43 }
 0x2e3   : > { %v2153_v46 = vrot.slane %v2152_v45, 2 }
 0x2e5   : > { %v2154_v47 = vadd.f32 %v2153_v46, %v2152_v45 }
 0x2e7   : > { %v2155_v48 = vrot.slane %v2154_v47, 1 }
 0x2e9   : > { %v2156_v49 = vadd.f32 %v2155_v48, %v2154_v47 }
 0x2eb   : > { %v2162_v50 = vmul.f32 0.125, %v2156_v49 }
 0x2ed   : > { %v2167_v51 = vsub.f32 %v2124_v43, %v2162_v50 }
 0x2ef   : > { %v2172_v52 = vmul.f32 %v2167_v51, %v2167_v51 }
 0x2f1   : > { %v2197_v53 = vrot.slane %v2172_v52, 4 }
 0x2f3   : > { %v2198_v54 = vadd.f32 %v2197_v53, %v2172_v52 }
 0x2f5   : > { %v2199_v55 = vrot.slane %v2198_v54, 2 }
 0x2f7   : > { %v2200_v56 = vadd.f32 %v2199_v55, %v2198_v54 }
 0x2f9   : > { %v2201_v57 = vrot.slane %v2200_v56, 1 }
 0x2fb   : > { %v2202_v61 = vadd.f32 %v2201_v57, %v2200_v56 }
 0x2fd   : > { %v2207_v62 = vmul.f32 0.125, %v2202_v61 }
 0x2ff   : > { %v2212_v63 = vadd.f32 1e-05, %v2207_v62 }
 0x301   : > { %2721 = vrsqrt.f32 %v2212_v63 }
 0x30e   : > { %v2722_v3 = vpop.eup %2721 }
 0x30f   : > { %v2254_v29 = vmul.f32 %v2722_v3, %v2244_v2 }
 0x311   : > { %v2274_v4 = vrot.slane %v2254_v29, %v3954_v59 }
 0x313   : > { %v2279_v21 = vmul.f32 %v2274_v4, %v2167_v51 }
 0x315   : > { %v2310_v6 = vadd.f32 %v2300_v5, %v2279_v21 }
 0x317   : > { %v2315_v7 = vmax.f32 %v2310_v6, 0.0 }
 0x319   : > { %2320 = vst [vmem:[%s3972_s25 + $0x20] sm:$0xff] %v2315_v7 }
 0x31a   : > { %2856 = shalt.err (!%p2853_p5)
}
 0x31b   : > { %s2857_s19 = scalar_lea.hbm %s2334_s20, 640  ;;  %s2861_s26 = scalar_lea.hbm %s4032_s4, 1280 }
 0x31c   : > { %p2858_p9 = scmp.ne.s32.totalorder %s2334_s20, %s2857_s19  ;;  %p2862_p11 = scmp.lt.s32.totalorder %s2334_s20, %s4032_s4 }
 0x31d   : > { %p2863_p12 = scmp.lt.s32.totalorder %s2861_s26, %s2857_s19 }
 0x31e   : > { %p2859_p7 = pnand %p2858_p9, %p4055_p13 }
 0x31f   : > { %p2864_p1 = por %p2863_p12, %p2862_p11 }
 0x320   : > { %p2860_p10 = pneg %p2859_p7 }
 0x322   : > { %p2865_p6 = pnand %p2864_p1, %p2860_p10 }
 0x324   : > { %2868 = shalt.err (!%p2865_p6)
}
 0x325   : > { %2647 = dma.vmem_to_hbm [thread:$0]  (%p4055_p13), %s2337_s11, 640, %s2334_s20, %s2322_s30  }
 0x326 PF: > { %s2348_s6 = sand.u32 1, %s2907_s15   ;;  %p4056_p3 = scmp.ne.s32.totalorder %s4041_s28, 0 }
 0x327   : > { %p4057_p2 = scmp.ge.s32.totalorder %s2919_s18, 2  ;;  %s2349_s22 = scalar_lea.sflag [#allocation4], %s2348_s6 }
 0x329   : > { %p2664_p8 = pnand %p4057_p2, %p4056_p3 }
 0x32b   : > { %p2665_p4 = pneg %p2664_p8 }
 0x32d   : > { %2902 = dma.done.wait (%p2665_p4), %s2349_s22, 640  }
 0x32e   : > { %2904 = vsyncadd (%p2665_p4), %s2349_s22, 4294966656  ;;  %p19_p0 = scmp.ge.s32.totalorder %s2979_s21, 4   ;;  %s4058_s15 = smov %s2911_s16 }
 0x32f   : > { %s4059_s16 = smov %s2915_s17  ;;  %s4060_s17 = smov %s2991_s24 }
 0x330   : > { %s4061_s18 = smov %s2979_s21  ;;  %21 = sbr.rel (!%p19_p0) target bundleno = 7 (0x7), region = 96 }
 0x335   :  { %2354 = vsyncpa [#allocation3], 1 }
 0x336   :  { %2356 = vsyncpa [#allocation3 + $0x1], 1 }
 0x337   :  { %2357 = vsyncpa [#allocation6], 1 }
 0x338   :  { %2359 = vsyncpa [#allocation6 + $0x1], 1 }
 0x339   :  { %2360 = vsyncpa [#allocation9], 1 }
 0x33a   :  { %2361 = vsyncpa [#allocation4], 1 }
 0x33b   :  { %2363 = vsyncpa [#allocation4 + $0x1], 1 }

</bundles_post_ra>
